<compile_context>
chip_gen: v7x
topology: tpu7x:2x2x1
jax: 0.10.0
libtpu: 0.0.40
codegen_flags: <defaults>
</compile_context>

<pallas_src>
import functools
import math

import jax
import jax.numpy as jnp
from jax import lax
from jax.experimental import pallas as pl
from jax.experimental.pallas import tpu as pltpu

# ----------------------------- config ---------------------------------------
VOCAB_TOKENS = 15          # config.tokens
ABSORB = True              # config.graph.type == "absorb"
VOCAB = VOCAB_TOKENS + (1 if ABSORB else 0)
HIDDEN = 32                # config.model.hidden_size
N_HEADS = 2                # config.model.n_heads
HEAD_DIM = HIDDEN // N_HEADS
COND = 32                  # config.model.cond_dim
N_BLOCKS = 2               # config.model.n_blocks
MLP_RATIO = 4
FREQ_EMB = 256             # TimestepEmbedder frequency_embedding_size
SCALE_BY_SIGMA = True      # config.model.scale_by_sigma
LN_EPS = 1e-5

BATCH = 2
SEQ = 8
BS = BATCH * SEQ
ATT_SCALE = 1.0 / math.sqrt(HEAD_DIM)

_N_WEIGHTS = 4 + 10 * N_BLOCKS + 5   # timestep MLP + per-block + final layer


# ----------------------- in-kernel math helpers (pure jnp) --------------------
def _mm(a, b):
    return jnp.dot(a, b, preferred_element_type=jnp.float32)


def _silu(y):
    return y * jax.nn.sigmoid(y)


def _gelu_tanh(y):
    return 0.5 * y * (1.0 + jnp.tanh(0.7978845608028654 * (y + 0.044715 * y * y * y)))


def _ln_modulate(x, w, shift, scale):
    # LayerNorm (no bias, f32) * weight, then adaLN "modulate": x*(1+scale)+shift
    mu = jnp.mean(x, axis=-1, keepdims=True)
    xc = x - mu
    var = jnp.mean(xc * xc, axis=-1, keepdims=True)
    xn = xc * lax.rsqrt(var + LN_EPS)
    return (xn * w) * (1.0 + scale) + shift


def _rotate_half_heads(x):
    # rotate_half applied per head on the packed (BS, H*Dh) layout (GPT-NeoX convention,
    # matching SEDD's rotary.py; the v slice is left un-rotated upstream).
    d2 = HEAD_DIM // 2
    parts = []
    for h in range(N_HEADS):
        x1 = x[:, h * HEAD_DIM: h * HEAD_DIM + d2]
        x2 = x[:, h * HEAD_DIM + d2: (h + 1) * HEAD_DIM]
        parts += [-x2, x1]
    return jnp.concatenate(parts, axis=-1)


def _expand_rows(v, reps):
    # (B, D) -> (B*reps, D), each batch row repeated `reps` times (batch-major row order)
    parts = [jnp.broadcast_to(v[b:b + 1, :], (reps, v.shape[1])) for b in range(v.shape[0])]
    return parts[0] if len(parts) == 1 else jnp.concatenate(parts, axis=0)


# ----------------------------- fused SEDD kernel ------------------------------
def _sedd_fused_kernel(x0_ref, tfreq_ref, cos_ref, sin_ref, idx_ref, esig_ref, *rest):
    # rest = 29 weight refs followed by the single output ref.
    o_ref = rest[-1]
    wrefs = rest[:-1]

    tW1, tb1, tW2, tb2 = wrefs[0:4]
    blk_refs = [wrefs[4 + i * 10: 4 + (i + 1) * 10] for i in range(N_BLOCKS)]
    f_norm_w, f_adaln_w, f_adaln_b, f_lin_w, f_lin_b = wrefs[4 + 10 * N_BLOCKS:]

    # --- conditioning vector c = F.silu(sigma_map(sigma)) : (B, COND) ---
    tf = tfreq_ref[...]                                                   # (B, FREQ_EMB)
    c = _silu(_mm(_silu(_mm(tf, tW1[...]) + tb1[...]), tW2[...]) + tb2[...])

    x = x0_ref[...]                                                       # (BS, D)
    cos_f = cos_ref[...]                                                  # (BS, D)
    sin_f = sin_ref[...]                                                  # (BS, D)

    # --- DDiT blocks (statically unrolled) ---
    for (norm1_w, norm2_w, qkv_w, attn_out_w,
         mlp_w1, mlp_b1, mlp_w2, mlp_b2, adaln_w, adaln_b) in blk_refs:
        mods = _mm(c, adaln_w[...]) + adaln_b[...]                        # (B, 6D)
        sh_msa, sc_msa, g_msa, sh_mlp, sc_mlp, g_mlp = (
            _expand_rows(m, SEQ) for m in jnp.split(mods, 6, axis=-1))

        # ---- attention sub-block ----
        h = _ln_modulate(x, norm1_w[...], sh_msa, sc_msa)                 # (BS, D)
        qkv = _mm(h, qkv_w[...])                                          # (BS, 3D)
        q = qkv[:, :HIDDEN]
        k = qkv[:, HIDDEN:2 * HIDDEN]
        v = qkv[:, 2 * HIDDEN:]
        # in-kernel rotary; fold 1/sqrt(Dh) into q (commutes with the rotation)
        q = (q * cos_f + _rotate_half_heads(q) * sin_f) * ATT_SCALE
        k = k * cos_f + _rotate_half_heads(k) * sin_f

        batch_outs = []
        for b in range(BATCH):
            rows = slice(b * SEQ, (b + 1) * SEQ)
            head_outs = []
            for hh in range(N_HEADS):
                cols = slice(hh * HEAD_DIM, (hh + 1) * HEAD_DIM)
                qs, ks, vs = q[rows, cols], k[rows, cols], v[rows, cols]  # (S, Dh)
                s = lax.dot_general(qs, ks, (((1,), (1,)), ((), ())),
                                    preferred_element_type=jnp.float32)  # (S, S)
                s = s - jnp.max(s, axis=-1, keepdims=True)
                p = jnp.exp(s)
                inv = pl.reciprocal(jnp.sum(p, axis=-1, keepdims=True), approx=True)
                head_outs.append(_mm(p, vs) * inv)                        # (S, Dh)
            batch_outs.append(jnp.concatenate(head_outs, axis=-1))        # (S, D)
        attn = jnp.concatenate(batch_outs, axis=0)                        # (BS, D)
        x = x + g_msa * _mm(attn, attn_out_w[...])    # bias_dropout_scale (eval: no dropout)

        # ---- MLP sub-block ----
        h = _ln_modulate(x, norm2_w[...], sh_mlp, sc_mlp)
        h1 = _gelu_tanh(_mm(h, mlp_w1[...]) + mlp_b1[...])
        x = x + g_mlp * (_mm(h1, mlp_w2[...]) + mlp_b2[...])

    # --- final adaLN layer + linear to vocab ---
    fm = _mm(c, f_adaln_w[...]) + f_adaln_b[...]                          # (B, 2D)
    f_shift, f_scale = (_expand_rows(m, SEQ) for m in jnp.split(fm, 2, axis=-1))
    h = _ln_modulate(x, f_norm_w[...], f_shift, f_scale)
    logits = _mm(h, f_lin_w[...]) + f_lin_b[...]                          # (BS, V)

    # --- scale-by-sigma shift + scatter zeros at the input token indices ---
    if SCALE_BY_SIGMA:
        logits = logits - esig_ref[...] - math.log(VOCAB - 1)
    col = lax.broadcasted_iota(jnp.int32, logits.shape, 1)
    logits = jnp.where(col == idx_ref[...], 0.0, logits)
    o_ref[...] = logits.astype(o_ref.dtype)


# ----------------------------- JAX glue / wrapper ------------------------------
def timestep_embedding(t, dim, max_period=10000.0):
    half = dim // 2
    freqs = jnp.exp(-math.log(max_period) * jnp.arange(half, dtype=jnp.float32) / half)
    args = t.astype(jnp.float32)[:, None] * freqs[None, :]
    return jnp.concatenate([jnp.cos(args), jnp.sin(args)], axis=-1)       # (B, dim)


def rotary_tables(seq_len, n_heads, head_dim, batch, base=10000.0):
    # Precompute cos/sin in the packed (B*S, H*Dh) layout the fused kernel consumes.
    inv_freq = 1.0 / (base ** (jnp.arange(0, head_dim, 2, dtype=jnp.float32) / head_dim))
    t = jnp.arange(seq_len, dtype=jnp.float32)
    freqs = jnp.einsum("i,j->ij", t, inv_freq)                            # (S, Dh/2)
    emb = jnp.concatenate([freqs, freqs], axis=-1)                        # (S, Dh)
    cos_f = jnp.tile(jnp.cos(emb), (batch, n_heads))                      # (B*S, H*Dh)
    sin_f = jnp.tile(jnp.sin(emb), (batch, n_heads))
    return cos_f, sin_f


def _full_spec(shape):
    nd = len(shape)
    return pl.BlockSpec(shape, lambda i, _nd=nd: (0,) * _nd)


def _flatten_sedd_weights(p):
    flat = [p["tW1"], p["tb1"], p["tW2"], p["tb2"]]
    for blk in p["blocks"]:
        flat += [blk["norm1_w"], blk["norm2_w"], blk["qkv_w"], blk["attn_out_w"],
                 blk["mlp_w1"], blk["mlp_b1"], blk["mlp_w2"], blk["mlp_b2"],
                 blk["adaln_w"], blk["adaln_b"]]
    flat += [p["f_norm_w"], p["f_adaln_w"], p["f_adaln_b"], p["f_lin_w"], p["f_lin_b"]]
    assert len(flat) == _N_WEIGHTS
    return flat


def sedd_forward(params, indices, sigma):
    # TODO(synk): infosedd's SEDD may tweak conditioning when is_marginal=True; here
    # is_marginal only selects which sub-model runs, exactly as DoubleSEDD.forward does.
    B, S = indices.shape
    x0 = params["embedding"][indices].reshape(B * S, HIDDEN)              # token gather (glue)
    t_freq = timestep_embedding(sigma, FREQ_EMB)                          # (B, 256)
    cos_f, sin_f = rotary_tables(S, N_HEADS, HEAD_DIM, B)                 # (B*S, D) each

    esigm1_log = jnp.log(jnp.where(sigma < 0.5, jnp.expm1(sigma), jnp.exp(sigma) - 1.0))
    esig_rows = jnp.repeat(esigm1_log, S)[:, None].astype(jnp.float32)    # (B*S, 1)
    idx_rows = indices.reshape(B * S, 1).astype(jnp.int32)                # (B*S, 1)

    inputs = [x0, t_freq, cos_f, sin_f, idx_rows, esig_rows] + _flatten_sedd_weights(params)
    in_specs = [_full_spec(a.shape) for a in inputs]

    logits_flat = pl.pallas_call(
        _sedd_fused_kernel,
        out_shape=jax.ShapeDtypeStruct((B * S, VOCAB), jnp.float32),
        grid=(1,),
        in_specs=in_specs,
        out_specs=_full_spec((B * S, VOCAB)),
        compiler_params=pltpu.CompilerParams(
            dimension_semantics=("arbitrary",),
            vmem_limit_bytes=32 * 1024 * 1024),
    )(*inputs)
    return logits_flat.reshape(B, S, VOCAB)


@functools.partial(jax.jit, static_argnames=("is_marginal",))
def double_sedd_forward(params, x, sigma, is_marginal=False):
    if is_marginal:
        return sedd_forward(params["model1"], x, sigma)
    else:
        return sedd_forward(params["model2"], x, sigma)


# ----------------------------- parameter init --------------------------------
def _linear_params(key, fan_in, fan_out, bias=True, scale=None):
    kw, kb = jax.random.split(key)
    s = (1.0 / math.sqrt(fan_in)) if scale is None else scale
    w = jax.random.normal(kw, (fan_in, fan_out), jnp.float32) * s
    if not bias:
        return w, None
    b = jax.random.normal(kb, (1, fan_out), jnp.float32) * 0.02
    return w, b


def init_sedd_params(key):
    keys = jax.random.split(key, 4 + N_BLOCKS)
    p = {}
    p["embedding"] = jax.random.normal(keys[0], (VOCAB, HIDDEN), jnp.float32) * 0.02
    p["tW1"], p["tb1"] = _linear_params(keys[1], FREQ_EMB, COND)
    p["tW2"], p["tb2"] = _linear_params(keys[2], COND, COND)
    blocks = []
    for i in range(N_BLOCKS):
        bk = jax.random.split(keys[3 + i], 6)
        blk = {}
        blk["norm1_w"] = jnp.ones((1, HIDDEN), jnp.float32)
        blk["norm2_w"] = jnp.ones((1, HIDDEN), jnp.float32)
        blk["qkv_w"], _ = _linear_params(bk[0], HIDDEN, 3 * HIDDEN, bias=False)
        blk["attn_out_w"], _ = _linear_params(bk[1], HIDDEN, HIDDEN, bias=False)
        blk["mlp_w1"], blk["mlp_b1"] = _linear_params(bk[2], HIDDEN, MLP_RATIO * HIDDEN)
        blk["mlp_w2"], blk["mlp_b2"] = _linear_params(bk[3], MLP_RATIO * HIDDEN, HIDDEN)
        # PyTorch zero-inits adaLN; small deterministic random so the gates do work.
        blk["adaln_w"], blk["adaln_b"] = _linear_params(bk[4], COND, 6 * HIDDEN, scale=0.02)
        blocks.append(blk)
    p["blocks"] = blocks
    fk = jax.random.split(keys[3 + N_BLOCKS], 2)
    p["f_norm_w"] = jnp.ones((1, HIDDEN), jnp.float32)
    p["f_adaln_w"], p["f_adaln_b"] = _linear_params(fk[0], COND, 2 * HIDDEN, scale=0.02)
    p["f_lin_w"], p["f_lin_b"] = _linear_params(fk[1], HIDDEN, VOCAB, scale=0.02)
    return p


# ----------------------------- main -------------------------------------------
if __name__ == "__main__":
    root = jax.random.PRNGKey(0)
    k_p1, k_p2, k_x, k_s = jax.random.split(root, 4)

    params = {"model1": init_sedd_params(k_p1), "model2": init_sedd_params(k_p2)}

    x = jax.random.randint(k_x, (BATCH, SEQ), 0, VOCAB, dtype=jnp.int32)
    sigma = jax.random.uniform(k_s, (BATCH,), jnp.float32, minval=0.05, maxval=1.0)

    out_model2 = double_sedd_forward(params, x, sigma, is_marginal=False)   # -> model2
    out_model1 = double_sedd_forward(params, x, sigma, is_marginal=True)    # -> model1
    jax.block_until_ready((out_model1, out_model2))

    assert out_model2.shape == (BATCH, SEQ, VOCAB)
    assert out_model1.shape == (BATCH, SEQ, VOCAB)
    assert bool(jnp.all(jnp.isfinite(out_model1)))
    assert bool(jnp.all(jnp.isfinite(out_model2)))
    print("KERNEL_OK")
</pallas_src>

<mosaic_0001>
module attributes {stable_mosaic.version = 11 : i64} {
  func.func @_sedd_fused_kernel(%arg0: i32, %arg1: memref<16x32xf32, #tpu.memory_space<vmem>>, %arg2: memref<2x256xf32, #tpu.memory_space<vmem>>, %arg3: memref<16x32xf32, #tpu.memory_space<vmem>>, %arg4: memref<16x32xf32, #tpu.memory_space<vmem>>, %arg5: memref<16x1xi32, #tpu.memory_space<vmem>>, %arg6: memref<16x1xf32, #tpu.memory_space<vmem>>, %arg7: memref<256x32xf32, #tpu.memory_space<vmem>>, %arg8: memref<1x32xf32, #tpu.memory_space<vmem>>, %arg9: memref<32x32xf32, #tpu.memory_space<vmem>>, %arg10: memref<1x32xf32, #tpu.memory_space<vmem>>, %arg11: memref<1x32xf32, #tpu.memory_space<vmem>>, %arg12: memref<1x32xf32, #tpu.memory_space<vmem>>, %arg13: memref<32x96xf32, #tpu.memory_space<vmem>>, %arg14: memref<32x32xf32, #tpu.memory_space<vmem>>, %arg15: memref<32x128xf32, #tpu.memory_space<vmem>>, %arg16: memref<1x128xf32, #tpu.memory_space<vmem>>, %arg17: memref<128x32xf32, #tpu.memory_space<vmem>>, %arg18: memref<1x32xf32, #tpu.memory_space<vmem>>, %arg19: memref<32x192xf32, #tpu.memory_space<vmem>>, %arg20: memref<1x192xf32, #tpu.memory_space<vmem>>, %arg21: memref<1x32xf32, #tpu.memory_space<vmem>>, %arg22: memref<1x32xf32, #tpu.memory_space<vmem>>, %arg23: memref<32x96xf32, #tpu.memory_space<vmem>>, %arg24: memref<32x32xf32, #tpu.memory_space<vmem>>, %arg25: memref<32x128xf32, #tpu.memory_space<vmem>>, %arg26: memref<1x128xf32, #tpu.memory_space<vmem>>, %arg27: memref<128x32xf32, #tpu.memory_space<vmem>>, %arg28: memref<1x32xf32, #tpu.memory_space<vmem>>, %arg29: memref<32x192xf32, #tpu.memory_space<vmem>>, %arg30: memref<1x192xf32, #tpu.memory_space<vmem>>, %arg31: memref<1x32xf32, #tpu.memory_space<vmem>>, %arg32: memref<32x64xf32, #tpu.memory_space<vmem>>, %arg33: memref<1x64xf32, #tpu.memory_space<vmem>>, %arg34: memref<32x16xf32, #tpu.memory_space<vmem>>, %arg35: memref<1x16xf32, #tpu.memory_space<vmem>>, %arg36: memref<16x16xf32, #tpu.memory_space<vmem>>) attributes {dimension_semantics = [#tpu.dimension_semantics<arbitrary>], iteration_bounds = array<i64: 1>, scalar_prefetch = 0 : i64, scratch_operands = 0 : i64, tpu.core_type = #tpu.core_type<tc>, window_params = [{pipeline_mode = #tpu.pipeline_mode<synchronous>, transform_indices = @transform_0, window_bounds = array<i64: 16, 32>}, {pipeline_mode = #tpu.pipeline_mode<synchronous>, transform_indices = @transform_1, window_bounds = array<i64: 2, 256>}, {pipeline_mode = #tpu.pipeline_mode<synchronous>, transform_indices = @transform_2, window_bounds = array<i64: 16, 32>}, {pipeline_mode = #tpu.pipeline_mode<synchronous>, transform_indices = @transform_3, window_bounds = array<i64: 16, 32>}, {pipeline_mode = #tpu.pipeline_mode<synchronous>, transform_indices = @transform_4, window_bounds = array<i64: 16, 1>}, {pipeline_mode = #tpu.pipeline_mode<synchronous>, transform_indices = @transform_5, window_bounds = array<i64: 16, 1>}, {pipeline_mode = #tpu.pipeline_mode<synchronous>, transform_indices = @transform_6, window_bounds = array<i64: 256, 32>}, {pipeline_mode = #tpu.pipeline_mode<synchronous>, transform_indices = @transform_7, window_bounds = array<i64: 1, 32>}, {pipeline_mode = #tpu.pipeline_mode<synchronous>, transform_indices = @transform_8, window_bounds = array<i64: 32, 32>}, {pipeline_mode = #tpu.pipeline_mode<synchronous>, transform_indices = @transform_9, window_bounds = array<i64: 1, 32>}, {pipeline_mode = #tpu.pipeline_mode<synchronous>, transform_indices = @transform_10, window_bounds = array<i64: 1, 32>}, {pipeline_mode = #tpu.pipeline_mode<synchronous>, transform_indices = @transform_11, window_bounds = array<i64: 1, 32>}, {pipeline_mode = #tpu.pipeline_mode<synchronous>, transform_indices = @transform_12, window_bounds = array<i64: 32, 96>}, {pipeline_mode = #tpu.pipeline_mode<synchronous>, transform_indices = @transform_13, window_bounds = array<i64: 32, 32>}, {pipeline_mode = #tpu.pipeline_mode<synchronous>, transform_indices = @transform_14, window_bounds = array<i64: 32, 128>}, {pipeline_mode = #tpu.pipeline_mode<synchronous>, transform_indices = @transform_15, window_bounds = array<i64: 1, 128>}, {pipeline_mode = #tpu.pipeline_mode<synchronous>, transform_indices = @transform_16, window_bounds = array<i64: 128, 32>}, {pipeline_mode = #tpu.pipeline_mode<synchronous>, transform_indices = @transform_17, window_bounds = array<i64: 1, 32>}, {pipeline_mode = #tpu.pipeline_mode<synchronous>, transform_indices = @transform_18, window_bounds = array<i64: 32, 192>}, {pipeline_mode = #tpu.pipeline_mode<synchronous>, transform_indices = @transform_19, window_bounds = array<i64: 1, 192>}, {pipeline_mode = #tpu.pipeline_mode<synchronous>, transform_indices = @transform_20, window_bounds = array<i64: 1, 32>}, {pipeline_mode = #tpu.pipeline_mode<synchronous>, transform_indices = @transform_21, window_bounds = array<i64: 1, 32>}, {pipeline_mode = #tpu.pipeline_mode<synchronous>, transform_indices = @transform_22, window_bounds = array<i64: 32, 96>}, {pipeline_mode = #tpu.pipeline_mode<synchronous>, transform_indices = @transform_23, window_bounds = array<i64: 32, 32>}, {pipeline_mode = #tpu.pipeline_mode<synchronous>, transform_indices = @transform_24, window_bounds = array<i64: 32, 128>}, {pipeline_mode = #tpu.pipeline_mode<synchronous>, transform_indices = @transform_25, window_bounds = array<i64: 1, 128>}, {pipeline_mode = #tpu.pipeline_mode<synchronous>, transform_indices = @transform_26, window_bounds = array<i64: 128, 32>}, {pipeline_mode = #tpu.pipeline_mode<synchronous>, transform_indices = @transform_27, window_bounds = array<i64: 1, 32>}, {pipeline_mode = #tpu.pipeline_mode<synchronous>, transform_indices = @transform_28, window_bounds = array<i64: 32, 192>}, {pipeline_mode = #tpu.pipeline_mode<synchronous>, transform_indices = @transform_29, window_bounds = array<i64: 1, 192>}, {pipeline_mode = #tpu.pipeline_mode<synchronous>, transform_indices = @transform_30, window_bounds = array<i64: 1, 32>}, {pipeline_mode = #tpu.pipeline_mode<synchronous>, transform_indices = @transform_31, window_bounds = array<i64: 32, 64>}, {pipeline_mode = #tpu.pipeline_mode<synchronous>, transform_indices = @transform_32, window_bounds = array<i64: 1, 64>}, {pipeline_mode = #tpu.pipeline_mode<synchronous>, transform_indices = @transform_33, window_bounds = array<i64: 32, 16>}, {pipeline_mode = #tpu.pipeline_mode<synchronous>, transform_indices = @transform_34, window_bounds = array<i64: 1, 16>}, {pipeline_mode = #tpu.pipeline_mode<synchronous>, transform_indices = @transform_35, window_bounds = array<i64: 16, 16>}]} {
    %c0 = arith.constant 0 : index
    %c0_0 = arith.constant 0 : index
    %0 = vector.load %arg2[%c0, %c0_0] : memref<2x256xf32, #tpu.memory_space<vmem>>, vector<2x256xf32>
    %c0_1 = arith.constant 0 : index
    %c0_2 = arith.constant 0 : index
    %1 = vector.load %arg7[%c0_1, %c0_2] : memref<256x32xf32, #tpu.memory_space<vmem>>, vector<256x32xf32>
    %cst = arith.constant dense<0.000000e+00> : vector<2x32xf32>
    %2 = tpu.matmul %0, %1, %cst {dimension_numbers = #tpu.dot_dimension_numbers<[1], [0], [0], [1], [0, 0, 1, 1], [], []>} : vector<2x256xf32>, vector<256x32xf32>, vector<2x32xf32> -> vector<2x32xf32>
    %c0_3 = arith.constant 0 : index
    %c0_4 = arith.constant 0 : index
    %3 = vector.load %arg8[%c0_3, %c0_4] : memref<1x32xf32, #tpu.memory_space<vmem>>, vector<1x32xf32>
    %4 = vector.broadcast %3 : vector<1x32xf32> to vector<2x32xf32>
    %5 = arith.addf %2, %4 : vector<2x32xf32>
    %6 = arith.negf %5 : vector<2x32xf32>
    %7 = math.exp %6 : vector<2x32xf32>
    %cst_5 = arith.constant 1.000000e+00 : f32
    %8 = vector.broadcast %cst_5 : f32 to vector<2x32xf32>
    %9 = arith.addf %8, %7 : vector<2x32xf32>
    %10 = arith.divf %8, %9 : vector<2x32xf32>
    %11 = arith.mulf %5, %10 : vector<2x32xf32>
    %c0_6 = arith.constant 0 : index
    %c0_7 = arith.constant 0 : index
    %12 = vector.load %arg9[%c0_6, %c0_7] : memref<32x32xf32, #tpu.memory_space<vmem>>, vector<32x32xf32>
    %cst_8 = arith.constant dense<0.000000e+00> : vector<2x32xf32>
    %13 = tpu.matmul %11, %12, %cst_8 {dimension_numbers = #tpu.dot_dimension_numbers<[1], [0], [0], [1], [0, 0, 1, 1], [], []>} : vector<2x32xf32>, vector<32x32xf32>, vector<2x32xf32> -> vector<2x32xf32>
    %c0_9 = arith.constant 0 : index
    %c0_10 = arith.constant 0 : index
    %14 = vector.load %arg10[%c0_9, %c0_10] : memref<1x32xf32, #tpu.memory_space<vmem>>, vector<1x32xf32>
    %15 = vector.broadcast %14 : vector<1x32xf32> to vector<2x32xf32>
    %16 = arith.addf %13, %15 : vector<2x32xf32>
    %17 = arith.negf %16 : vector<2x32xf32>
    %18 = math.exp %17 : vector<2x32xf32>
    %cst_11 = arith.constant 1.000000e+00 : f32
    %19 = vector.broadcast %cst_11 : f32 to vector<2x32xf32>
    %20 = arith.addf %19, %18 : vector<2x32xf32>
    %21 = arith.divf %19, %20 : vector<2x32xf32>
    %22 = arith.mulf %16, %21 : vector<2x32xf32>
    %c0_12 = arith.constant 0 : index
    %c0_13 = arith.constant 0 : index
    %23 = vector.load %arg1[%c0_12, %c0_13] : memref<16x32xf32, #tpu.memory_space<vmem>>, vector<16x32xf32>
    %c0_14 = arith.constant 0 : index
    %c0_15 = arith.constant 0 : index
    %24 = vector.load %arg3[%c0_14, %c0_15] : memref<16x32xf32, #tpu.memory_space<vmem>>, vector<16x32xf32>
    %c0_16 = arith.constant 0 : index
    %c0_17 = arith.constant 0 : index
    %25 = vector.load %arg4[%c0_16, %c0_17] : memref<16x32xf32, #tpu.memory_space<vmem>>, vector<16x32xf32>
    %c0_18 = arith.constant 0 : index
    %c0_19 = arith.constant 0 : index
    %26 = vector.load %arg19[%c0_18, %c0_19] : memref<32x192xf32, #tpu.memory_space<vmem>>, vector<32x192xf32>
    %cst_20 = arith.constant dense<0.000000e+00> : vector<2x192xf32>
    %27 = tpu.matmul %22, %26, %cst_20 {dimension_numbers = #tpu.dot_dimension_numbers<[1], [0], [0], [1], [0, 0, 1, 1], [], []>} : vector<2x32xf32>, vector<32x192xf32>, vector<2x192xf32> -> vector<2x192xf32>
    %c0_21 = arith.constant 0 : index
    %c0_22 = arith.constant 0 : index
    %28 = vector.load %arg20[%c0_21, %c0_22] : memref<1x192xf32, #tpu.memory_space<vmem>>, vector<1x192xf32>
    %29 = vector.broadcast %28 : vector<1x192xf32> to vector<2x192xf32>
    %30 = arith.addf %27, %29 : vector<2x192xf32>
    %31 = vector.extract_strided_slice %30 {offsets = [0, 0], sizes = [2, 32], strides = [1, 1]} : vector<2x192xf32> to vector<2x32xf32>
    %32 = vector.extract_strided_slice %30 {offsets = [0, 32], sizes = [2, 32], strides = [1, 1]} : vector<2x192xf32> to vector<2x32xf32>
    %33 = vector.extract_strided_slice %30 {offsets = [0, 64], sizes = [2, 32], strides = [1, 1]} : vector<2x192xf32> to vector<2x32xf32>
    %34 = vector.extract_strided_slice %30 {offsets = [0, 96], sizes = [2, 32], strides = [1, 1]} : vector<2x192xf32> to vector<2x32xf32>
    %35 = vector.extract_strided_slice %30 {offsets = [0, 128], sizes = [2, 32], strides = [1, 1]} : vector<2x192xf32> to vector<2x32xf32>
    %36 = vector.extract_strided_slice %30 {offsets = [0, 160], sizes = [2, 32], strides = [1, 1]} : vector<2x192xf32> to vector<2x32xf32>
    %37 = vector.extract_strided_slice %31 {offsets = [0, 0], sizes = [1, 32], strides = [1, 1]} : vector<2x32xf32> to vector<1x32xf32>
    %38 = vector.shape_cast %37 : vector<1x32xf32> to vector<1x32xf32>
    %39 = vector.broadcast %38 : vector<1x32xf32> to vector<8x32xf32>
    %40 = vector.extract_strided_slice %31 {offsets = [1, 0], sizes = [1, 32], strides = [1, 1]} : vector<2x32xf32> to vector<1x32xf32>
    %41 = vector.shape_cast %40 : vector<1x32xf32> to vector<1x32xf32>
    %42 = vector.broadcast %41 : vector<1x32xf32> to vector<8x32xf32>
    %43 = tpu.concatenate %39, %42 in 0 : vector<8x32xf32>, vector<8x32xf32> -> vector<16x32xf32>
    %44 = vector.extract_strided_slice %32 {offsets = [0, 0], sizes = [1, 32], strides = [1, 1]} : vector<2x32xf32> to vector<1x32xf32>
    %45 = vector.shape_cast %44 : vector<1x32xf32> to vector<1x32xf32>
    %46 = vector.broadcast %45 : vector<1x32xf32> to vector<8x32xf32>
    %47 = vector.extract_strided_slice %32 {offsets = [1, 0], sizes = [1, 32], strides = [1, 1]} : vector<2x32xf32> to vector<1x32xf32>
    %48 = vector.shape_cast %47 : vector<1x32xf32> to vector<1x32xf32>
    %49 = vector.broadcast %48 : vector<1x32xf32> to vector<8x32xf32>
    %50 = tpu.concatenate %46, %49 in 0 : vector<8x32xf32>, vector<8x32xf32> -> vector<16x32xf32>
    %51 = vector.extract_strided_slice %33 {offsets = [0, 0], sizes = [1, 32], strides = [1, 1]} : vector<2x32xf32> to vector<1x32xf32>
    %52 = vector.shape_cast %51 : vector<1x32xf32> to vector<1x32xf32>
    %53 = vector.broadcast %52 : vector<1x32xf32> to vector<8x32xf32>
    %54 = vector.extract_strided_slice %33 {offsets = [1, 0], sizes = [1, 32], strides = [1, 1]} : vector<2x32xf32> to vector<1x32xf32>
    %55 = vector.shape_cast %54 : vector<1x32xf32> to vector<1x32xf32>
    %56 = vector.broadcast %55 : vector<1x32xf32> to vector<8x32xf32>
    %57 = tpu.concatenate %53, %56 in 0 : vector<8x32xf32>, vector<8x32xf32> -> vector<16x32xf32>
    %58 = vector.extract_strided_slice %34 {offsets = [0, 0], sizes = [1, 32], strides = [1, 1]} : vector<2x32xf32> to vector<1x32xf32>
    %59 = vector.shape_cast %58 : vector<1x32xf32> to vector<1x32xf32>
    %60 = vector.broadcast %59 : vector<1x32xf32> to vector<8x32xf32>
    %61 = vector.extract_strided_slice %34 {offsets = [1, 0], sizes = [1, 32], strides = [1, 1]} : vector<2x32xf32> to vector<1x32xf32>
    %62 = vector.shape_cast %61 : vector<1x32xf32> to vector<1x32xf32>
    %63 = vector.broadcast %62 : vector<1x32xf32> to vector<8x32xf32>
    %64 = tpu.concatenate %60, %63 in 0 : vector<8x32xf32>, vector<8x32xf32> -> vector<16x32xf32>
    %65 = vector.extract_strided_slice %35 {offsets = [0, 0], sizes = [1, 32], strides = [1, 1]} : vector<2x32xf32> to vector<1x32xf32>
    %66 = vector.shape_cast %65 : vector<1x32xf32> to vector<1x32xf32>
    %67 = vector.broadcast %66 : vector<1x32xf32> to vector<8x32xf32>
    %68 = vector.extract_strided_slice %35 {offsets = [1, 0], sizes = [1, 32], strides = [1, 1]} : vector<2x32xf32> to vector<1x32xf32>
    %69 = vector.shape_cast %68 : vector<1x32xf32> to vector<1x32xf32>
    %70 = vector.broadcast %69 : vector<1x32xf32> to vector<8x32xf32>
    %71 = tpu.concatenate %67, %70 in 0 : vector<8x32xf32>, vector<8x32xf32> -> vector<16x32xf32>
    %72 = vector.extract_strided_slice %36 {offsets = [0, 0], sizes = [1, 32], strides = [1, 1]} : vector<2x32xf32> to vector<1x32xf32>
    %73 = vector.shape_cast %72 : vector<1x32xf32> to vector<1x32xf32>
    %74 = vector.broadcast %73 : vector<1x32xf32> to vector<8x32xf32>
    %75 = vector.extract_strided_slice %36 {offsets = [1, 0], sizes = [1, 32], strides = [1, 1]} : vector<2x32xf32> to vector<1x32xf32>
    %76 = vector.shape_cast %75 : vector<1x32xf32> to vector<1x32xf32>
    %77 = vector.broadcast %76 : vector<1x32xf32> to vector<8x32xf32>
    %78 = tpu.concatenate %74, %77 in 0 : vector<8x32xf32>, vector<8x32xf32> -> vector<16x32xf32>
    %c0_23 = arith.constant 0 : index
    %c0_24 = arith.constant 0 : index
    %79 = vector.load %arg11[%c0_23, %c0_24] : memref<1x32xf32, #tpu.memory_space<vmem>>, vector<1x32xf32>
    %cst_25 = arith.constant dense<0.000000e+00> : vector<16xf32>
    %80 = vector.multi_reduction <add>, %23, %cst_25 [1] : vector<16x32xf32> to vector<16xf32>
    %81 = vector.shape_cast %80 : vector<16xf32> to vector<16x1xf32>
    %cst_26 = arith.constant 3.200000e+01 : f32
    %82 = vector.broadcast %cst_26 : f32 to vector<16x1xf32>
    %83 = arith.divf %81, %82 : vector<16x1xf32>
    %84 = vector.broadcast %83 : vector<16x1xf32> to vector<16x32xf32>
    %85 = arith.subf %23, %84 : vector<16x32xf32>
    %86 = arith.mulf %85, %85 : vector<16x32xf32>
    %cst_27 = arith.constant dense<0.000000e+00> : vector<16xf32>
    %87 = vector.multi_reduction <add>, %86, %cst_27 [1] : vector<16x32xf32> to vector<16xf32>
    %88 = vector.shape_cast %87 : vector<16xf32> to vector<16x1xf32>
    %cst_28 = arith.constant 3.200000e+01 : f32
    %89 = vector.broadcast %cst_28 : f32 to vector<16x1xf32>
    %90 = arith.divf %88, %89 : vector<16x1xf32>
    %cst_29 = arith.constant 9.99999974E-6 : f32
    %91 = vector.broadcast %cst_29 : f32 to vector<16x1xf32>
    %92 = arith.addf %90, %91 : vector<16x1xf32>
    %93 = math.rsqrt %92 : vector<16x1xf32>
    %94 = vector.broadcast %93 : vector<16x1xf32> to vector<16x32xf32>
    %95 = arith.mulf %85, %94 : vector<16x32xf32>
    %96 = vector.broadcast %79 : vector<1x32xf32> to vector<16x32xf32>
    %97 = arith.mulf %95, %96 : vector<16x32xf32>
    %cst_30 = arith.constant 1.000000e+00 : f32
    %98 = vector.broadcast %cst_30 : f32 to vector<16x32xf32>
    %99 = arith.addf %98, %50 : vector<16x32xf32>
    %100 = arith.mulf %97, %99 : vector<16x32xf32>
    %101 = arith.addf %100, %43 : vector<16x32xf32>
    %c0_31 = arith.constant 0 : index
    %c0_32 = arith.constant 0 : index
    %102 = vector.load %arg13[%c0_31, %c0_32] : memref<32x96xf32, #tpu.memory_space<vmem>>, vector<32x96xf32>
    %cst_33 = arith.constant dense<0.000000e+00> : vector<16x96xf32>
    %103 = tpu.matmul %101, %102, %cst_33 {dimension_numbers = #tpu.dot_dimension_numbers<[1], [0], [0], [1], [0, 0, 1, 1], [], []>} : vector<16x32xf32>, vector<32x96xf32>, vector<16x96xf32> -> vector<16x96xf32>
    %104 = vector.extract_strided_slice %103 {offsets = [0, 0], sizes = [16, 32], strides = [1, 1]} : vector<16x96xf32> to vector<16x32xf32>
    %105 = vector.extract_strided_slice %103 {offsets = [0, 32], sizes = [16, 32], strides = [1, 1]} : vector<16x96xf32> to vector<16x32xf32>
    %106 = vector.extract_strided_slice %103 {offsets = [0, 64], sizes = [16, 32], strides = [1, 1]} : vector<16x96xf32> to vector<16x32xf32>
    %107 = arith.mulf %104, %24 : vector<16x32xf32>
    %108 = vector.extract_strided_slice %104 {offsets = [0, 0], sizes = [16, 8], strides = [1, 1]} : vector<16x32xf32> to vector<16x8xf32>
    %109 = vector.extract_strided_slice %104 {offsets = [0, 8], sizes = [16, 8], strides = [1, 1]} : vector<16x32xf32> to vector<16x8xf32>
    %cst_34 = arith.constant 0.000000e+00 : f32
    %110 = vector.broadcast %cst_34 : f32 to vector<16x8xf32>
    %111 = arith.subf %110, %109 : vector<16x8xf32>
    %112 = vector.extract_strided_slice %104 {offsets = [0, 16], sizes = [16, 8], strides = [1, 1]} : vector<16x32xf32> to vector<16x8xf32>
    %113 = vector.extract_strided_slice %104 {offsets = [0, 24], sizes = [16, 8], strides = [1, 1]} : vector<16x32xf32> to vector<16x8xf32>
    %cst_35 = arith.constant 0.000000e+00 : f32
    %114 = vector.broadcast %cst_35 : f32 to vector<16x8xf32>
    %115 = arith.subf %114, %113 : vector<16x8xf32>
    %116 = tpu.concatenate %111, %108, %115, %112 in 1 : vector<16x8xf32>, vector<16x8xf32>, vector<16x8xf32>, vector<16x8xf32> -> vector<16x32xf32>
    %117 = arith.mulf %116, %25 : vector<16x32xf32>
    %118 = arith.addf %107, %117 : vector<16x32xf32>
    %cst_36 = arith.constant 2.500000e-01 : f32
    %119 = vector.broadcast %cst_36 : f32 to vector<16x32xf32>
    %120 = arith.mulf %118, %119 : vector<16x32xf32>
    %121 = arith.mulf %105, %24 : vector<16x32xf32>
    %122 = vector.extract_strided_slice %105 {offsets = [0, 0], sizes = [16, 8], strides = [1, 1]} : vector<16x32xf32> to vector<16x8xf32>
    %123 = vector.extract_strided_slice %105 {offsets = [0, 8], sizes = [16, 8], strides = [1, 1]} : vector<16x32xf32> to vector<16x8xf32>
    %cst_37 = arith.constant 0.000000e+00 : f32
    %124 = vector.broadcast %cst_37 : f32 to vector<16x8xf32>
    %125 = arith.subf %124, %123 : vector<16x8xf32>
    %126 = vector.extract_strided_slice %105 {offsets = [0, 16], sizes = [16, 8], strides = [1, 1]} : vector<16x32xf32> to vector<16x8xf32>
    %127 = vector.extract_strided_slice %105 {offsets = [0, 24], sizes = [16, 8], strides = [1, 1]} : vector<16x32xf32> to vector<16x8xf32>
    %cst_38 = arith.constant 0.000000e+00 : f32
    %128 = vector.broadcast %cst_38 : f32 to vector<16x8xf32>
    %129 = arith.subf %128, %127 : vector<16x8xf32>
    %130 = tpu.concatenate %125, %122, %129, %126 in 1 : vector<16x8xf32>, vector<16x8xf32>, vector<16x8xf32>, vector<16x8xf32> -> vector<16x32xf32>
    %131 = arith.mulf %130, %25 : vector<16x32xf32>
    %132 = arith.addf %121, %131 : vector<16x32xf32>
    %133 = vector.extract_strided_slice %120 {offsets = [0, 0], sizes = [8, 16], strides = [1, 1]} : vector<16x32xf32> to vector<8x16xf32>
    %134 = vector.extract_strided_slice %132 {offsets = [0, 0], sizes = [8, 16], strides = [1, 1]} : vector<16x32xf32> to vector<8x16xf32>
    %135 = vector.extract_strided_slice %106 {offsets = [0, 0], sizes = [8, 16], strides = [1, 1]} : vector<16x32xf32> to vector<8x16xf32>
    %cst_39 = arith.constant dense<0.000000e+00> : vector<8x8xf32>
    %136 = tpu.matmul %133, %134, %cst_39 {dimension_numbers = #tpu.dot_dimension_numbers<[1], [1], [0], [0], [0, 0, 1, 0], [], []>} : vector<8x16xf32>, vector<8x16xf32>, vector<8x8xf32> -> vector<8x8xf32>
    %cst_40 = arith.constant dense<0xFF800000> : vector<8xf32>
    %137 = vector.multi_reduction <maximumf>, %136, %cst_40 [1] : vector<8x8xf32> to vector<8xf32>
    %138 = vector.shape_cast %137 : vector<8xf32> to vector<8x1xf32>
    %139 = vector.broadcast %138 : vector<8x1xf32> to vector<8x8xf32>
    %140 = arith.subf %136, %139 : vector<8x8xf32>
    %141 = math.exp %140 : vector<8x8xf32>
    %cst_41 = arith.constant dense<0.000000e+00> : vector<8xf32>
    %142 = vector.multi_reduction <add>, %141, %cst_41 [1] : vector<8x8xf32> to vector<8xf32>
    %143 = vector.shape_cast %142 : vector<8xf32> to vector<8x1xf32>
    %144 = tpu.reciprocal %143 {approx = true} : vector<8x1xf32> -> vector<8x1xf32>
    %cst_42 = arith.constant dense<0.000000e+00> : vector<8x16xf32>
    %145 = tpu.matmul %141, %135, %cst_42 {dimension_numbers = #tpu.dot_dimension_numbers<[1], [0], [0], [1], [0, 0, 1, 1], [], []>} : vector<8x8xf32>, vector<8x16xf32>, vector<8x16xf32> -> vector<8x16xf32>
    %146 = vector.broadcast %144 : vector<8x1xf32> to vector<8x16xf32>
    %147 = arith.mulf %145, %146 : vector<8x16xf32>
    %148 = vector.extract_strided_slice %120 {offsets = [0, 16], sizes = [8, 16], strides = [1, 1]} : vector<16x32xf32> to vector<8x16xf32>
    %149 = vector.extract_strided_slice %132 {offsets = [0, 16], sizes = [8, 16], strides = [1, 1]} : vector<16x32xf32> to vector<8x16xf32>
    %150 = vector.extract_strided_slice %106 {offsets = [0, 16], sizes = [8, 16], strides = [1, 1]} : vector<16x32xf32> to vector<8x16xf32>
    %cst_43 = arith.constant dense<0.000000e+00> : vector<8x8xf32>
    %151 = tpu.matmul %148, %149, %cst_43 {dimension_numbers = #tpu.dot_dimension_numbers<[1], [1], [0], [0], [0, 0, 1, 0], [], []>} : vector<8x16xf32>, vector<8x16xf32>, vector<8x8xf32> -> vector<8x8xf32>
    %cst_44 = arith.constant dense<0xFF800000> : vector<8xf32>
    %152 = vector.multi_reduction <maximumf>, %151, %cst_44 [1] : vector<8x8xf32> to vector<8xf32>
    %153 = vector.shape_cast %152 : vector<8xf32> to vector<8x1xf32>
    %154 = vector.broadcast %153 : vector<8x1xf32> to vector<8x8xf32>
    %155 = arith.subf %151, %154 : vector<8x8xf32>
    %156 = math.exp %155 : vector<8x8xf32>
    %cst_45 = arith.constant dense<0.000000e+00> : vector<8xf32>
    %157 = vector.multi_reduction <add>, %156, %cst_45 [1] : vector<8x8xf32> to vector<8xf32>
    %158 = vector.shape_cast %157 : vector<8xf32> to vector<8x1xf32>
    %159 = tpu.reciprocal %158 {approx = true} : vector<8x1xf32> -> vector<8x1xf32>
    %cst_46 = arith.constant dense<0.000000e+00> : vector<8x16xf32>
    %160 = tpu.matmul %156, %150, %cst_46 {dimension_numbers = #tpu.dot_dimension_numbers<[1], [0], [0], [1], [0, 0, 1, 1], [], []>} : vector<8x8xf32>, vector<8x16xf32>, vector<8x16xf32> -> vector<8x16xf32>
    %161 = vector.broadcast %159 : vector<8x1xf32> to vector<8x16xf32>
    %162 = arith.mulf %160, %161 : vector<8x16xf32>
    %163 = tpu.concatenate %147, %162 in 1 : vector<8x16xf32>, vector<8x16xf32> -> vector<8x32xf32>
    %164 = vector.extract_strided_slice %120 {offsets = [8, 0], sizes = [8, 16], strides = [1, 1]} : vector<16x32xf32> to vector<8x16xf32>
    %165 = vector.extract_strided_slice %132 {offsets = [8, 0], sizes = [8, 16], strides = [1, 1]} : vector<16x32xf32> to vector<8x16xf32>
    %166 = vector.extract_strided_slice %106 {offsets = [8, 0], sizes = [8, 16], strides = [1, 1]} : vector<16x32xf32> to vector<8x16xf32>
    %cst_47 = arith.constant dense<0.000000e+00> : vector<8x8xf32>
    %167 = tpu.matmul %164, %165, %cst_47 {dimension_numbers = #tpu.dot_dimension_numbers<[1], [1], [0], [0], [0, 0, 1, 0], [], []>} : vector<8x16xf32>, vector<8x16xf32>, vector<8x8xf32> -> vector<8x8xf32>
    %cst_48 = arith.constant dense<0xFF800000> : vector<8xf32>
    %168 = vector.multi_reduction <maximumf>, %167, %cst_48 [1] : vector<8x8xf32> to vector<8xf32>
    %169 = vector.shape_cast %168 : vector<8xf32> to vector<8x1xf32>
    %170 = vector.broadcast %169 : vector<8x1xf32> to vector<8x8xf32>
    %171 = arith.subf %167, %170 : vector<8x8xf32>
    %172 = math.exp %171 : vector<8x8xf32>
    %cst_49 = arith.constant dense<0.000000e+00> : vector<8xf32>
    %173 = vector.multi_reduction <add>, %172, %cst_49 [1] : vector<8x8xf32> to vector<8xf32>
    %174 = vector.shape_cast %173 : vector<8xf32> to vector<8x1xf32>
    %175 = tpu.reciprocal %174 {approx = true} : vector<8x1xf32> -> vector<8x1xf32>
    %cst_50 = arith.constant dense<0.000000e+00> : vector<8x16xf32>
    %176 = tpu.matmul %172, %166, %cst_50 {dimension_numbers = #tpu.dot_dimension_numbers<[1], [0], [0], [1], [0, 0, 1, 1], [], []>} : vector<8x8xf32>, vector<8x16xf32>, vector<8x16xf32> -> vector<8x16xf32>
    %177 = vector.broadcast %175 : vector<8x1xf32> to vector<8x16xf32>
    %178 = arith.mulf %176, %177 : vector<8x16xf32>
    %179 = vector.extract_strided_slice %120 {offsets = [8, 16], sizes = [8, 16], strides = [1, 1]} : vector<16x32xf32> to vector<8x16xf32>
    %180 = vector.extract_strided_slice %132 {offsets = [8, 16], sizes = [8, 16], strides = [1, 1]} : vector<16x32xf32> to vector<8x16xf32>
    %181 = vector.extract_strided_slice %106 {offsets = [8, 16], sizes = [8, 16], strides = [1, 1]} : vector<16x32xf32> to vector<8x16xf32>
    %cst_51 = arith.constant dense<0.000000e+00> : vector<8x8xf32>
    %182 = tpu.matmul %179, %180, %cst_51 {dimension_numbers = #tpu.dot_dimension_numbers<[1], [1], [0], [0], [0, 0, 1, 0], [], []>} : vector<8x16xf32>, vector<8x16xf32>, vector<8x8xf32> -> vector<8x8xf32>
    %cst_52 = arith.constant dense<0xFF800000> : vector<8xf32>
    %183 = vector.multi_reduction <maximumf>, %182, %cst_52 [1] : vector<8x8xf32> to vector<8xf32>
    %184 = vector.shape_cast %183 : vector<8xf32> to vector<8x1xf32>
    %185 = vector.broadcast %184 : vector<8x1xf32> to vector<8x8xf32>
    %186 = arith.subf %182, %185 : vector<8x8xf32>
    %187 = math.exp %186 : vector<8x8xf32>
    %cst_53 = arith.constant dense<0.000000e+00> : vector<8xf32>
    %188 = vector.multi_reduction <add>, %187, %cst_53 [1] : vector<8x8xf32> to vector<8xf32>
    %189 = vector.shape_cast %188 : vector<8xf32> to vector<8x1xf32>
    %190 = tpu.reciprocal %189 {approx = true} : vector<8x1xf32> -> vector<8x1xf32>
    %cst_54 = arith.constant dense<0.000000e+00> : vector<8x16xf32>
    %191 = tpu.matmul %187, %181, %cst_54 {dimension_numbers = #tpu.dot_dimension_numbers<[1], [0], [0], [1], [0, 0, 1, 1], [], []>} : vector<8x8xf32>, vector<8x16xf32>, vector<8x16xf32> -> vector<8x16xf32>
    %192 = vector.broadcast %190 : vector<8x1xf32> to vector<8x16xf32>
    %193 = arith.mulf %191, %192 : vector<8x16xf32>
    %194 = tpu.concatenate %178, %193 in 1 : vector<8x16xf32>, vector<8x16xf32> -> vector<8x32xf32>
    %195 = tpu.concatenate %163, %194 in 0 : vector<8x32xf32>, vector<8x32xf32> -> vector<16x32xf32>
    %c0_55 = arith.constant 0 : index
    %c0_56 = arith.constant 0 : index
    %196 = vector.load %arg14[%c0_55, %c0_56] : memref<32x32xf32, #tpu.memory_space<vmem>>, vector<32x32xf32>
    %cst_57 = arith.constant dense<0.000000e+00> : vector<16x32xf32>
    %197 = tpu.matmul %195, %196, %cst_57 {dimension_numbers = #tpu.dot_dimension_numbers<[1], [0], [0], [1], [0, 0, 1, 1], [], []>} : vector<16x32xf32>, vector<32x32xf32>, vector<16x32xf32> -> vector<16x32xf32>
    %198 = arith.mulf %57, %197 : vector<16x32xf32>
    %199 = arith.addf %23, %198 : vector<16x32xf32>
    %c0_58 = arith.constant 0 : index
    %c0_59 = arith.constant 0 : index
    %200 = vector.load %arg12[%c0_58, %c0_59] : memref<1x32xf32, #tpu.memory_space<vmem>>, vector<1x32xf32>
    %cst_60 = arith.constant dense<0.000000e+00> : vector<16xf32>
    %201 = vector.multi_reduction <add>, %199, %cst_60 [1] : vector<16x32xf32> to vector<16xf32>
    %202 = vector.shape_cast %201 : vector<16xf32> to vector<16x1xf32>
    %cst_61 = arith.constant 3.200000e+01 : f32
    %203 = vector.broadcast %cst_61 : f32 to vector<16x1xf32>
    %204 = arith.divf %202, %203 : vector<16x1xf32>
    %205 = vector.broadcast %204 : vector<16x1xf32> to vector<16x32xf32>
    %206 = arith.subf %199, %205 : vector<16x32xf32>
    %207 = arith.mulf %206, %206 : vector<16x32xf32>
    %cst_62 = arith.constant dense<0.000000e+00> : vector<16xf32>
    %208 = vector.multi_reduction <add>, %207, %cst_62 [1] : vector<16x32xf32> to vector<16xf32>
    %209 = vector.shape_cast %208 : vector<16xf32> to vector<16x1xf32>
    %cst_63 = arith.constant 3.200000e+01 : f32
    %210 = vector.broadcast %cst_63 : f32 to vector<16x1xf32>
    %211 = arith.divf %209, %210 : vector<16x1xf32>
    %cst_64 = arith.constant 9.99999974E-6 : f32
    %212 = vector.broadcast %cst_64 : f32 to vector<16x1xf32>
    %213 = arith.addf %211, %212 : vector<16x1xf32>
    %214 = math.rsqrt %213 : vector<16x1xf32>
    %215 = vector.broadcast %214 : vector<16x1xf32> to vector<16x32xf32>
    %216 = arith.mulf %206, %215 : vector<16x32xf32>
    %217 = vector.broadcast %200 : vector<1x32xf32> to vector<16x32xf32>
    %218 = arith.mulf %216, %217 : vector<16x32xf32>
    %cst_65 = arith.constant 1.000000e+00 : f32
    %219 = vector.broadcast %cst_65 : f32 to vector<16x32xf32>
    %220 = arith.addf %219, %71 : vector<16x32xf32>
    %221 = arith.mulf %218, %220 : vector<16x32xf32>
    %222 = arith.addf %221, %64 : vector<16x32xf32>
    %c0_66 = arith.constant 0 : index
    %c0_67 = arith.constant 0 : index
    %223 = vector.load %arg15[%c0_66, %c0_67] : memref<32x128xf32, #tpu.memory_space<vmem>>, vector<32x128xf32>
    %cst_68 = arith.constant dense<0.000000e+00> : vector<16x128xf32>
    %224 = tpu.matmul %222, %223, %cst_68 {dimension_numbers = #tpu.dot_dimension_numbers<[1], [0], [0], [1], [0, 0, 1, 1], [], []>} : vector<16x32xf32>, vector<32x128xf32>, vector<16x128xf32> -> vector<16x128xf32>
    %c0_69 = arith.constant 0 : index
    %c0_70 = arith.constant 0 : index
    %225 = vector.load %arg16[%c0_69, %c0_70] : memref<1x128xf32, #tpu.memory_space<vmem>>, vector<1x128xf32>
    %226 = vector.broadcast %225 : vector<1x128xf32> to vector<16x128xf32>
    %227 = arith.addf %224, %226 : vector<16x128xf32>
    %cst_71 = arith.constant 5.000000e-01 : f32
    %228 = vector.broadcast %cst_71 : f32 to vector<16x128xf32>
    %229 = arith.mulf %228, %227 : vector<16x128xf32>
    %cst_72 = arith.constant 4.471500e-02 : f32
    %230 = vector.broadcast %cst_72 : f32 to vector<16x128xf32>
    %231 = arith.mulf %230, %227 : vector<16x128xf32>
    %232 = arith.mulf %231, %227 : vector<16x128xf32>
    %233 = arith.mulf %232, %227 : vector<16x128xf32>
    %234 = arith.addf %227, %233 : vector<16x128xf32>
    %cst_73 = arith.constant 0.797884583 : f32
    %235 = vector.broadcast %cst_73 : f32 to vector<16x128xf32>
    %236 = arith.mulf %235, %234 : vector<16x128xf32>
    %237 = math.tanh %236 : vector<16x128xf32>
    %cst_74 = arith.constant 1.000000e+00 : f32
    %238 = vector.broadcast %cst_74 : f32 to vector<16x128xf32>
    %239 = arith.addf %238, %237 : vector<16x128xf32>
    %240 = arith.mulf %229, %239 : vector<16x128xf32>
    %c0_75 = arith.constant 0 : index
    %c0_76 = arith.constant 0 : index
    %241 = vector.load %arg17[%c0_75, %c0_76] : memref<128x32xf32, #tpu.memory_space<vmem>>, vector<128x32xf32>
    %cst_77 = arith.constant dense<0.000000e+00> : vector<16x32xf32>
    %242 = tpu.matmul %240, %241, %cst_77 {dimension_numbers = #tpu.dot_dimension_numbers<[1], [0], [0], [1], [0, 0, 1, 1], [], []>} : vector<16x128xf32>, vector<128x32xf32>, vector<16x32xf32> -> vector<16x32xf32>
    %c0_78 = arith.constant 0 : index
    %c0_79 = arith.constant 0 : index
    %243 = vector.load %arg18[%c0_78, %c0_79] : memref<1x32xf32, #tpu.memory_space<vmem>>, vector<1x32xf32>
    %244 = vector.broadcast %243 : vector<1x32xf32> to vector<16x32xf32>
    %245 = arith.addf %242, %244 : vector<16x32xf32>
    %246 = arith.mulf %78, %245 : vector<16x32xf32>
    %247 = arith.addf %199, %246 : vector<16x32xf32>
    %c0_80 = arith.constant 0 : index
    %c0_81 = arith.constant 0 : index
    %248 = vector.load %arg29[%c0_80, %c0_81] : memref<32x192xf32, #tpu.memory_space<vmem>>, vector<32x192xf32>
    %cst_82 = arith.constant dense<0.000000e+00> : vector<2x192xf32>
    %249 = tpu.matmul %22, %248, %cst_82 {dimension_numbers = #tpu.dot_dimension_numbers<[1], [0], [0], [1], [0, 0, 1, 1], [], []>} : vector<2x32xf32>, vector<32x192xf32>, vector<2x192xf32> -> vector<2x192xf32>
    %c0_83 = arith.constant 0 : index
    %c0_84 = arith.constant 0 : index
    %250 = vector.load %arg30[%c0_83, %c0_84] : memref<1x192xf32, #tpu.memory_space<vmem>>, vector<1x192xf32>
    %251 = vector.broadcast %250 : vector<1x192xf32> to vector<2x192xf32>
    %252 = arith.addf %249, %251 : vector<2x192xf32>
    %253 = vector.extract_strided_slice %252 {offsets = [0, 0], sizes = [2, 32], strides = [1, 1]} : vector<2x192xf32> to vector<2x32xf32>
    %254 = vector.extract_strided_slice %252 {offsets = [0, 32], sizes = [2, 32], strides = [1, 1]} : vector<2x192xf32> to vector<2x32xf32>
    %255 = vector.extract_strided_slice %252 {offsets = [0, 64], sizes = [2, 32], strides = [1, 1]} : vector<2x192xf32> to vector<2x32xf32>
    %256 = vector.extract_strided_slice %252 {offsets = [0, 96], sizes = [2, 32], strides = [1, 1]} : vector<2x192xf32> to vector<2x32xf32>
    %257 = vector.extract_strided_slice %252 {offsets = [0, 128], sizes = [2, 32], strides = [1, 1]} : vector<2x192xf32> to vector<2x32xf32>
    %258 = vector.extract_strided_slice %252 {offsets = [0, 160], sizes = [2, 32], strides = [1, 1]} : vector<2x192xf32> to vector<2x32xf32>
    %259 = vector.extract_strided_slice %253 {offsets = [0, 0], sizes = [1, 32], strides = [1, 1]} : vector<2x32xf32> to vector<1x32xf32>
    %260 = vector.shape_cast %259 : vector<1x32xf32> to vector<1x32xf32>
    %261 = vector.broadcast %260 : vector<1x32xf32> to vector<8x32xf32>
    %262 = vector.extract_strided_slice %253 {offsets = [1, 0], sizes = [1, 32], strides = [1, 1]} : vector<2x32xf32> to vector<1x32xf32>
    %263 = vector.shape_cast %262 : vector<1x32xf32> to vector<1x32xf32>
    %264 = vector.broadcast %263 : vector<1x32xf32> to vector<8x32xf32>
    %265 = tpu.concatenate %261, %264 in 0 : vector<8x32xf32>, vector<8x32xf32> -> vector<16x32xf32>
    %266 = vector.extract_strided_slice %254 {offsets = [0, 0], sizes = [1, 32], strides = [1, 1]} : vector<2x32xf32> to vector<1x32xf32>
    %267 = vector.shape_cast %266 : vector<1x32xf32> to vector<1x32xf32>
    %268 = vector.broadcast %267 : vector<1x32xf32> to vector<8x32xf32>
    %269 = vector.extract_strided_slice %254 {offsets = [1, 0], sizes = [1, 32], strides = [1, 1]} : vector<2x32xf32> to vector<1x32xf32>
    %270 = vector.shape_cast %269 : vector<1x32xf32> to vector<1x32xf32>
    %271 = vector.broadcast %270 : vector<1x32xf32> to vector<8x32xf32>
    %272 = tpu.concatenate %268, %271 in 0 : vector<8x32xf32>, vector<8x32xf32> -> vector<16x32xf32>
    %273 = vector.extract_strided_slice %255 {offsets = [0, 0], sizes = [1, 32], strides = [1, 1]} : vector<2x32xf32> to vector<1x32xf32>
    %274 = vector.shape_cast %273 : vector<1x32xf32> to vector<1x32xf32>
    %275 = vector.broadcast %274 : vector<1x32xf32> to vector<8x32xf32>
    %276 = vector.extract_strided_slice %255 {offsets = [1, 0], sizes = [1, 32], strides = [1, 1]} : vector<2x32xf32> to vector<1x32xf32>
    %277 = vector.shape_cast %276 : vector<1x32xf32> to vector<1x32xf32>
    %278 = vector.broadcast %277 : vector<1x32xf32> to vector<8x32xf32>
    %279 = tpu.concatenate %275, %278 in 0 : vector<8x32xf32>, vector<8x32xf32> -> vector<16x32xf32>
    %280 = vector.extract_strided_slice %256 {offsets = [0, 0], sizes = [1, 32], strides = [1, 1]} : vector<2x32xf32> to vector<1x32xf32>
    %281 = vector.shape_cast %280 : vector<1x32xf32> to vector<1x32xf32>
    %282 = vector.broadcast %281 : vector<1x32xf32> to vector<8x32xf32>
    %283 = vector.extract_strided_slice %256 {offsets = [1, 0], sizes = [1, 32], strides = [1, 1]} : vector<2x32xf32> to vector<1x32xf32>
    %284 = vector.shape_cast %283 : vector<1x32xf32> to vector<1x32xf32>
    %285 = vector.broadcast %284 : vector<1x32xf32> to vector<8x32xf32>
    %286 = tpu.concatenate %282, %285 in 0 : vector<8x32xf32>, vector<8x32xf32> -> vector<16x32xf32>
    %287 = vector.extract_strided_slice %257 {offsets = [0, 0], sizes = [1, 32], strides = [1, 1]} : vector<2x32xf32> to vector<1x32xf32>
    %288 = vector.shape_cast %287 : vector<1x32xf32> to vector<1x32xf32>
    %289 = vector.broadcast %288 : vector<1x32xf32> to vector<8x32xf32>
    %290 = vector.extract_strided_slice %257 {offsets = [1, 0], sizes = [1, 32], strides = [1, 1]} : vector<2x32xf32> to vector<1x32xf32>
    %291 = vector.shape_cast %290 : vector<1x32xf32> to vector<1x32xf32>
    %292 = vector.broadcast %291 : vector<1x32xf32> to vector<8x32xf32>
    %293 = tpu.concatenate %289, %292 in 0 : vector<8x32xf32>, vector<8x32xf32> -> vector<16x32xf32>
    %294 = vector.extract_strided_slice %258 {offsets = [0, 0], sizes = [1, 32], strides = [1, 1]} : vector<2x32xf32> to vector<1x32xf32>
    %295 = vector.shape_cast %294 : vector<1x32xf32> to vector<1x32xf32>
    %296 = vector.broadcast %295 : vector<1x32xf32> to vector<8x32xf32>
    %297 = vector.extract_strided_slice %258 {offsets = [1, 0], sizes = [1, 32], strides = [1, 1]} : vector<2x32xf32> to vector<1x32xf32>
    %298 = vector.shape_cast %297 : vector<1x32xf32> to vector<1x32xf32>
    %299 = vector.broadcast %298 : vector<1x32xf32> to vector<8x32xf32>
    %300 = tpu.concatenate %296, %299 in 0 : vector<8x32xf32>, vector<8x32xf32> -> vector<16x32xf32>
    %c0_85 = arith.constant 0 : index
    %c0_86 = arith.constant 0 : index
    %301 = vector.load %arg21[%c0_85, %c0_86] : memref<1x32xf32, #tpu.memory_space<vmem>>, vector<1x32xf32>
    %cst_87 = arith.constant dense<0.000000e+00> : vector<16xf32>
    %302 = vector.multi_reduction <add>, %247, %cst_87 [1] : vector<16x32xf32> to vector<16xf32>
    %303 = vector.shape_cast %302 : vector<16xf32> to vector<16x1xf32>
    %cst_88 = arith.constant 3.200000e+01 : f32
    %304 = vector.broadcast %cst_88 : f32 to vector<16x1xf32>
    %305 = arith.divf %303, %304 : vector<16x1xf32>
    %306 = vector.broadcast %305 : vector<16x1xf32> to vector<16x32xf32>
    %307 = arith.subf %247, %306 : vector<16x32xf32>
    %308 = arith.mulf %307, %307 : vector<16x32xf32>
    %cst_89 = arith.constant dense<0.000000e+00> : vector<16xf32>
    %309 = vector.multi_reduction <add>, %308, %cst_89 [1] : vector<16x32xf32> to vector<16xf32>
    %310 = vector.shape_cast %309 : vector<16xf32> to vector<16x1xf32>
    %cst_90 = arith.constant 3.200000e+01 : f32
    %311 = vector.broadcast %cst_90 : f32 to vector<16x1xf32>
    %312 = arith.divf %310, %311 : vector<16x1xf32>
    %cst_91 = arith.constant 9.99999974E-6 : f32
    %313 = vector.broadcast %cst_91 : f32 to vector<16x1xf32>
    %314 = arith.addf %312, %313 : vector<16x1xf32>
    %315 = math.rsqrt %314 : vector<16x1xf32>
    %316 = vector.broadcast %315 : vector<16x1xf32> to vector<16x32xf32>
    %317 = arith.mulf %307, %316 : vector<16x32xf32>
    %318 = vector.broadcast %301 : vector<1x32xf32> to vector<16x32xf32>
    %319 = arith.mulf %317, %318 : vector<16x32xf32>
    %cst_92 = arith.constant 1.000000e+00 : f32
    %320 = vector.broadcast %cst_92 : f32 to vector<16x32xf32>
    %321 = arith.addf %320, %272 : vector<16x32xf32>
    %322 = arith.mulf %319, %321 : vector<16x32xf32>
    %323 = arith.addf %322, %265 : vector<16x32xf32>
    %c0_93 = arith.constant 0 : index
    %c0_94 = arith.constant 0 : index
    %324 = vector.load %arg23[%c0_93, %c0_94] : memref<32x96xf32, #tpu.memory_space<vmem>>, vector<32x96xf32>
    %cst_95 = arith.constant dense<0.000000e+00> : vector<16x96xf32>
    %325 = tpu.matmul %323, %324, %cst_95 {dimension_numbers = #tpu.dot_dimension_numbers<[1], [0], [0], [1], [0, 0, 1, 1], [], []>} : vector<16x32xf32>, vector<32x96xf32>, vector<16x96xf32> -> vector<16x96xf32>
    %326 = vector.extract_strided_slice %325 {offsets = [0, 0], sizes = [16, 32], strides = [1, 1]} : vector<16x96xf32> to vector<16x32xf32>
    %327 = vector.extract_strided_slice %325 {offsets = [0, 32], sizes = [16, 32], strides = [1, 1]} : vector<16x96xf32> to vector<16x32xf32>
    %328 = vector.extract_strided_slice %325 {offsets = [0, 64], sizes = [16, 32], strides = [1, 1]} : vector<16x96xf32> to vector<16x32xf32>
    %329 = arith.mulf %326, %24 : vector<16x32xf32>
    %330 = vector.extract_strided_slice %326 {offsets = [0, 0], sizes = [16, 8], strides = [1, 1]} : vector<16x32xf32> to vector<16x8xf32>
    %331 = vector.extract_strided_slice %326 {offsets = [0, 8], sizes = [16, 8], strides = [1, 1]} : vector<16x32xf32> to vector<16x8xf32>
    %cst_96 = arith.constant 0.000000e+00 : f32
    %332 = vector.broadcast %cst_96 : f32 to vector<16x8xf32>
    %333 = arith.subf %332, %331 : vector<16x8xf32>
    %334 = vector.extract_strided_slice %326 {offsets = [0, 16], sizes = [16, 8], strides = [1, 1]} : vector<16x32xf32> to vector<16x8xf32>
    %335 = vector.extract_strided_slice %326 {offsets = [0, 24], sizes = [16, 8], strides = [1, 1]} : vector<16x32xf32> to vector<16x8xf32>
    %cst_97 = arith.constant 0.000000e+00 : f32
    %336 = vector.broadcast %cst_97 : f32 to vector<16x8xf32>
    %337 = arith.subf %336, %335 : vector<16x8xf32>
    %338 = tpu.concatenate %333, %330, %337, %334 in 1 : vector<16x8xf32>, vector<16x8xf32>, vector<16x8xf32>, vector<16x8xf32> -> vector<16x32xf32>
    %339 = arith.mulf %338, %25 : vector<16x32xf32>
    %340 = arith.addf %329, %339 : vector<16x32xf32>
    %cst_98 = arith.constant 2.500000e-01 : f32
    %341 = vector.broadcast %cst_98 : f32 to vector<16x32xf32>
    %342 = arith.mulf %340, %341 : vector<16x32xf32>
    %343 = arith.mulf %327, %24 : vector<16x32xf32>
    %344 = vector.extract_strided_slice %327 {offsets = [0, 0], sizes = [16, 8], strides = [1, 1]} : vector<16x32xf32> to vector<16x8xf32>
    %345 = vector.extract_strided_slice %327 {offsets = [0, 8], sizes = [16, 8], strides = [1, 1]} : vector<16x32xf32> to vector<16x8xf32>
    %cst_99 = arith.constant 0.000000e+00 : f32
    %346 = vector.broadcast %cst_99 : f32 to vector<16x8xf32>
    %347 = arith.subf %346, %345 : vector<16x8xf32>
    %348 = vector.extract_strided_slice %327 {offsets = [0, 16], sizes = [16, 8], strides = [1, 1]} : vector<16x32xf32> to vector<16x8xf32>
    %349 = vector.extract_strided_slice %327 {offsets = [0, 24], sizes = [16, 8], strides = [1, 1]} : vector<16x32xf32> to vector<16x8xf32>
    %cst_100 = arith.constant 0.000000e+00 : f32
    %350 = vector.broadcast %cst_100 : f32 to vector<16x8xf32>
    %351 = arith.subf %350, %349 : vector<16x8xf32>
    %352 = tpu.concatenate %347, %344, %351, %348 in 1 : vector<16x8xf32>, vector<16x8xf32>, vector<16x8xf32>, vector<16x8xf32> -> vector<16x32xf32>
    %353 = arith.mulf %352, %25 : vector<16x32xf32>
    %354 = arith.addf %343, %353 : vector<16x32xf32>
    %355 = vector.extract_strided_slice %342 {offsets = [0, 0], sizes = [8, 16], strides = [1, 1]} : vector<16x32xf32> to vector<8x16xf32>
    %356 = vector.extract_strided_slice %354 {offsets = [0, 0], sizes = [8, 16], strides = [1, 1]} : vector<16x32xf32> to vector<8x16xf32>
    %357 = vector.extract_strided_slice %328 {offsets = [0, 0], sizes = [8, 16], strides = [1, 1]} : vector<16x32xf32> to vector<8x16xf32>
    %cst_101 = arith.constant dense<0.000000e+00> : vector<8x8xf32>
    %358 = tpu.matmul %355, %356, %cst_101 {dimension_numbers = #tpu.dot_dimension_numbers<[1], [1], [0], [0], [0, 0, 1, 0], [], []>} : vector<8x16xf32>, vector<8x16xf32>, vector<8x8xf32> -> vector<8x8xf32>
    %cst_102 = arith.constant dense<0xFF800000> : vector<8xf32>
    %359 = vector.multi_reduction <maximumf>, %358, %cst_102 [1] : vector<8x8xf32> to vector<8xf32>
    %360 = vector.shape_cast %359 : vector<8xf32> to vector<8x1xf32>
    %361 = vector.broadcast %360 : vector<8x1xf32> to vector<8x8xf32>
    %362 = arith.subf %358, %361 : vector<8x8xf32>
    %363 = math.exp %362 : vector<8x8xf32>
    %cst_103 = arith.constant dense<0.000000e+00> : vector<8xf32>
    %364 = vector.multi_reduction <add>, %363, %cst_103 [1] : vector<8x8xf32> to vector<8xf32>
    %365 = vector.shape_cast %364 : vector<8xf32> to vector<8x1xf32>
    %366 = tpu.reciprocal %365 {approx = true} : vector<8x1xf32> -> vector<8x1xf32>
    %cst_104 = arith.constant dense<0.000000e+00> : vector<8x16xf32>
    %367 = tpu.matmul %363, %357, %cst_104 {dimension_numbers = #tpu.dot_dimension_numbers<[1], [0], [0], [1], [0, 0, 1, 1], [], []>} : vector<8x8xf32>, vector<8x16xf32>, vector<8x16xf32> -> vector<8x16xf32>
    %368 = vector.broadcast %366 : vector<8x1xf32> to vector<8x16xf32>
    %369 = arith.mulf %367, %368 : vector<8x16xf32>
    %370 = vector.extract_strided_slice %342 {offsets = [0, 16], sizes = [8, 16], strides = [1, 1]} : vector<16x32xf32> to vector<8x16xf32>
    %371 = vector.extract_strided_slice %354 {offsets = [0, 16], sizes = [8, 16], strides = [1, 1]} : vector<16x32xf32> to vector<8x16xf32>
    %372 = vector.extract_strided_slice %328 {offsets = [0, 16], sizes = [8, 16], strides = [1, 1]} : vector<16x32xf32> to vector<8x16xf32>
    %cst_105 = arith.constant dense<0.000000e+00> : vector<8x8xf32>
    %373 = tpu.matmul %370, %371, %cst_105 {dimension_numbers = #tpu.dot_dimension_numbers<[1], [1], [0], [0], [0, 0, 1, 0], [], []>} : vector<8x16xf32>, vector<8x16xf32>, vector<8x8xf32> -> vector<8x8xf32>
    %cst_106 = arith.constant dense<0xFF800000> : vector<8xf32>
    %374 = vector.multi_reduction <maximumf>, %373, %cst_106 [1] : vector<8x8xf32> to vector<8xf32>
    %375 = vector.shape_cast %374 : vector<8xf32> to vector<8x1xf32>
    %376 = vector.broadcast %375 : vector<8x1xf32> to vector<8x8xf32>
    %377 = arith.subf %373, %376 : vector<8x8xf32>
    %378 = math.exp %377 : vector<8x8xf32>
    %cst_107 = arith.constant dense<0.000000e+00> : vector<8xf32>
    %379 = vector.multi_reduction <add>, %378, %cst_107 [1] : vector<8x8xf32> to vector<8xf32>
    %380 = vector.shape_cast %379 : vector<8xf32> to vector<8x1xf32>
    %381 = tpu.reciprocal %380 {approx = true} : vector<8x1xf32> -> vector<8x1xf32>
    %cst_108 = arith.constant dense<0.000000e+00> : vector<8x16xf32>
    %382 = tpu.matmul %378, %372, %cst_108 {dimension_numbers = #tpu.dot_dimension_numbers<[1], [0], [0], [1], [0, 0, 1, 1], [], []>} : vector<8x8xf32>, vector<8x16xf32>, vector<8x16xf32> -> vector<8x16xf32>
    %383 = vector.broadcast %381 : vector<8x1xf32> to vector<8x16xf32>
    %384 = arith.mulf %382, %383 : vector<8x16xf32>
    %385 = tpu.concatenate %369, %384 in 1 : vector<8x16xf32>, vector<8x16xf32> -> vector<8x32xf32>
    %386 = vector.extract_strided_slice %342 {offsets = [8, 0], sizes = [8, 16], strides = [1, 1]} : vector<16x32xf32> to vector<8x16xf32>
    %387 = vector.extract_strided_slice %354 {offsets = [8, 0], sizes = [8, 16], strides = [1, 1]} : vector<16x32xf32> to vector<8x16xf32>
    %388 = vector.extract_strided_slice %328 {offsets = [8, 0], sizes = [8, 16], strides = [1, 1]} : vector<16x32xf32> to vector<8x16xf32>
    %cst_109 = arith.constant dense<0.000000e+00> : vector<8x8xf32>
    %389 = tpu.matmul %386, %387, %cst_109 {dimension_numbers = #tpu.dot_dimension_numbers<[1], [1], [0], [0], [0, 0, 1, 0], [], []>} : vector<8x16xf32>, vector<8x16xf32>, vector<8x8xf32> -> vector<8x8xf32>
    %cst_110 = arith.constant dense<0xFF800000> : vector<8xf32>
    %390 = vector.multi_reduction <maximumf>, %389, %cst_110 [1] : vector<8x8xf32> to vector<8xf32>
    %391 = vector.shape_cast %390 : vector<8xf32> to vector<8x1xf32>
    %392 = vector.broadcast %391 : vector<8x1xf32> to vector<8x8xf32>
    %393 = arith.subf %389, %392 : vector<8x8xf32>
    %394 = math.exp %393 : vector<8x8xf32>
    %cst_111 = arith.constant dense<0.000000e+00> : vector<8xf32>
    %395 = vector.multi_reduction <add>, %394, %cst_111 [1] : vector<8x8xf32> to vector<8xf32>
    %396 = vector.shape_cast %395 : vector<8xf32> to vector<8x1xf32>
    %397 = tpu.reciprocal %396 {approx = true} : vector<8x1xf32> -> vector<8x1xf32>
    %cst_112 = arith.constant dense<0.000000e+00> : vector<8x16xf32>
    %398 = tpu.matmul %394, %388, %cst_112 {dimension_numbers = #tpu.dot_dimension_numbers<[1], [0], [0], [1], [0, 0, 1, 1], [], []>} : vector<8x8xf32>, vector<8x16xf32>, vector<8x16xf32> -> vector<8x16xf32>
    %399 = vector.broadcast %397 : vector<8x1xf32> to vector<8x16xf32>
    %400 = arith.mulf %398, %399 : vector<8x16xf32>
    %401 = vector.extract_strided_slice %342 {offsets = [8, 16], sizes = [8, 16], strides = [1, 1]} : vector<16x32xf32> to vector<8x16xf32>
    %402 = vector.extract_strided_slice %354 {offsets = [8, 16], sizes = [8, 16], strides = [1, 1]} : vector<16x32xf32> to vector<8x16xf32>
    %403 = vector.extract_strided_slice %328 {offsets = [8, 16], sizes = [8, 16], strides = [1, 1]} : vector<16x32xf32> to vector<8x16xf32>
    %cst_113 = arith.constant dense<0.000000e+00> : vector<8x8xf32>
    %404 = tpu.matmul %401, %402, %cst_113 {dimension_numbers = #tpu.dot_dimension_numbers<[1], [1], [0], [0], [0, 0, 1, 0], [], []>} : vector<8x16xf32>, vector<8x16xf32>, vector<8x8xf32> -> vector<8x8xf32>
    %cst_114 = arith.constant dense<0xFF800000> : vector<8xf32>
    %405 = vector.multi_reduction <maximumf>, %404, %cst_114 [1] : vector<8x8xf32> to vector<8xf32>
    %406 = vector.shape_cast %405 : vector<8xf32> to vector<8x1xf32>
    %407 = vector.broadcast %406 : vector<8x1xf32> to vector<8x8xf32>
    %408 = arith.subf %404, %407 : vector<8x8xf32>
    %409 = math.exp %408 : vector<8x8xf32>
    %cst_115 = arith.constant dense<0.000000e+00> : vector<8xf32>
    %410 = vector.multi_reduction <add>, %409, %cst_115 [1] : vector<8x8xf32> to vector<8xf32>
    %411 = vector.shape_cast %410 : vector<8xf32> to vector<8x1xf32>
    %412 = tpu.reciprocal %411 {approx = true} : vector<8x1xf32> -> vector<8x1xf32>
    %cst_116 = arith.constant dense<0.000000e+00> : vector<8x16xf32>
    %413 = tpu.matmul %409, %403, %cst_116 {dimension_numbers = #tpu.dot_dimension_numbers<[1], [0], [0], [1], [0, 0, 1, 1], [], []>} : vector<8x8xf32>, vector<8x16xf32>, vector<8x16xf32> -> vector<8x16xf32>
    %414 = vector.broadcast %412 : vector<8x1xf32> to vector<8x16xf32>
    %415 = arith.mulf %413, %414 : vector<8x16xf32>
    %416 = tpu.concatenate %400, %415 in 1 : vector<8x16xf32>, vector<8x16xf32> -> vector<8x32xf32>
    %417 = tpu.concatenate %385, %416 in 0 : vector<8x32xf32>, vector<8x32xf32> -> vector<16x32xf32>
    %c0_117 = arith.constant 0 : index
    %c0_118 = arith.constant 0 : index
    %418 = vector.load %arg24[%c0_117, %c0_118] : memref<32x32xf32, #tpu.memory_space<vmem>>, vector<32x32xf32>
    %cst_119 = arith.constant dense<0.000000e+00> : vector<16x32xf32>
    %419 = tpu.matmul %417, %418, %cst_119 {dimension_numbers = #tpu.dot_dimension_numbers<[1], [0], [0], [1], [0, 0, 1, 1], [], []>} : vector<16x32xf32>, vector<32x32xf32>, vector<16x32xf32> -> vector<16x32xf32>
    %420 = arith.mulf %279, %419 : vector<16x32xf32>
    %421 = arith.addf %247, %420 : vector<16x32xf32>
    %c0_120 = arith.constant 0 : index
    %c0_121 = arith.constant 0 : index
    %422 = vector.load %arg22[%c0_120, %c0_121] : memref<1x32xf32, #tpu.memory_space<vmem>>, vector<1x32xf32>
    %cst_122 = arith.constant dense<0.000000e+00> : vector<16xf32>
    %423 = vector.multi_reduction <add>, %421, %cst_122 [1] : vector<16x32xf32> to vector<16xf32>
    %424 = vector.shape_cast %423 : vector<16xf32> to vector<16x1xf32>
    %cst_123 = arith.constant 3.200000e+01 : f32
    %425 = vector.broadcast %cst_123 : f32 to vector<16x1xf32>
    %426 = arith.divf %424, %425 : vector<16x1xf32>
    %427 = vector.broadcast %426 : vector<16x1xf32> to vector<16x32xf32>
    %428 = arith.subf %421, %427 : vector<16x32xf32>
    %429 = arith.mulf %428, %428 : vector<16x32xf32>
    %cst_124 = arith.constant dense<0.000000e+00> : vector<16xf32>
    %430 = vector.multi_reduction <add>, %429, %cst_124 [1] : vector<16x32xf32> to vector<16xf32>
    %431 = vector.shape_cast %430 : vector<16xf32> to vector<16x1xf32>
    %cst_125 = arith.constant 3.200000e+01 : f32
    %432 = vector.broadcast %cst_125 : f32 to vector<16x1xf32>
    %433 = arith.divf %431, %432 : vector<16x1xf32>
    %cst_126 = arith.constant 9.99999974E-6 : f32
    %434 = vector.broadcast %cst_126 : f32 to vector<16x1xf32>
    %435 = arith.addf %433, %434 : vector<16x1xf32>
    %436 = math.rsqrt %435 : vector<16x1xf32>
    %437 = vector.broadcast %436 : vector<16x1xf32> to vector<16x32xf32>
    %438 = arith.mulf %428, %437 : vector<16x32xf32>
    %439 = vector.broadcast %422 : vector<1x32xf32> to vector<16x32xf32>
    %440 = arith.mulf %438, %439 : vector<16x32xf32>
    %cst_127 = arith.constant 1.000000e+00 : f32
    %441 = vector.broadcast %cst_127 : f32 to vector<16x32xf32>
    %442 = arith.addf %441, %293 : vector<16x32xf32>
    %443 = arith.mulf %440, %442 : vector<16x32xf32>
    %444 = arith.addf %443, %286 : vector<16x32xf32>
    %c0_128 = arith.constant 0 : index
    %c0_129 = arith.constant 0 : index
    %445 = vector.load %arg25[%c0_128, %c0_129] : memref<32x128xf32, #tpu.memory_space<vmem>>, vector<32x128xf32>
    %cst_130 = arith.constant dense<0.000000e+00> : vector<16x128xf32>
    %446 = tpu.matmul %444, %445, %cst_130 {dimension_numbers = #tpu.dot_dimension_numbers<[1], [0], [0], [1], [0, 0, 1, 1], [], []>} : vector<16x32xf32>, vector<32x128xf32>, vector<16x128xf32> -> vector<16x128xf32>
    %c0_131 = arith.constant 0 : index
    %c0_132 = arith.constant 0 : index
    %447 = vector.load %arg26[%c0_131, %c0_132] : memref<1x128xf32, #tpu.memory_space<vmem>>, vector<1x128xf32>
    %448 = vector.broadcast %447 : vector<1x128xf32> to vector<16x128xf32>
    %449 = arith.addf %446, %448 : vector<16x128xf32>
    %cst_133 = arith.constant 5.000000e-01 : f32
    %450 = vector.broadcast %cst_133 : f32 to vector<16x128xf32>
    %451 = arith.mulf %450, %449 : vector<16x128xf32>
    %cst_134 = arith.constant 4.471500e-02 : f32
    %452 = vector.broadcast %cst_134 : f32 to vector<16x128xf32>
    %453 = arith.mulf %452, %449 : vector<16x128xf32>
    %454 = arith.mulf %453, %449 : vector<16x128xf32>
    %455 = arith.mulf %454, %449 : vector<16x128xf32>
    %456 = arith.addf %449, %455 : vector<16x128xf32>
    %cst_135 = arith.constant 0.797884583 : f32
    %457 = vector.broadcast %cst_135 : f32 to vector<16x128xf32>
    %458 = arith.mulf %457, %456 : vector<16x128xf32>
    %459 = math.tanh %458 : vector<16x128xf32>
    %cst_136 = arith.constant 1.000000e+00 : f32
    %460 = vector.broadcast %cst_136 : f32 to vector<16x128xf32>
    %461 = arith.addf %460, %459 : vector<16x128xf32>
    %462 = arith.mulf %451, %461 : vector<16x128xf32>
    %c0_137 = arith.constant 0 : index
    %c0_138 = arith.constant 0 : index
    %463 = vector.load %arg27[%c0_137, %c0_138] : memref<128x32xf32, #tpu.memory_space<vmem>>, vector<128x32xf32>
    %cst_139 = arith.constant dense<0.000000e+00> : vector<16x32xf32>
    %464 = tpu.matmul %462, %463, %cst_139 {dimension_numbers = #tpu.dot_dimension_numbers<[1], [0], [0], [1], [0, 0, 1, 1], [], []>} : vector<16x128xf32>, vector<128x32xf32>, vector<16x32xf32> -> vector<16x32xf32>
    %c0_140 = arith.constant 0 : index
    %c0_141 = arith.constant 0 : index
    %465 = vector.load %arg28[%c0_140, %c0_141] : memref<1x32xf32, #tpu.memory_space<vmem>>, vector<1x32xf32>
    %466 = vector.broadcast %465 : vector<1x32xf32> to vector<16x32xf32>
    %467 = arith.addf %464, %466 : vector<16x32xf32>
    %468 = arith.mulf %300, %467 : vector<16x32xf32>
    %469 = arith.addf %421, %468 : vector<16x32xf32>
    %c0_142 = arith.constant 0 : index
    %c0_143 = arith.constant 0 : index
    %470 = vector.load %arg32[%c0_142, %c0_143] : memref<32x64xf32, #tpu.memory_space<vmem>>, vector<32x64xf32>
    %cst_144 = arith.constant dense<0.000000e+00> : vector<2x64xf32>
    %471 = tpu.matmul %22, %470, %cst_144 {dimension_numbers = #tpu.dot_dimension_numbers<[1], [0], [0], [1], [0, 0, 1, 1], [], []>} : vector<2x32xf32>, vector<32x64xf32>, vector<2x64xf32> -> vector<2x64xf32>
    %c0_145 = arith.constant 0 : index
    %c0_146 = arith.constant 0 : index
    %472 = vector.load %arg33[%c0_145, %c0_146] : memref<1x64xf32, #tpu.memory_space<vmem>>, vector<1x64xf32>
    %473 = vector.broadcast %472 : vector<1x64xf32> to vector<2x64xf32>
    %474 = arith.addf %471, %473 : vector<2x64xf32>
    %475 = vector.extract_strided_slice %474 {offsets = [0, 0], sizes = [2, 32], strides = [1, 1]} : vector<2x64xf32> to vector<2x32xf32>
    %476 = vector.extract_strided_slice %474 {offsets = [0, 32], sizes = [2, 32], strides = [1, 1]} : vector<2x64xf32> to vector<2x32xf32>
    %477 = vector.extract_strided_slice %475 {offsets = [0, 0], sizes = [1, 32], strides = [1, 1]} : vector<2x32xf32> to vector<1x32xf32>
    %478 = vector.shape_cast %477 : vector<1x32xf32> to vector<1x32xf32>
    %479 = vector.broadcast %478 : vector<1x32xf32> to vector<8x32xf32>
    %480 = vector.extract_strided_slice %475 {offsets = [1, 0], sizes = [1, 32], strides = [1, 1]} : vector<2x32xf32> to vector<1x32xf32>
    %481 = vector.shape_cast %480 : vector<1x32xf32> to vector<1x32xf32>
    %482 = vector.broadcast %481 : vector<1x32xf32> to vector<8x32xf32>
    %483 = tpu.concatenate %479, %482 in 0 : vector<8x32xf32>, vector<8x32xf32> -> vector<16x32xf32>
    %484 = vector.extract_strided_slice %476 {offsets = [0, 0], sizes = [1, 32], strides = [1, 1]} : vector<2x32xf32> to vector<1x32xf32>
    %485 = vector.shape_cast %484 : vector<1x32xf32> to vector<1x32xf32>
    %486 = vector.broadcast %485 : vector<1x32xf32> to vector<8x32xf32>
    %487 = vector.extract_strided_slice %476 {offsets = [1, 0], sizes = [1, 32], strides = [1, 1]} : vector<2x32xf32> to vector<1x32xf32>
    %488 = vector.shape_cast %487 : vector<1x32xf32> to vector<1x32xf32>
    %489 = vector.broadcast %488 : vector<1x32xf32> to vector<8x32xf32>
    %490 = tpu.concatenate %486, %489 in 0 : vector<8x32xf32>, vector<8x32xf32> -> vector<16x32xf32>
    %c0_147 = arith.constant 0 : index
    %c0_148 = arith.constant 0 : index
    %491 = vector.load %arg31[%c0_147, %c0_148] : memref<1x32xf32, #tpu.memory_space<vmem>>, vector<1x32xf32>
    %cst_149 = arith.constant dense<0.000000e+00> : vector<16xf32>
    %492 = vector.multi_reduction <add>, %469, %cst_149 [1] : vector<16x32xf32> to vector<16xf32>
    %493 = vector.shape_cast %492 : vector<16xf32> to vector<16x1xf32>
    %cst_150 = arith.constant 3.200000e+01 : f32
    %494 = vector.broadcast %cst_150 : f32 to vector<16x1xf32>
    %495 = arith.divf %493, %494 : vector<16x1xf32>
    %496 = vector.broadcast %495 : vector<16x1xf32> to vector<16x32xf32>
    %497 = arith.subf %469, %496 : vector<16x32xf32>
    %498 = arith.mulf %497, %497 : vector<16x32xf32>
    %cst_151 = arith.constant dense<0.000000e+00> : vector<16xf32>
    %499 = vector.multi_reduction <add>, %498, %cst_151 [1] : vector<16x32xf32> to vector<16xf32>
    %500 = vector.shape_cast %499 : vector<16xf32> to vector<16x1xf32>
    %cst_152 = arith.constant 3.200000e+01 : f32
    %501 = vector.broadcast %cst_152 : f32 to vector<16x1xf32>
    %502 = arith.divf %500, %501 : vector<16x1xf32>
    %cst_153 = arith.constant 9.99999974E-6 : f32
    %503 = vector.broadcast %cst_153 : f32 to vector<16x1xf32>
    %504 = arith.addf %502, %503 : vector<16x1xf32>
    %505 = math.rsqrt %504 : vector<16x1xf32>
    %506 = vector.broadcast %505 : vector<16x1xf32> to vector<16x32xf32>
    %507 = arith.mulf %497, %506 : vector<16x32xf32>
    %508 = vector.broadcast %491 : vector<1x32xf32> to vector<16x32xf32>
    %509 = arith.mulf %507, %508 : vector<16x32xf32>
    %cst_154 = arith.constant 1.000000e+00 : f32
    %510 = vector.broadcast %cst_154 : f32 to vector<16x32xf32>
    %511 = arith.addf %510, %490 : vector<16x32xf32>
    %512 = arith.mulf %509, %511 : vector<16x32xf32>
    %513 = arith.addf %512, %483 : vector<16x32xf32>
    %c0_155 = arith.constant 0 : index
    %c0_156 = arith.constant 0 : index
    %514 = vector.load %arg34[%c0_155, %c0_156] : memref<32x16xf32, #tpu.memory_space<vmem>>, vector<32x16xf32>
    %cst_157 = arith.constant dense<0.000000e+00> : vector<16x16xf32>
    %515 = tpu.matmul %513, %514, %cst_157 {dimension_numbers = #tpu.dot_dimension_numbers<[1], [0], [0], [1], [0, 0, 1, 1], [], []>} : vector<16x32xf32>, vector<32x16xf32>, vector<16x16xf32> -> vector<16x16xf32>
    %c0_158 = arith.constant 0 : index
    %c0_159 = arith.constant 0 : index
    %516 = vector.load %arg35[%c0_158, %c0_159] : memref<1x16xf32, #tpu.memory_space<vmem>>, vector<1x16xf32>
    %517 = vector.broadcast %516 : vector<1x16xf32> to vector<16x16xf32>
    %518 = arith.addf %515, %517 : vector<16x16xf32>
    %c0_160 = arith.constant 0 : index
    %c0_161 = arith.constant 0 : index
    %519 = vector.load %arg6[%c0_160, %c0_161] : memref<16x1xf32, #tpu.memory_space<vmem>>, vector<16x1xf32>
    %520 = vector.broadcast %519 : vector<16x1xf32> to vector<16x16xf32>
    %521 = arith.subf %518, %520 : vector<16x16xf32>
    %cst_162 = arith.constant 2.70805025 : f32
    %522 = vector.broadcast %cst_162 : f32 to vector<16x16xf32>
    %523 = arith.subf %521, %522 : vector<16x16xf32>
    %524 = tpu.iota {dimensions = array<i32: 1>} : vector<16x16xi32>
    %c0_163 = arith.constant 0 : index
    %c0_164 = arith.constant 0 : index
    %525 = vector.load %arg5[%c0_163, %c0_164] : memref<16x1xi32, #tpu.memory_space<vmem>>, vector<16x1xi32>
    %526 = vector.broadcast %525 : vector<16x1xi32> to vector<16x16xi32>
    %527 = arith.cmpi eq, %524, %526 : vector<16x16xi32>
    %cst_165 = arith.constant 0.000000e+00 : f32
    %528 = vector.broadcast %cst_165 : f32 to vector<16x16xf32>
    %529 = arith.select %527, %528, %523 : vector<16x16xi1>, vector<16x16xf32>
    %c0_166 = arith.constant 0 : index
    %c0_167 = arith.constant 0 : index
    %530 = vector.load %arg36[%c0_166, %c0_167] : memref<16x16xf32, #tpu.memory_space<vmem>>, vector<16x16xf32>
    tpu.vector_store %arg36[%c0_166, %c0_167], %529 {strides = array<i32>} : memref<16x16xf32, #tpu.memory_space<vmem>>, vector<16x16xf32>,
    return
  }
  func.func @transform_0(%arg0: i32) -> (i32, i32) {
    %c0_i32 = arith.constant 0 : i32
    %c0_i32_0 = arith.constant 0 : i32
    %c0_i32_1 = arith.constant 0 : i32
    return %c0_i32, %c0_i32_0 : i32, i32
  }
  func.func @transform_1(%arg0: i32) -> (i32, i32) {
    %c0_i32 = arith.constant 0 : i32
    %c0_i32_0 = arith.constant 0 : i32
    %c0_i32_1 = arith.constant 0 : i32
    return %c0_i32, %c0_i32_0 : i32, i32
  }
  func.func @transform_2(%arg0: i32) -> (i32, i32) {
    %c0_i32 = arith.constant 0 : i32
    %c0_i32_0 = arith.constant 0 : i32
    %c0_i32_1 = arith.constant 0 : i32
    return %c0_i32, %c0_i32_0 : i32, i32
  }
  func.func @transform_3(%arg0: i32) -> (i32, i32) {
    %c0_i32 = arith.constant 0 : i32
    %c0_i32_0 = arith.constant 0 : i32
    %c0_i32_1 = arith.constant 0 : i32
    return %c0_i32, %c0_i32_0 : i32, i32
  }
  func.func @transform_4(%arg0: i32) -> (i32, i32) {
    %c0_i32 = arith.constant 0 : i32
    %c0_i32_0 = arith.constant 0 : i32
    %c0_i32_1 = arith.constant 0 : i32
    return %c0_i32, %c0_i32_0 : i32, i32
  }
  func.func @transform_5(%arg0: i32) -> (i32, i32) {
    %c0_i32 = arith.constant 0 : i32
    %c0_i32_0 = arith.constant 0 : i32
    %c0_i32_1 = arith.constant 0 : i32
    return %c0_i32, %c0_i32_0 : i32, i32
  }
  func.func @transform_6(%arg0: i32) -> (i32, i32) {
    %c0_i32 = arith.constant 0 : i32
    %c0_i32_0 = arith.constant 0 : i32
    %c0_i32_1 = arith.constant 0 : i32
    return %c0_i32, %c0_i32_0 : i32, i32
  }
  func.func @transform_7(%arg0: i32) -> (i32, i32) {
    %c0_i32 = arith.constant 0 : i32
    %c0_i32_0 = arith.constant 0 : i32
    %c0_i32_1 = arith.constant 0 : i32
    return %c0_i32, %c0_i32_0 : i32, i32
  }
  func.func @transform_8(%arg0: i32) -> (i32, i32) {
    %c0_i32 = arith.constant 0 : i32
    %c0_i32_0 = arith.constant 0 : i32
    %c0_i32_1 = arith.constant 0 : i32
    return %c0_i32, %c0_i32_0 : i32, i32
  }
  func.func @transform_9(%arg0: i32) -> (i32, i32) {
    %c0_i32 = arith.constant 0 : i32
    %c0_i32_0 = arith.constant 0 : i32
    %c0_i32_1 = arith.constant 0 : i32
    return %c0_i32, %c0_i32_0 : i32, i32
  }
  func.func @transform_10(%arg0: i32) -> (i32, i32) {
    %c0_i32 = arith.constant 0 : i32
    %c0_i32_0 = arith.constant 0 : i32
    %c0_i32_1 = arith.constant 0 : i32
    return %c0_i32, %c0_i32_0 : i32, i32
  }
  func.func @transform_11(%arg0: i32) -> (i32, i32) {
    %c0_i32 = arith.constant 0 : i32
    %c0_i32_0 = arith.constant 0 : i32
    %c0_i32_1 = arith.constant 0 : i32
    return %c0_i32, %c0_i32_0 : i32, i32
  }
  func.func @transform_12(%arg0: i32) -> (i32, i32) {
    %c0_i32 = arith.constant 0 : i32
    %c0_i32_0 = arith.constant 0 : i32
    %c0_i32_1 = arith.constant 0 : i32
    return %c0_i32, %c0_i32_0 : i32, i32
  }
  func.func @transform_13(%arg0: i32) -> (i32, i32) {
    %c0_i32 = arith.constant 0 : i32
    %c0_i32_0 = arith.constant 0 : i32
    %c0_i32_1 = arith.constant 0 : i32
    return %c0_i32, %c0_i32_0 : i32, i32
  }
  func.func @transform_14(%arg0: i32) -> (i32, i32) {
    %c0_i32 = arith.constant 0 : i32
    %c0_i32_0 = arith.constant 0 : i32
    %c0_i32_1 = arith.constant 0 : i32
    return %c0_i32, %c0_i32_0 : i32, i32
  }
  func.func @transform_15(%arg0: i32) -> (i32, i32) {
    %c0_i32 = arith.constant 0 : i32
    %c0_i32_0 = arith.constant 0 : i32
    %c0_i32_1 = arith.constant 0 : i32
    return %c0_i32, %c0_i32_0 : i32, i32
  }
  func.func @transform_16(%arg0: i32) -> (i32, i32) {
    %c0_i32 = arith.constant 0 : i32
    %c0_i32_0 = arith.constant 0 : i32
    %c0_i32_1 = arith.constant 0 : i32
    return %c0_i32, %c0_i32_0 : i32, i32
  }
  func.func @transform_17(%arg0: i32) -> (i32, i32) {
    %c0_i32 = arith.constant 0 : i32
    %c0_i32_0 = arith.constant 0 : i32
    %c0_i32_1 = arith.constant 0 : i32
    return %c0_i32, %c0_i32_0 : i32, i32
  }
  func.func @transform_18(%arg0: i32) -> (i32, i32) {
    %c0_i32 = arith.constant 0 : i32
    %c0_i32_0 = arith.constant 0 : i32
    %c0_i32_1 = arith.constant 0 : i32
    return %c0_i32, %c0_i32_0 : i32, i32
  }
  func.func @transform_19(%arg0: i32) -> (i32, i32) {
    %c0_i32 = arith.constant 0 : i32
    %c0_i32_0 = arith.constant 0 : i32
    %c0_i32_1 = arith.constant 0 : i32
    return %c0_i32, %c0_i32_0 : i32, i32
  }
  func.func @transform_20(%arg0: i32) -> (i32, i32) {
    %c0_i32 = arith.constant 0 : i32
    %c0_i32_0 = arith.constant 0 : i32
    %c0_i32_1 = arith.constant 0 : i32
    return %c0_i32, %c0_i32_0 : i32, i32
  }
  func.func @transform_21(%arg0: i32) -> (i32, i32) {
    %c0_i32 = arith.constant 0 : i32
    %c0_i32_0 = arith.constant 0 : i32
    %c0_i32_1 = arith.constant 0 : i32
    return %c0_i32, %c0_i32_0 : i32, i32
  }
  func.func @transform_22(%arg0: i32) -> (i32, i32) {
    %c0_i32 = arith.constant 0 : i32
    %c0_i32_0 = arith.constant 0 : i32
    %c0_i32_1 = arith.constant 0 : i32
    return %c0_i32, %c0_i32_0 : i32, i32
  }
  func.func @transform_23(%arg0: i32) -> (i32, i32) {
    %c0_i32 = arith.constant 0 : i32
    %c0_i32_0 = arith.constant 0 : i32
    %c0_i32_1 = arith.constant 0 : i32
    return %c0_i32, %c0_i32_0 : i32, i32
  }
  func.func @transform_24(%arg0: i32) -> (i32, i32) {
    %c0_i32 = arith.constant 0 : i32
    %c0_i32_0 = arith.constant 0 : i32
    %c0_i32_1 = arith.constant 0 : i32
    return %c0_i32, %c0_i32_0 : i32, i32
  }
  func.func @transform_25(%arg0: i32) -> (i32, i32) {
    %c0_i32 = arith.constant 0 : i32
    %c0_i32_0 = arith.constant 0 : i32
    %c0_i32_1 = arith.constant 0 : i32
    return %c0_i32, %c0_i32_0 : i32, i32
  }
  func.func @transform_26(%arg0: i32) -> (i32, i32) {
    %c0_i32 = arith.constant 0 : i32
    %c0_i32_0 = arith.constant 0 : i32
    %c0_i32_1 = arith.constant 0 : i32
    return %c0_i32, %c0_i32_0 : i32, i32
  }
  func.func @transform_27(%arg0: i32) -> (i32, i32) {
    %c0_i32 = arith.constant 0 : i32
    %c0_i32_0 = arith.constant 0 : i32
    %c0_i32_1 = arith.constant 0 : i32
    return %c0_i32, %c0_i32_0 : i32, i32
  }
  func.func @transform_28(%arg0: i32) -> (i32, i32) {
    %c0_i32 = arith.constant 0 : i32
    %c0_i32_0 = arith.constant 0 : i32
    %c0_i32_1 = arith.constant 0 : i32
    return %c0_i32, %c0_i32_0 : i32, i32
  }
  func.func @transform_29(%arg0: i32) -> (i32, i32) {
    %c0_i32 = arith.constant 0 : i32
    %c0_i32_0 = arith.constant 0 : i32
    %c0_i32_1 = arith.constant 0 : i32
    return %c0_i32, %c0_i32_0 : i32, i32
  }
  func.func @transform_30(%arg0: i32) -> (i32, i32) {
    %c0_i32 = arith.constant 0 : i32
    %c0_i32_0 = arith.constant 0 : i32
    %c0_i32_1 = arith.constant 0 : i32
    return %c0_i32, %c0_i32_0 : i32, i32
  }
  func.func @transform_31(%arg0: i32) -> (i32, i32) {
    %c0_i32 = arith.constant 0 : i32
    %c0_i32_0 = arith.constant 0 : i32
    %c0_i32_1 = arith.constant 0 : i32
    return %c0_i32, %c0_i32_0 : i32, i32
  }
  func.func @transform_32(%arg0: i32) -> (i32, i32) {
    %c0_i32 = arith.constant 0 : i32
    %c0_i32_0 = arith.constant 0 : i32
    %c0_i32_1 = arith.constant 0 : i32
    return %c0_i32, %c0_i32_0 : i32, i32
  }
  func.func @transform_33(%arg0: i32) -> (i32, i32) {
    %c0_i32 = arith.constant 0 : i32
    %c0_i32_0 = arith.constant 0 : i32
    %c0_i32_1 = arith.constant 0 : i32
    return %c0_i32, %c0_i32_0 : i32, i32
  }
  func.func @transform_34(%arg0: i32) -> (i32, i32) {
    %c0_i32 = arith.constant 0 : i32
    %c0_i32_0 = arith.constant 0 : i32
    %c0_i32_1 = arith.constant 0 : i32
    return %c0_i32, %c0_i32_0 : i32, i32
  }
  func.func @transform_35(%arg0: i32) -> (i32, i32) {
    %c0_i32 = arith.constant 0 : i32
    %c0_i32_0 = arith.constant 0 : i32
    %c0_i32_1 = arith.constant 0 : i32
    return %c0_i32, %c0_i32_0 : i32, i32
  }
}

</mosaic_0001>

<bundles_post_ra>
// kernel: tile.19
= control target key start
LH: loop header
LB: loop body
LE: loop exit
PB: predicated region body
PF: predicated region fallthrough
CT: control target
= control target key end

     0   :  { %vm82_vm0 = vcmask 1047556   ;;  %vm84_vm1 = vcmask 130048   ;;  %vm103_vm2 = vcmask 261248   ;;  %s225_s0 = inlined_call_operand.vmem [shape: f32[2,8,2,16], index: 0, kind: input, shape index: {}]   ;;  %s226_s1 = inlined_call_operand.vmem [shape: f32[16,32], index: 1, kind: output, shape index: {}]  }
   0x1   :  { %v138_v0 = vld [vmem:[%s225_s0 + $0xe] sm:$0x3]  ;;  %v139_v1 = vld [vmem:[%s225_s0 + $0xc] sm:$0x3]  ;;  %v140_v2 = vld [vmem:[%s225_s0 + $0xa] sm:$0x3] }
   0x2   :  { %48 = vst [vmem:[#allocation0 + $0x38] sm:$0x3] %v138_v0  ;;  %53 = vst [vmem:[#allocation0 + $0x30] sm:$0x3] %v139_v1  ;;  %v141_v3 = vld [vmem:[%s225_s0 + $0x8] sm:$0x3] }
   0x3   :  { %58 = vst [vmem:[#allocation0 + $0x28] sm:$0x3] %v140_v2  ;;  %v142_v4 = vld [vmem:[%s225_s0 + $0x6] sm:$0x3]  ;;  %v143_v5 = vld [vmem:[%s225_s0 + $0x4] sm:$0x3] }
   0x4   :  { %63 = vst [vmem:[#allocation0 + $0x20] sm:$0x3] %v141_v3  ;;  %68 = vst [vmem:[#allocation0 + $0x18] sm:$0x3] %v142_v4  ;;  %v144_v6 = vld [vmem:[%s225_s0 + $0x2] sm:$0x3] }
   0x5   :  { %73 = vst [vmem:[#allocation0 + $0x10] sm:$0x3] %v143_v5  ;;  %v78_v7 = vld [vmem:[%s225_s0] sm:$0x3]  ;;  %77 = vst [vmem:[#allocation0 + $0x8] sm:$0x3] %v144_v6 }
   0x6   :  { %79 = vst [vmem:[#allocation0] sm:$0x3] %v78_v7  ;;  %v130_v8 = vld [vmem:[%s225_s0 + $0x1e] sm:$0x3]  ;;  %v131_v9 = vld [vmem:[%s225_s0 + $0x1c] sm:$0x3] }
   0x7   :  { %v132_v10 = vld [vmem:[%s225_s0 + $0x1a] sm:$0x3]  ;;  %8 = vst [vmem:[#allocation0 + $0x78] sm:$0x3] %v130_v8  ;;  %13 = vst [vmem:[#allocation0 + $0x70] sm:$0x3] %v131_v9 }
   0x8   :  { %18 = vst [vmem:[#allocation0 + $0x68] sm:$0x3] %v132_v10  ;;  %v133_v11 = vld [vmem:[%s225_s0 + $0x18] sm:$0x3]  ;;  %v134_v12 = vld [vmem:[%s225_s0 + $0x16] sm:$0x3] }
   0x9   :  { %v135_v13 = vld [vmem:[%s225_s0 + $0x14] sm:$0x3]  ;;  %23 = vst [vmem:[#allocation0 + $0x60] sm:$0x3] %v133_v11  ;;  %28 = vst [vmem:[#allocation0 + $0x58] sm:$0x3] %v134_v12 }
   0xa   :  { %33 = vst [vmem:[#allocation0 + $0x50] sm:$0x3] %v135_v13  ;;  %v136_v14 = vld [vmem:[%s225_s0 + $0x12] sm:$0x3]  ;;  %v137_v15 = vld [vmem:[%s225_s0 + $0x10] sm:$0x3] }
   0xb   :  { %38 = vst [vmem:[#allocation0 + $0x48] sm:$0x3] %v136_v14  ;;  %43 = vst [vmem:[#allocation0 + $0x40] sm:$0x3] %v137_v15  ;;  %s148_s0 = smov 16  }
   0xc   :  { %v98_v16 = vld [vmem:[#allocation0 + $0x1] ss:$8 sm:$0xf0]   ;;  %v81_v17 = vld [vmem:[#allocation0] ss:$8 sm:$0xf0]  }
   0xd   :  { %v96_v18 = vld [vmem:[#allocation0 + $0x1] ss:$8 sm:$0xf]   ;;  %v80_v19 = vld [vmem:[#allocation0] ss:$8 sm:$0xf]  }
   0xe   :  { %v100_v20 = vsel %vm82_vm0, %v98_v16, %v96_v18  ;;  %v83_v21 = vsel %vm82_vm0, %v81_v17, %v80_v19 }
   0xf   :  { %101 = vrot.lane.b32.xlu0 %v100_v20, %s148_s0  ;;  %85 = vst.msk [vmem:[%s226_s1] sm:$0xff] %vm84_vm1, %v83_v21  }
  0x10   :  { %v108_v22 = vld [vmem:[#allocation0 + $0x41] ss:$8 sm:$0xf0]   ;;  %v89_v23 = vld [vmem:[#allocation0 + $0x40] ss:$8 sm:$0xf0]  }
  0x12   :  { %v106_v24 = vld [vmem:[#allocation0 + $0x41] ss:$8 sm:$0xf]   ;;  %v87_v25 = vld [vmem:[#allocation0 + $0x40] ss:$8 sm:$0xf]  }
  0x13   :  { %v110_v26 = vsel %vm82_vm0, %v108_v22, %v106_v24  ;;  %v91_v27 = vsel %vm82_vm0, %v89_v23, %v87_v25 }
  0x14   :  { %145 = vst.msk [vmem:[%s226_s1 + $0x8] sm:$0xff] %vm84_vm1, %v91_v27   ;;  %111 = vrot.lane.b32.xlu0 %v110_v26, %s148_s0 }
  0x81   :  { %v102_v28 = vpop.permute.xlu0 %101  }
  0x82   :  { %104 = vst.msk [vmem:[%s226_s1] sm:$0xff] %vm103_vm2, %v102_v28  }
  0x86   :  { %v112_v29 = vpop.permute.xlu0 %111  }
  0x87   :  { %146 = vst.msk [vmem:[%s226_s1 + $0x8] sm:$0xff] %vm103_vm2, %v112_v29  }

// kernel: tile.18
= control target key start
LH: loop header
LB: loop body
LE: loop exit
PB: predicated region body
PF: predicated region fallthrough
CT: control target
= control target key end

     0   :  { %s154_s0 = inlined_call_operand.vmem [shape: f32[8,16], index: 0, kind: input, shape index: {}]   ;;  %s155_s1 = inlined_call_operand.vmem [shape: f32[2,8,2,16], index: 1, kind: output, shape index: {}]  }
   0x1   :  { %v4_v0 = vld [vmem:[%s154_s0] ss:$0 sm:$0xff]  ;;  %v51_v1 = vld [vmem:[%s154_s0 + $0x1] ss:$0 sm:$0xff]  ;;  %v54_v2 = vld [vmem:[%s154_s0 + $0x2] ss:$0 sm:$0xff] }
   0x2   :  { %5 = vst [vmem:[%s155_s1] sm:$0x3] %v4_v0  ;;  %50 = vst [vmem:[%s155_s1 + $0x10] sm:$0x3] %v4_v0  ;;  %v57_v3 = vld [vmem:[%s154_s0 + $0x3] ss:$0 sm:$0xff] }
   0x3   :  { %52 = vst [vmem:[%s155_s1 + $0x2] sm:$0x3] %v51_v1  ;;  %53 = vst [vmem:[%s155_s1 + $0x12] sm:$0x3] %v51_v1  ;;  %v60_v4 = vld [vmem:[%s154_s0 + $0x4] ss:$0 sm:$0xff] }
   0x4   :  { %55 = vst [vmem:[%s155_s1 + $0x4] sm:$0x3] %v54_v2  ;;  %56 = vst [vmem:[%s155_s1 + $0x14] sm:$0x3] %v54_v2  ;;  %v63_v5 = vld [vmem:[%s154_s0 + $0x5] ss:$0 sm:$0xff] }
   0x5   :  { %58 = vst [vmem:[%s155_s1 + $0x6] sm:$0x3] %v57_v3  ;;  %59 = vst [vmem:[%s155_s1 + $0x16] sm:$0x3] %v57_v3  ;;  %v66_v6 = vld [vmem:[%s154_s0 + $0x6] ss:$0 sm:$0xff] }
   0x6   :  { %61 = vst [vmem:[%s155_s1 + $0x8] sm:$0x3] %v60_v4  ;;  %62 = vst [vmem:[%s155_s1 + $0x18] sm:$0x3] %v60_v4  ;;  %v69_v7 = vld [vmem:[%s154_s0 + $0x7] ss:$0 sm:$0xff] }
   0x7   :  { %64 = vst [vmem:[%s155_s1 + $0xa] sm:$0x3] %v63_v5  ;;  %65 = vst [vmem:[%s155_s1 + $0x1a] sm:$0x3] %v63_v5 }
   0x8   :  { %67 = vst [vmem:[%s155_s1 + $0xc] sm:$0x3] %v66_v6  ;;  %68 = vst [vmem:[%s155_s1 + $0x1c] sm:$0x3] %v66_v6 }
   0x9   :  { %70 = vst [vmem:[%s155_s1 + $0xe] sm:$0x3] %v69_v7  ;;  %71 = vst [vmem:[%s155_s1 + $0x1e] sm:$0x3] %v69_v7 }

// kernel: double_sedd_forward.1
= control target key start
LH: loop header
LB: loop body
LE: loop exit
PB: predicated region body
PF: predicated region fallthrough
CT: control target
= control target key end

     0   :  { %s4205_s6 = smov 1   ;;  %s4206_s10 = smov 2   ;;  %s5012_s0 = inlined_call_operand.smem [shape: u32[36], index: -1, kind: input, shape index: {}] }
   0x1   :  { %s4265_s5 = sld [smem:[%s5012_s0]]   ;;  %s4207_s14 = smov 3  }
   0x2   :  { %s4270_s9 = sld [smem:[%s5012_s0 + %s4205_s6]]   ;;  %s4208_s18 = smov 4  }
   0x3   :  { %s4275_s13 = sld [smem:[%s5012_s0 + %s4206_s10]]   ;;  %s4209_s22 = smov 5  }
   0x4   :  { %s4280_s17 = sld [smem:[%s5012_s0 + %s4207_s14]]   ;;  %s4210_s26 = smov 6  }
   0x5   :  { %s4285_s21 = sld [smem:[%s5012_s0 + %s4208_s18]]   ;;  %s4211_s30 = smov 7  }
   0x6   :  { %s4290_s25 = sld [smem:[%s5012_s0 + %s4209_s22]]   ;;  %s4212_s4 = smov 8  }
   0x7   :  { %s4295_s29 = sld [smem:[%s5012_s0 + %s4210_s26]]   ;;  %s4213_s10 = smov 9  }
   0x8   :  { %s4300_s3 = sld [smem:[%s5012_s0 + %s4211_s30]]   ;;  %s4214_s15 = smov 10  }
   0x9   :  { %s4305_s8 = sld [smem:[%s5012_s0 + %s4212_s4]]   ;;  %s4215_s20 = smov 11  }
   0xa   :  { %s4310_s14 = sld [smem:[%s5012_s0 + %s4213_s10]]   ;;  %s4216_s26 = smov 12  }
   0xb   :  { %5022 = sst [smem:[#allocation5_spill]] %s4285_s21  ;;  %s4217_s1 = smov 13  }
   0xc   :  { %5023 = sst [smem:[#allocation6_spill]] %s4290_s25  ;;  %s4218_s7 = smov 14  }
   0xd   :  { %s4315_s19 = sld [smem:[%s5012_s0 + %s4214_s15]]   ;;  %s4219_s15 = smov 15  }
   0xe   :  { %s4320_s24 = sld [smem:[%s5012_s0 + %s4215_s20]]   ;;  %s4220_s22 = smov 16  }
   0xf   :  { %s4325_s30 = sld [smem:[%s5012_s0 + %s4216_s26]]   ;;  %s4221_s28 = smov 17  }
  0x10   :  { %s4330_s6 = sld [smem:[%s5012_s0 + %s4217_s1]]  }
  0x11   :  { %s4335_s12 = sld [smem:[%s5012_s0 + %s4218_s7]]   ;;  %s4222_s7 = smov 18  }
  0x12   :  { %s4340_s20 = sld [smem:[%s5012_s0 + %s4219_s15]]   ;;  %s4223_s15 = smov 19  }
  0x13   :  { %s4345_s27 = sld [smem:[%s5012_s0 + %s4220_s22]]   ;;  %s4224_s22 = smov 20  }
  0x14   :  { %5024 = sst [smem:[#allocation7_spill]] %s4320_s24 }
  0x15   :  { %s4350_s4 = sld [smem:[%s5012_s0 + %s4221_s28]]   ;;  %s4225_s28 = smov 21  }
  0x16   :  { %s4355_s21 = sld [smem:[%s5012_s0 + %s4222_s7]]   ;;  %s4226_s7 = smov 22  }
  0x17   :  { %s4360_s25 = sld [smem:[%s5012_s0 + %s4223_s15]]   ;;  %s4227_s15 = smov 23  }
  0x18   :  { %5025 = sst [smem:[#allocation8_spill]] %s4340_s20 }
  0x19   :  { %5026 = sst [smem:[#allocation9_spill]] %s4345_s27 }
  0x1a   :  { %s4365_s20 = sld [smem:[%s5012_s0 + %s4224_s22]]   ;;  %s4228_s22 = smov 24  }
  0x1b   :  { %5027 = sst [smem:[#allocation10_spill]] %s4350_s4 }
  0x1c   :  { %s4370_s4 = sld [smem:[%s5012_s0 + %s4225_s28]]   ;;  %s4229_s28 = smov 25  }
  0x1d   :  { %s4375_s24 = sld [smem:[%s5012_s0 + %s4226_s7]]   ;;  %s4230_s7 = smov 26  }
  0x1e   :  { %s4380_s27 = sld [smem:[%s5012_s0 + %s4227_s15]]   ;;  %s4231_s15 = smov 27  }
  0x20   :  { %5028 = sst [smem:[#allocation11_spill]] %s4365_s20 }
  0x21   :  { %s4385_s20 = sld [smem:[%s5012_s0 + %s4228_s22]]   ;;  %s4232_s22 = smov 28  }
  0x22   :  { %5029 = sst [smem:[#allocation12_spill]] %s4370_s4 }
  0x23   :  { %5030 = sst [smem:[#allocation13_spill]] %s4375_s24 }
  0x24   :  { %5031 = sst [smem:[#allocation14_spill]] %s4380_s27 }
  0x25   :  { %s4390_s4 = sld [smem:[%s5012_s0 + %s4229_s28]]   ;;  %s4233_s28 = smov 29  }
  0x26   :  { %s4395_s24 = sld [smem:[%s5012_s0 + %s4230_s7]]   ;;  %s4234_s7 = smov 30  }
  0x27   :  { %5032 = sst [smem:[#allocation15_spill]] %s4385_s20 }
  0x28   :  { %s4400_s27 = sld [smem:[%s5012_s0 + %s4231_s15]]   ;;  %s4235_s15 = smov 31  }
  0x29   :  { %s4405_s20 = sld [smem:[%s5012_s0 + %s4232_s22]]   ;;  %s4236_s22 = smov 32  }
  0x2b   :  { %5033 = sst [smem:[#allocation16_spill]] %s4390_s4 }
  0x2c   :  { %5034 = sst [smem:[#allocation17_spill]] %s4395_s24 }
  0x2d   :  { %s4410_s4 = sld [smem:[%s5012_s0 + %s4233_s28]]   ;;  %s4237_s28 = smov 33  }
  0x2e   :  { %5035 = sst [smem:[#allocation18_spill]] %s4400_s27 }
  0x2f   :  { %5036 = sst [smem:[#allocation19_spill]] %s4405_s20 }
  0x30   :  { %s4415_s24 = sld [smem:[%s5012_s0 + %s4234_s7]]   ;;  %s4238_s7 = smov 34  }
  0x31   :  { %s4420_s27 = sld [smem:[%s5012_s0 + %s4235_s15]]   ;;  %s4239_s15 = smov 35  }
  0x32   :  { %s4425_s20 = sld [smem:[%s5012_s0 + %s4236_s22]]  }
  0x33   :  { %5037 = sst [smem:[#allocation20_spill]] %s4410_s4 }
  0x34   :  { %s4430_s4 = sld [smem:[%s5012_s0 + %s4237_s28]]  }
  0x36   :  { %5038 = sst [smem:[#allocation21_spill]] %s4415_s24 }
  0x37   :  { %5039 = sst [smem:[#allocation22_spill]] %s4420_s27 }
  0x38   :  { %s4435_s24 = sld [smem:[%s5012_s0 + %s4238_s7]]  }
  0x39   :  { %s4440_s27 = sld [smem:[%s5012_s0 + %s4239_s15]]  }
  0x3a   :  { %v164_v0 = vld [vmem:[%s4295_s29 + $0x80] sm:$0xff]  ;;  %v165_v1 = vld [vmem:[%s4295_s29 + $0x88] sm:$0xff]  ;;  %v166_v5 = vld [vmem:[%s4295_s29 + $0x90] sm:$0xff] }
  0x3b   :  { %v148_v2 = vld [vmem:[%s4295_s29] sm:$0xff]  ;;  %v3879_v3 = vpack.c.bf16 %v165_v1, %v164_v0  ;;  %v149_v4 = vld [vmem:[%s4295_s29 + $0x8] sm:$0xff]  ;;  %v167_v6 = vld [vmem:[%s4295_s29 + $0x98] sm:$0xff] }
  0x3c   :  { %v3881_v7 = vpack.c.bf16 %v149_v4, %v148_v2  ;;  %v3883_v8 = vpack.c.bf16 %v167_v6, %v166_v5  ;;  %v150_v9 = vld [vmem:[%s4295_s29 + $0x10] sm:$0xff]  ;;  %v151_v10 = vld [vmem:[%s4295_s29 + $0x18] sm:$0xff]  ;;  %v168_v11 = vld [vmem:[%s4295_s29 + $0xa0] sm:$0xff] }
  0x3d   :  { %3880 = vmatprep.subr.bf16.mxu0 %v3879_v3  ;;  %v169_v12 = vld [vmem:[%s4295_s29 + $0xa8] sm:$0xff]  ;;  %v3885_v13 = vpack.c.bf16 %v151_v10, %v150_v9  ;;  %v152_v15 = vld [vmem:[%s4295_s29 + $0x20] sm:$0xff]  ;;  %v170_v17 = vld [vmem:[%s4295_s29 + $0xb0] sm:$0xff] }
  0x3e   :  { %3882 = vmatpush3.bf16.msra.mxu0 %v3881_v7  ;;  %v3887_v14 = vpack.c.bf16 %v169_v12, %v168_v11  ;;  %v153_v16 = vld [vmem:[%s4295_s29 + $0x28] sm:$0xff]  ;;  %v171_v18 = vld [vmem:[%s4295_s29 + $0xb8] sm:$0xff]  ;;  %v154_v21 = vld [vmem:[%s4295_s29 + $0x30] sm:$0xff] }
  0x3f   :  { %3884 = vmatprep.subr.bf16.mxu0 %v3883_v8  ;;  %v3889_v19 = vpack.c.bf16 %v153_v16, %v152_v15  ;;  %v3891_v20 = vpack.c.bf16 %v171_v18, %v170_v17  ;;  %v155_v22 = vld [vmem:[%s4295_s29 + $0x38] sm:$0xff]  ;;  %v172_v23 = vld [vmem:[%s4295_s29 + $0xc0] sm:$0xff]  ;;  %v173_v24 = vld [vmem:[%s4295_s29 + $0xc8] sm:$0xff] }
  0x40   :  { %v3416_v25 = vld.sshfl [vmem:[%s4270_s9] sm:$0x33 pattern:$0x76325410] }
  0x41   :  { %v195_v26 = vcombine.high %v3416_v25, %v3416_v25 }
  0x42   :  { %3886 = vmatpush3.bf16.msra.mxu0 %v3885_v13 }
  0x43   :  { %3888 = vmatprep.subr.bf16.mxu0 %v3887_v14 }
  0x44   :  { %76 = vsyncpa [#allocation3], 0  ;;  %v3893_v27 = vpack.c.bf16 %v155_v22, %v154_v21  ;;  %v3895_v28 = vpack.c.bf16 %v173_v24, %v172_v23  ;;  %v156_v29 = vld [vmem:[%s4295_s29 + $0x40] sm:$0xff]  ;;  %v157_v30 = vld [vmem:[%s4295_s29 + $0x48] sm:$0xff]  ;;  %262 = vmatprep.mubr.f32.mxu0 %v195_v26  ;;  %v4240_v53 = vmov 0.0|0.0   ;;  %vm4241_vm0 = vmmov 0  }
  0x45   :  { %v174_v31 = vld [vmem:[%s4295_s29 + $0xd0] sm:$0xff]  ;;  %v175_v32 = vld [vmem:[%s4295_s29 + $0xd8] sm:$0xff]  ;;  %v3897_v33 = vpack.c.bf16 %v157_v30, %v156_v29  ;;  %v176_v37 = vld [vmem:[%s4295_s29 + $0xe0] sm:$0xff]  ;;  %3911 = vmatprep.subr.bf16.mxu1 %v4240_v53  ;;  %v4242_v57 = vmov 0.0   ;;  %vm286_vm1 = vcmask 261120   ;;  %s4243_s0 = smov 96  }
  0x46   :  { %3890 = vmatpush3.bf16.msra.mxu0 %v3889_v19  ;;  %v3899_v34 = vpack.c.bf16 %v175_v32, %v174_v31  ;;  %v158_v35 = vld [vmem:[%s4295_s29 + $0x50] sm:$0xff]  ;;  %v159_v36 = vld [vmem:[%s4295_s29 + $0x58] sm:$0xff]  ;;  %v177_v38 = vld [vmem:[%s4295_s29 + $0xe8] sm:$0xff]  ;;  %3638 = vmatprep.mubr.msk.f32.mxu1 %vm4241_vm0, %v4242_v57  ;;  %s4245_s9 = smov 32   ;;  %vm638_vm2 = vcmask 64512   ;;  %vm641_vm3 = vcmask 130048  }
  0x47   :  { %3892 = vmatprep.subr.bf16.mxu0 %v3891_v20  ;;  %v3901_v39 = vpack.c.bf16 %v159_v36, %v158_v35  ;;  %v3903_v40 = vpack.c.bf16 %v177_v38, %v176_v37  ;;  %v160_v41 = vld [vmem:[%s4295_s29 + $0x60] sm:$0xff]  ;;  %v161_v42 = vld [vmem:[%s4295_s29 + $0x68] sm:$0xff]  ;;  %v178_v43 = vld [vmem:[%s4295_s29 + $0xf0] sm:$0xff]  ;;  %vm644_vm4 = vcmask 195584   ;;  %s5044_s22 = sld [smem:[#allocation20_spill]]  ;;  %s5045_s23 = sld [smem:[#allocation10_spill]] }
  0x48   :  { %v179_v44 = vld [vmem:[%s4295_s29 + $0xf8] sm:$0xff]  ;;  %v3905_v45 = vpack.c.bf16 %v161_v42, %v160_v41  ;;  %v162_v47 = vld [vmem:[%s4295_s29 + $0x70] sm:$0xff]  ;;  %v275_v50 = vld [vmem:[%s4305_s8] sm:$0xff]  ;;  %v383_v42 = vlaneseq  ;;  %s5046_s26 = sld [smem:[#allocation13_spill]]  ;;  %s5047_s28 = sld [smem:[#allocation11_spill]] }
  0x49   :  { %v3907_v46 = vpack.c.bf16 %v179_v44, %v178_v43  ;;  %v163_v48 = vld [vmem:[%s4295_s29 + $0x78] sm:$0xff]  ;;  %v276_v51 = vld [vmem:[%s4305_s8 + $0x8] sm:$0xff]  ;;  %v277_v54 = vld [vmem:[%s4305_s8 + $0x10] sm:$0xff]  ;;  %s4248_s29 = smov 120   ;;  %s5048_s1 = sld [smem:[#allocation14_spill]] }
  0x4a   :  { %3894 = vmatpush3.bf16.msra.mxu0 %v3893_v27  ;;  %v3909_v49 = vpack.c.bf16 %v163_v48, %v162_v47  ;;  %v3912_v52 = vpack.c.bf16 %v276_v51, %v275_v50  ;;  %v278_v55 = vld [vmem:[%s4305_s8 + $0x18] sm:$0xff]  ;;  %v4485_v58 = vld [vmem:[%s4265_s5] sm:$0xff]  ;;  %v4488_v59 = vld [vmem:[%s4265_s5 + $0x8] sm:$0xff]  ;;  %v384_v43 = vshrl.u32 %v383_v42, 7  ;;  %s4244_s5 = smov 88   ;;  %s4252_s8 = smov 64  }
  0x4b   :  { %3896 = vmatprep.subr.bf16.mxu0 %v3895_v28  ;;  %v3915_v56 = vpack.c.bf16 %v278_v55, %v277_v54  ;;  %v484_v60 = vsel %vm286_vm1, %v4485_v58, 0.0  ;;  %v487_v61 = vsel %vm286_vm1, %v4488_v59, 0.0  ;;  %v3415_v63 = vld [vmem:[%s4300_s3] ss:$0 sm:$0xff]  ;;  %v374_v8 = vld [vmem:[%s4355_s21 + $0x8] sm:$0xff]  ;;  %v376_v9 = vld [vmem:[%s4355_s21 + $0x18] sm:$0xff] }
  0x4c   :  { %3913 = vmatpush3.bf16.msra.mxu1 %v3912_v52  ;;  %485 = vadd.xlane.f32.xlu0 %v484_v60  ;;  %v3917_v10 = vpack.c.bf16 %v376_v9, %v374_v8  ;;  %v373_v11 = vld [vmem:[%s4355_s21] sm:$0xff]  ;;  %v375_v12 = vld [vmem:[%s4355_s21 + $0x10] sm:$0xff]  ;;  %v378_v14 = vld [vmem:[%s4355_s21 + $0x28] sm:$0xff]  ;;  %v4529_v51 = vsub.s32 1, %v384_v43  ;;  %s4251_s3 = smov 48   ;;  %s5049_s2 = sld [smem:[#allocation15_spill]] }
  0x4d   :  { %3914 = vmatprep.subr.bf16.mxu1 %v4240_v53  ;;  %v3919_v13 = vpack.c.bf16 %v375_v12, %v373_v11  ;;  %v380_v15 = vld [vmem:[%s4355_s21 + $0x38] sm:$0xff]  ;;  %v377_v17 = vld [vmem:[%s4355_s21 + $0x20] sm:$0xff]  ;;  %v379_v18 = vld [vmem:[%s4355_s21 + $0x30] sm:$0xff]  ;;  %s4246_s21 = smov 104   ;;  %s5050_s7 = sld [smem:[#allocation17_spill]] }
  0x4e   :  { %3898 = vmatpush3.bf16.msra.mxu0 %v3897_v33  ;;  %v3921_v16 = vpack.c.bf16 %v380_v15, %v378_v14  ;;  %v3923_v19 = vpack.c.bf16 %v379_v18, %v377_v17  ;;  %v3418_v30 = vld [vmem:[%s4310_s14] ss:$0 sm:$0xff]  ;;  %v535_v44 = vld [vmem:[%s4325_s30 + $0x10] sm:$0xff]  ;;  %s4253_s14 = smov 16   ;;  %s5051_s10 = sld [smem:[#allocation12_spill]] }
  0x4f   :  { %3900 = vmatprep.subr.bf16.mxu0 %v3899_v34  ;;  %v4524_v48 = vld [vmem:[%s4360_s25] sm:$0x3]  ;;  %s4247_s25 = smov 8   ;;  %s5052_s11 = sld [smem:[#allocation22_spill]] }
  0x50   :  { %3916 = vmatpush3.bf16.msra.mxu1 %v3915_v56  ;;  %488 = vadd.xlane.f32.xlu0 %v487_v61  ;;  %v3422_v8 = vld [vmem:[%s4315_s19] ss:$0 sm:$0xff]  ;;  %s5040_s19 = sld [smem:[#allocation19_spill]]  ;;  %s5053_s15 = sld [smem:[#allocation16_spill]] }
  0x51   :  { %3918 = vmatprep.subr.bf16.mxu1 %v3917_v10  ;;  %s5054_s16 = sld [smem:[#allocation18_spill]]  ;;  %s5056_s18 = sld [smem:[#allocation5_spill]] }
  0x52   :  { %3902 = vmatpush3.bf16.msra.mxu0 %v3901_v39  ;;  %v533_v39 = vld [vmem:[%s4325_s30] sm:$0xff] }
  0x53   :  { %3904 = vmatprep.subr.bf16.mxu0 %v3903_v40  ;;  %v534_v40 = vld [vmem:[%s4325_s30 + $0x8] sm:$0xff] }
  0x54   :  { %v3925_v41 = vpack.c.bf16 %v534_v40, %v533_v39 }
  0x56   :  { %3906 = vmatpush3.bf16.msra.mxu0 %v3905_v45  ;;  %v536_v45 = vld [vmem:[%s4325_s30 + $0x18] sm:$0xff]  ;;  %s5041_s30 = sld [smem:[#allocation9_spill]] }
  0x57   :  { %3908 = vmatprep.subr.bf16.mxu0 %v3907_v46  ;;  %v4521_v46 = vsub.s32 0, %v384_v43  ;;  %v3929_v47 = vpack.c.bf16 %v536_v45, %v535_v44 }
  0x5a   :  { %3910 = vmatpush3.bf16.msra.mxu0 %v3909_v49  ;;  %v386_v49 = vrot.slane %v4524_v48, %v4521_v46 }
  0x5b   :  { %3662 = vmatprep.subr.mxu0 %v4242_v57 }
  0x5d   :  { %263 = vmatmul.mubr.f32.vlgmr.msra.gmra.mrb[0].mxu0 %v3416_v25 }
  0x5e   :  { %3664 = vmatprep.mubr.msk.f32.mxu0 %vm4241_vm0, %v4242_v57 }
  0xd9   :  { %v486_v20 = vpop.xlane.xlu0 %485 }
  0xda   :  { %v491_v21 = vmul.f32 0.03125, %v486_v20 }
  0xdc   :  { %v493_v22 = vsub.f32 %v4485_v58, %v491_v21  ;;  %v4559_v21 = vld [vmem:[%s4275_s13] sm:$0xff] }
  0xdd   :  { %v489_v23 = vpop.xlane.xlu0 %488 }
  0xde   :  { %v492_v24 = vmul.f32 0.03125, %v489_v23  ;;  %v495_v25 = vmul.f32 %v493_v22, %v493_v22 }
  0xe0   :  { %v494_v26 = vsub.f32 %v4488_v59, %v492_v24  ;;  %v497_v27 = vsel %vm286_vm1, %v495_v25, 0.0 }
  0xe1   :  { %498 = vadd.xlane.f32.xlu1 %v497_v27 }
  0xe2   :  { %v496_v28 = vmul.f32 %v494_v26, %v494_v26 }
  0xe4   :  { %v500_v29 = vsel %vm286_vm1, %v496_v28, 0.0 }
  0xe5   :  { %501 = vadd.xlane.f32.xlu1 %v500_v29 }
 0x130   :  { %v3507_v62 = vpop.f32.mrb[0].mxu0 }
 0x131   :  { %v3508_v0 = vpop.f32.mrb[1].mxu0 }
 0x132   :  { %v3509_v1 = vadd.f32 %v3508_v0, %v3507_v62 }
 0x134   :  { %v265_v2 = vadd.f32 %v3509_v1, %v3415_v63 }
 0x136   :  { %v3417_v3 = vmul.f32 -1.442695, %v265_v2 }
 0x138   :  { %4113 = vpow2.f32 %v3417_v3 }
 0x142   :  { %v4114_v4 = vpop.eup %4113 }
 0x143   :  { %v271_v5 = vadd.f32 1.0, %v4114_v4 }
 0x145   :  { %4115 = vrcp.f32 %v271_v5 }
 0x14f   :  { %v4116_v6 = vpop.eup %4115 }
 0x150   :  { %v274_v7 = vmul.f32 %v4116_v6, %v265_v2 }
 0x152   :  { %3639 = vmatmul.mubr.msk.f32.vlgmr.msra.gmra.mrb[0].mxu1 %vm286_vm1, %v274_v7 }
 0x153   :  { %460 = vmatprep.mubr.f32.mxu1 %v4242_v57  ;;  %3920 = vmatpush1.bf16.msra.mxu1 %v3919_v13 }
 0x154   :  { %3922 = vmatprep.subr.bf16.mxu1 %v3921_v16 }
 0x157   :  { %3924 = vmatpush1.bf16.msra.mxu1 %v3923_v19 }
 0x158   :  { %3926 = vmatprep.subr.bf16.mxu1 %v3925_v41 }
 0x16e   :  { %v499_v62 = vpop.xlane.xlu1 %498 }
 0x16f   :  { %v503_v0 = vmul.f32 0.03125, %v499_v62 }
 0x171   :  { %v505_v2 = vadd.f32 1e-05, %v503_v0 }
 0x172   :  { %v502_v63 = vpop.xlane.xlu1 %501 }
 0x173   :  { %v504_v1 = vmul.f32 0.03125, %v502_v63 }
 0x175   :  { %v506_v3 = vadd.f32 1e-05, %v504_v1 }
 0x225   :  { %v356_v31 = vpop.f32.mrb[0].mxu1 }
 0x226   :  { %v357_v32 = vadd.f32 %v3418_v30, %v356_v31  ;;  %v3640_v33 = vpop.f32.mrb[1].mxu1 }
 0x228   :  { %v3420_v34 = vmul.f32 -1.442695, %v357_v32 }
 0x22a   :  { %4117 = vpow2.f32 %v3420_v34 }
 0x234   :  { %v4118_v35 = vpop.eup %4117 }
 0x235   :  { %v363_v36 = vadd.f32 1.0, %v4118_v35  ;;  %v4589_v35 = vld [vmem:[%s4280_s17 + $0x8] sm:$0xff] }
 0x237   :  { %4119 = vrcp.f32 %v363_v36 }
 0x238   :  { %4121 = vrsqrt.f32 %v505_v2 }
 0x239   :  { %4123 = vrsqrt.f32 %v506_v3 }
 0x241   :  { %v4120_v37 = vpop.eup %4119 }
 0x242   :  { %v4512_v38 = vmul.f32 %v4120_v37, %v357_v32  ;;  %v4122_v4 = vpop.eup %4121 }
 0x243   :  { %v4124_v5 = vpop.eup %4123  ;;  %v509_v7 = vmul.f32 %v4122_v4, %v493_v22  ;;  %v4570_v22 = vld [vmem:[%s4275_s13 + $0x8] sm:$0xff]  ;;  %s4249_s13 = smov 80  }
 0x244   :  { %3421 = vmatmul.mubr.msk.f32.vlgmr.msra.gmra.mrb[2].mxu1 %vm286_vm1, %v4512_v38  ;;  %v510_v6 = vmul.f32 %v4124_v5, %v494_v26  ;;  %v4579_v26 = vld [vmem:[%s4280_s17] sm:$0xff]  ;;  %s4250_s17 = smov 112  }
 0x245   :  { %3928 = vmatpush3.bf16.msra.mxu1 %v3925_v41  ;;  %v517_v10 = vmul.f32 %v3422_v8, %v509_v7 }
 0x246   :  { %3930 = vmatprep.subr.bf16.mxu1 %v3929_v47  ;;  %v518_v9 = vmul.f32 %v3422_v8, %v510_v6 }
 0x249   :  { %3932 = vmatpush3.bf16.msra.mxu1 %v3929_v47 }
 0x24a   :  { %3652 = vmatprep.subr.mxu1 %v4242_v57 }
 0x317   :  { %v462_v50 = vpop.f32.mrb[2].mxu1 }
 0x318   :  { %v463_v52 = vadd.f32 %v462_v50, %v386_v49  ;;  %v4531_v54 = vpop.f32.mrb[3].mxu1 }
 0x31a   :  { %v4534_v55 = vrot.slane %v463_v52, %v4521_v46  ;;  %v4537_v56 = vrot.slane %v463_v52, %v4529_v51 }
 0x31c   :  { %v520_v60 = vadd.f32 1.0, %v4537_v56  ;;  %v519_v61 = vadd.f32 1.0, %v4534_v55 }
 0x31e   :  { %525 = vrot.lane.b32.xlu1 %v520_v60, %s4243_s0  ;;  %523 = vrot.lane.b32.xlu0 %v519_v61, %s4243_s0 }
 0x390   :  { %v526_v11 = vpop.permute.xlu1 %525  ;;  %v524_v12 = vpop.permute.xlu0 %523 }
 0x391   :  { %v530_v13 = vmul.f32 %v526_v11, %v518_v9  ;;  %v529_v14 = vmul.f32 %v524_v12, %v517_v10 }
 0x393   :  { %v532_v15 = vadd.f32 %v530_v13, %v4537_v56  ;;  %v531_v16 = vadd.f32 %v529_v14, %v4534_v55 }
 0x395   :  { %3649 = vmatprep.mubr.msk.f32.mxu1 %vm286_vm1, %v531_v16 }
 0x396   :  { %3650 = vmatmul.mubr.msk.f32.vlgmr.msra.gmra.mrb[4].mxu1 %vm286_vm1, %v532_v15 }
 0x397   :  { %3654 = vmatprep.mubr.msk.f32.mxu1 %vm4241_vm0, %v4242_v57 }
 0x469   :  { %v4550_v17 = vpop.f32.mrb[4].mxu1 }
 0x46a   :  { %v4552_v18 = vpop.f32.mrb[5].mxu1  ;;  %v621_v19 = vsub.f32 0.0, %v4550_v17  ;;  %v619_v5 = vmul.f32 %v4550_v17, %v4570_v22 }
 0x46b   :  { %v620_v20 = vsub.f32 0.0, %v4552_v18  ;;  %v618_v49 = vmul.f32 %v4552_v18, %v4559_v21 }
 0x46c   :  { %665 = vrot.lane.b32.xlu0 %v621_v19, %s4244_s5 }
 0x46d   :  { %663 = vrot.lane.b32.xlu1 %v620_v20, %s4244_s5 }
 0x470   :  { %655 = vrot.lane.b32.xlu0 %v4559_v21, %s4245_s9 }
 0x471   :  { %669 = vrot.lane.b32.xlu1 %v4552_v18, %s4246_s21 }
 0x474   :  { %632 = vrot.lane.b32.xlu0 %v4552_v18, %s4247_s25 }
 0x475   :  { %671 = vrot.lane.b32.xlu1 %v4550_v17, %s4246_s21 }
 0x478   :  { %657 = vrot.lane.b32.xlu0 %v4570_v22, %s4245_s9 }
 0x479   :  { %624 = vrot.lane.b32.xlu1 %v620_v20, %s4248_s29 }
 0x47c   :  { %634 = vrot.lane.b32.xlu0 %v4550_v17, %s4247_s25 }
 0x4de   :  { %v666_v29 = vpop.permute.xlu0 %665 }
 0x4df   :  { %v664_v23 = vpop.permute.xlu1 %663 }
 0x4e2   :  { %v4594_v37 = vpop.permute.xlu0 %655 }
 0x4e3   :  { %v670_v24 = vpop.permute.xlu1 %669  ;;  %v661_v50 = vmul.f32 %v4594_v37, %v4552_v18 }
 0x4e4   :  { %v675_v25 = vsel %vm638_vm2, %v664_v23, %v670_v24 }
 0x4e5   :  { %v677_v27 = vsel %vm641_vm3, %v675_v25, %v664_v23 }
 0x4e6   :  { %v679_v28 = vsel %vm644_vm4, %v677_v27, %v670_v24  ;;  %v633_v40 = vpop.permute.xlu0 %632 }
 0x4e7   :  { %v672_v30 = vpop.permute.xlu1 %671  ;;  %v681_v31 = vmul.f32 %v679_v28, %v4579_v26 }
 0x4e8   :  { %v676_v32 = vsel %vm638_vm2, %v666_v29, %v672_v30 }
 0x4e9   :  { %v678_v33 = vsel %vm641_vm3, %v676_v32, %v666_v29  ;;  %685 = vrot.lane.b32.xlu1 %v681_v31, %s4245_s9 }
 0x4ea   :  { %v680_v34 = vsel %vm644_vm4, %v678_v33, %v672_v30  ;;  %v4600_v47 = vpop.permute.xlu0 %657 }
 0x4eb   :  { %v682_v36 = vmul.f32 %v680_v34, %v4589_v35  ;;  %v625_v39 = vpop.permute.xlu1 %624  ;;  %v662_v3 = vmul.f32 %v4550_v17, %v4600_v47 }
 0x4ec   :  { %v639_v41 = vsel %vm638_vm2, %v625_v39, %v633_v40 }
 0x4ed   :  { %626 = vrot.lane.b32.xlu1 %v621_v19, %s4248_s29  ;;  %v642_v43 = vsel %vm641_vm3, %v639_v41, %v625_v39 }
 0x4ee   :  { %v645_v44 = vsel %vm644_vm4, %v642_v43, %v633_v40  ;;  %v635_v62 = vpop.permute.xlu0 %634 }
 0x4ef   :  { %v647_v45 = vmul.f32 %v645_v44, %v4579_v26 }
 0x4f1   :  { %687 = vrot.lane.b32.xlu1 %v682_v36, %s4245_s9  ;;  %v649_v61 = vadd.f32 %v647_v45, %v618_v49 }
 0x4f3   :  { %v651_v1 = vmul.f32 0.25, %v649_v61 }
 0x55b   :  { %v686_v52 = vpop.permute.xlu1 %685 }
 0x55c   :  { %v691_v60 = vadd.f32 %v686_v52, %v661_v50 }
 0x55e   :  { %860 = vrot.lane.b32.xlu1 %v691_v60, %s4249_s13  ;;  %694 = vrot.lane.b32.xlu0 %v691_v60, %s4243_s0 }
 0x55f   :  { %v627_v63 = vpop.permute.xlu1 %626 }
 0x560   :  { %v640_v0 = vsel %vm638_vm2, %v627_v63, %v635_v62 }
 0x561   :  { %v643_v2 = vsel %vm641_vm3, %v640_v0, %v627_v63 }
 0x562   :  { %v646_v4 = vsel %vm644_vm4, %v643_v2, %v635_v62  ;;  %858 = vrot.lane.b32.xlu0 %v651_v1, %s4250_s17 }
 0x563   :  { %v648_v6 = vmul.f32 %v646_v4, %v4589_v35  ;;  %v688_v7 = vpop.permute.xlu1 %687 }
 0x564   :  { %v692_v8 = vadd.f32 %v688_v7, %v662_v3 }
 0x565   :  { %v650_v9 = vadd.f32 %v648_v6, %v619_v5 }
 0x566   :  { %1029 = vrot.lane.b32.xlu1 %v692_v8, %s4243_s0  ;;  %1195 = vrot.lane.b32.xlu0 %v692_v8, %s4249_s13  ;;  %v1363_v8 = vld [vmem:[%s4330_s6] sm:$0xff] }
 0x567   :  { %v652_v10 = vmul.f32 0.25, %v650_v9  ;;  %v1364_v9 = vld [vmem:[%s4330_s6 + $0x8] sm:$0xff] }
 0x56a   :  { %1193 = vrot.lane.b32.xlu1 %v652_v10, %s4250_s17 }
 0x5d0   :  { %v695_v11 = vpop.permute.xlu0 %694  ;;  %v861_v12 = vpop.permute.xlu1 %860 }
 0x5d1   :  { %3653 = vmatpush3.xpose.msk.msra.mxu1 %vm641_vm3, %v695_v11  ;;  %3663 = vmatpush3.xpose.msk.msra.mxu0 %vm641_vm3, %v861_v12  ;;  %v1365_v11 = vld [vmem:[%s4330_s6 + $0x10] sm:$0xff]  ;;  %v1366_v12 = vld [vmem:[%s4330_s6 + $0x18] sm:$0xff]  ;;  %s5042_s6 = sld [smem:[#allocation7_spill]] }
 0x5d2   :  { %3672 = vmatprep.subr.mxu0 %v4242_v57  ;;  %3657 = vmatprep.subr.mxu1 %v4242_v57 }
 0x5d4   :  { %v859_v13 = vpop.permute.xlu0 %858  ;;  %3655 = vmatmul.mubr.msk.f32.vlgmr.msra.gmra.mrb[6].mxu1 %vm641_vm3, %v651_v1 }
 0x5d5   :  { %3665 = vmatmul.mubr.msk.f32.vlgmr.msra.gmra.mrb[2].mxu0 %vm641_vm3, %v859_v13  ;;  %3659 = vmatprep.mubr.msk.f32.mxu1 %vm4241_vm0, %v4242_v57  ;;  %v3937_v13 = vpack.c.bf16 %v1366_v12, %v1365_v11  ;;  %v1518_v11 = vld [vmem:[%s4335_s12 + $0x8] sm:$0xff] }
 0x5d6   :  { %3674 = vmatprep.mubr.msk.f32.mxu0 %vm4241_vm0, %v4242_v57 }
 0x5d8   :  { %v1030_v14 = vpop.permute.xlu1 %1029  ;;  %v1196_v15 = vpop.permute.xlu0 %1195 }
 0x5d9   :  { %3673 = vmatpush3.xpose.msk.msra.mxu0 %vm641_vm3, %v1030_v14 }
 0x5da   :  { %3682 = vmatprep.subr.mxu0 %v4242_v57 }
 0x5dc   :  { %3675 = vmatmul.mubr.msk.f32.vlgmr.msra.gmra.mrb[4].mxu0 %vm641_vm3, %v652_v10  ;;  %v1194_v16 = vpop.permute.xlu1 %1193  ;;  %v3933_v10 = vpack.c.bf16 %v1364_v9, %v1363_v8 }
 0x5dd   :  { %3683 = vmatpush3.xpose.msk.msra.mxu0 %vm641_vm3, %v1196_v15  ;;  %3684 = vmatprep.mubr.msk.f32.mxu0 %vm4241_vm0, %v4242_v57 }
 0x5e0   :  { %3685 = vmatmul.mubr.msk.f32.vlgmr.msra.gmra.mrb[6].mxu0 %vm641_vm3, %v1194_v16 }
 0x6a7   :  { %v767_v19 = vpop.f32.mrb[6].mxu1 }
 0x6a8   :  { %v3656_v20 = vpop.f32.mrb[7].mxu1  ;;  %v932_v23 = vpop.f32.mrb[2].mxu0  ;;  %v771_v24 = vsel %vm638_vm2, %v767_v19, -inf }
 0x6a9   :  { %v3666_v25 = vpop.f32.mrb[3].mxu0  ;;  %772 = vmax.xlane.f32.xlu0 %v771_v24  ;;  %v936_v27 = vsel %vm638_vm2, %v932_v23, -inf }
 0x6aa   :  { %937 = vmax.xlane.f32.xlu1 %v936_v27 }
 0x6af   :  { %v1102_v28 = vpop.f32.mrb[4].mxu0 }
 0x6b0   :  { %v3676_v29 = vpop.f32.mrb[5].mxu0  ;;  %v1106_v30 = vsel %vm638_vm2, %v1102_v28, -inf }
 0x6b1   :  { %1107 = vmax.xlane.f32.xlu0 %v1106_v30 }
 0x6b3   :  { %v1267_v31 = vpop.f32.mrb[6].mxu0 }
 0x6b4   :  { %v3686_v32 = vpop.f32.mrb[7].mxu0  ;;  %v1271_v33 = vsel %vm638_vm2, %v1267_v31, -inf }
 0x6b5   :  { %1272 = vmax.xlane.f32.xlu0 %v1271_v33 }
 0x6bb   :  { %946 = vrot.lane.b32.xlu1 %v4552_v18, %s4251_s3 }
 0x6bf   :  { %1116 = vrot.lane.b32.xlu1 %v4550_v17, %s4252_s8 }
 0x6c3   :  { %1281 = vrot.lane.b32.xlu1 %v4550_v17, %s4251_s3 }
 0x6cb   :  { %781 = vrot.lane.b32.xlu0 %v4552_v18, %s4252_s8 }
 0x736   :  { %v773_v34 = vpop.xlane.xlu0 %772 }
 0x737   :  { %v774_v36 = vsub.f32 %v767_v19, %v773_v34  ;;  %v938_v39 = vpop.xlane.xlu1 %937 }
 0x738   :  { %v939_v40 = vsub.f32 %v932_v23, %v938_v39 }
 0x739   :  { %v775_v41 = vmul.f32 1.442695, %v774_v36 }
 0x73a   :  { %v940_v43 = vmul.f32 1.442695, %v939_v40 }
 0x73b   :  { %v947_v60 = vpop.permute.xlu1 %946 }
 0x73c   :  { %4125 = vpow2.f32 %v940_v43 }
 0x73d   :  { %4127 = vpow2.f32 %v775_v41 }
 0x73e   :  { %v1108_v44 = vpop.xlane.xlu0 %1107 }
 0x73f   :  { %v1109_v45 = vsub.f32 %v1102_v28, %v1108_v44  ;;  %v1117_v0 = vpop.permute.xlu1 %1116 }
 0x741   :  { %v1110_v49 = vmul.f32 1.442695, %v1109_v45 }
 0x742   :  { %v1273_v50 = vpop.xlane.xlu0 %1272 }
 0x743   :  { %4129 = vpow2.f32 %v1110_v49  ;;  %v1274_v52 = vsub.f32 %v1267_v31, %v1273_v50  ;;  %v1282_v4 = vpop.permute.xlu1 %1281 }
 0x745   :  { %v1275_v61 = vmul.f32 1.442695, %v1274_v52 }
 0x746   :  { %v4126_v17 = vpop.eup %4125  ;;  %v782_v62 = vpop.permute.xlu0 %781 }
 0x747   :  { %v4128_v63 = vpop.eup %4127  ;;  %4131 = vpow2.f32 %v1275_v61  ;;  %3658 = vmatpush3.msra.mxu1 %v782_v62  ;;  %v942_v18 = vsel %vm638_vm2, %v4126_v17, 0.0 }
 0x748   :  { %943 = vadd.xlane.f32.xlu0 %v942_v18  ;;  %3660 = vmatmul.mubr.msk.f32.vlgmr.msra.gmra.mrb[8].mxu1 %vm638_vm2, %v4128_v63  ;;  %v777_v1 = vsel %vm638_vm2, %v4128_v63, 0.0 }
 0x749   :  { %3667 = vmatprep.subr.mxu1 %v4242_v57  ;;  %3669 = vmatprep.mubr.msk.f32.mxu1 %vm4241_vm0, %v4242_v57 }
 0x74a   :  { %3668 = vmatpush3.msra.mxu1 %v947_v60 }
 0x74b   :  { %3677 = vmatprep.subr.mxu1 %v4242_v57 }
 0x74c   :  { %778 = vadd.xlane.f32.xlu0 %v777_v1  ;;  %3670 = vmatmul.mubr.msk.f32.vlgmr.msra.gmra.mrb[10].mxu1 %vm638_vm2, %v4126_v17 }
 0x74d   :  { %v4130_v2 = vpop.eup %4129  ;;  %3678 = vmatpush3.msra.mxu1 %v1117_v0  ;;  %3679 = vmatprep.mubr.msk.f32.mxu1 %vm4241_vm0, %v4242_v57 }
 0x74e   :  { %3687 = vmatprep.subr.mxu1 %v4242_v57  ;;  %v1112_v3 = vsel %vm638_vm2, %v4130_v2, 0.0 }
 0x750   :  { %1113 = vadd.xlane.f32.xlu0 %v1112_v3  ;;  %3680 = vmatmul.mubr.msk.f32.vlgmr.msra.gmra.mrb[12].mxu1 %vm638_vm2, %v4130_v2 }
 0x751   :  { %v4132_v5 = vpop.eup %4131  ;;  %3688 = vmatpush3.msra.mxu1 %v1282_v4  ;;  %3689 = vmatprep.mubr.msk.f32.mxu1 %vm4241_vm0, %v4242_v57 }
 0x752   :  { %v1277_v6 = vsel %vm638_vm2, %v4132_v5, 0.0  ;;  %3934 = vmatprep.subr.bf16.mxu1 %v3933_v10 }
 0x753   :  { %1278 = vadd.xlane.f32.xlu1 %v1277_v6 }
 0x754   :  { %3690 = vmatmul.mubr.msk.f32.vlgmr.msra.gmra.mrb[14].mxu1 %vm638_vm2, %v4132_v5 }
 0x755   :  { %3936 = vmatpush3.bf16.msra.mxu1 %v3933_v10 }
 0x756   :  { %3938 = vmatprep.subr.bf16.mxu1 %v3937_v13 }
 0x759   :  { %3940 = vmatpush3.bf16.msra.mxu1 %v3937_v13  ;;  %v1519_v13 = vld [vmem:[%s4335_s12 + $0x10] sm:$0xff] }
 0x7d5   :  { %v944_v7 = vpop.xlane.xlu0 %943 }
 0x7d6   :  { %4133 = vrcp.f32 %v944_v7 }
 0x7d9   :  { %v779_v32 = vpop.xlane.xlu0 %778 }
 0x7dd   :  { %v1114_v33 = vpop.xlane.xlu0 %1113 }
 0x7e0   :  { %v1279_v14 = vpop.xlane.xlu1 %1278  ;;  %v4134_v19 = vpop.eup %4133 }
 0x7e1   :  { %4135 = vrcp.f32 %v1279_v14  ;;  %v1520_v14 = vld [vmem:[%s4335_s12 + $0x18] sm:$0xff] }
 0x7e2   :  { %4137 = vrcp.f32 %v779_v32 }
 0x7e3   :  { %4139 = vrcp.f32 %v1114_v33 }
 0x7eb   :  { %v4136_v28 = vpop.eup %4135 }
 0x7ec   :  { %v4138_v34 = vpop.eup %4137 }
 0x7ed   :  { %v4140_v41 = vpop.eup %4139 }
 0x81b   :  { %v853_v15 = vpop.f32.mrb[8].mxu1 }
 0x81c   :  { %v3661_v16 = vpop.f32.mrb[9].mxu1  ;;  %v857_v36 = vmul.f32 %v4138_v34, %v853_v15  ;;  %v3945_v15 = vpack.c.bf16 %v1520_v14, %v1519_v13  ;;  %v1634_v13 = vld [vmem:[%s5041_s30 + $0x38] sm:$0xff] }
 0x81d   :  { %v1746_v16 = vld [vmem:[%s5040_s19 + $0x8] sm:$0xff] }
 0x81f   :  { %v1018_v20 = vpop.f32.mrb[10].mxu1 }
 0x820   :  { %v1022_v23 = vmul.f32 %v4134_v19, %v1018_v20  ;;  %v3671_v24 = vpop.f32.mrb[11].mxu1  ;;  %v1748_v19 = vld [vmem:[%s5040_s19 + $0x18] sm:$0xff] }
 0x821   :  { %v3981_v20 = vpack.c.bf16 %v1748_v19, %v1746_v16  ;;  %v1628_v24 = vld [vmem:[%s5041_s30 + $0x8] sm:$0xff] }
 0x822   :  { %1024 = vrot.lane.b32.xlu0 %v1022_v23, %s4253_s14  ;;  %v1627_v23 = vld [vmem:[%s5041_s30] sm:$0xff]  ;;  %v1636_v16 = vld [vmem:[%s5041_s30 + $0x48] sm:$0xff] }
 0x823   :  { %v1188_v25 = vpop.f32.mrb[12].mxu1 }
 0x824   :  { %v3681_v27 = vpop.f32.mrb[13].mxu1  ;;  %v1192_v43 = vmul.f32 %v4140_v41, %v1188_v25  ;;  %v3949_v25 = vpack.c.bf16 %v1628_v24, %v1627_v23  ;;  %v1638_v23 = vld [vmem:[%s5041_s30 + $0x58] sm:$0xff]  ;;  %v1639_v24 = vld [vmem:[%s5041_s30 + $0x60] sm:$0xff] }
 0x826   :  { %3950 = vmatprep.subr.bf16.mxu0 %v3949_v25 }
 0x827   :  { %v1353_v29 = vpop.f32.mrb[14].mxu1  ;;  %3952 = vmatpush3.bf16.msra.mxu0 %v3949_v25 }
 0x828   :  { %v1357_v30 = vmul.f32 %v4136_v28, %v1353_v29  ;;  %v3691_v31 = vpop.f32.mrb[15].mxu1 }
 0x829   :  { %v390_v31 = vrot.slane %v4524_v48, %v4529_v51 }
 0x82a   :  { %1359 = vrot.lane.b32.xlu1 %v1357_v30, %s4253_s14 }
 0x82b   :  { %v465_v33 = vadd.f32 %v4531_v54, %v390_v31 }
 0x82d   :  { %v4712_v34 = vrot.slane %v465_v33, %v4521_v46  ;;  %v4716_v41 = vrot.slane %v465_v33, %v4529_v51 }
 0x82f   :  { %v1503_v48 = vadd.f32 1.0, %v4712_v34 }
 0x894   :  { %v1025_v39 = vpop.permute.xlu0 %1024 }
 0x895   :  { %v1027_v40 = vsel %vm641_vm3, %v857_v36, %v1025_v39  ;;  %v3439_v39 = vld [vmem:[%s5042_s6] ss:$0 sm:$0xff] }
 0x896   :  { %3700 = vmatprep.mubr.msk.f32.mxu1 %vm286_vm1, %v1027_v40 }
 0x89c   :  { %v1360_v44 = vpop.permute.xlu1 %1359 }
 0x89d   :  { %v1362_v45 = vsel %vm641_vm3, %v1192_v43, %v1360_v44 }
 0x89e   :  { %3701 = vmatmul.mubr.msk.f32.vlgmr.msra.gmra.mrb[16].mxu1 %vm286_vm1, %v1362_v45 }
 0x971   :  { %v3702_v49 = vpop.f32.mrb[16].mxu1 }
 0x972   :  { %v1439_v50 = vpop.f32.mrb[17].mxu1 }
 0x973   :  { %1450 = vrot.lane.b32.xlu1 %v1439_v50, %s4252_s8  ;;  %v1504_v50 = vadd.f32 1.0, %v4716_v41 }
 0x977   :  { %1452 = vrot.lane.b32.xlu1 %v3702_v49, %s4252_s8 }
 0x9e5   :  { %v1451_v52 = vpop.permute.xlu1 %1450 }
 0x9e6   :  { %v1456_v60 = vmul.f32 %v1451_v52, %v4534_v55 }
 0x9e8   :  { %1460 = vrot.lane.b32.xlu0 %v1456_v60, %s4252_s8 }
 0x9e9   :  { %v1453_v61 = vpop.permute.xlu1 %1452 }
 0x9ea   :  { %v1457_v17 = vmul.f32 %v1453_v61, %v4537_v56  ;;  %v1745_v61 = vld [vmem:[%s5040_s19] sm:$0xff] }
 0x9ec   :  { %1462 = vrot.lane.b32.xlu1 %v1457_v17, %s4252_s8  ;;  %v1747_v17 = vld [vmem:[%s5040_s19 + $0x10] sm:$0xff] }
 0xa5a   :  { %v1461_v62 = vpop.permute.xlu0 %1460 }
 0xa5b   :  { %v4683_v63 = vadd.f32 %v1461_v62, %v4485_v58  ;;  %v1750_v62 = vld [vmem:[%s5040_s19 + $0x28] sm:$0xff] }
 0xa5d   :  { %v1469_v18 = vsel %vm286_vm1, %v4683_v63, 0.0 }
 0xa5e   :  { %1470 = vadd.xlane.f32.xlu0 %v1469_v18  ;;  %v1463_v0 = vpop.permute.xlu1 %1462  ;;  %v1752_v18 = vld [vmem:[%s5040_s19 + $0x38] sm:$0xff] }
 0xa5f   :  { %v4688_v1 = vadd.f32 %v1463_v0, %v4488_v59 }
 0xa61   :  { %v1472_v2 = vsel %vm286_vm1, %v4688_v1, 0.0 }
 0xa62   :  { %1473 = vadd.xlane.f32.xlu1 %v1472_v2 }
 0xa73   :  { %1511 = vrot.lane.b32.xlu1 %v4537_v56, %s4245_s9  ;;  %v1517_v56 = vld [vmem:[%s4335_s12] sm:$0xff]  ;;  %s5043_s12 = sld [smem:[#allocation8_spill]] }
 0xa74   :  { %v3941_v12 = vpack.c.bf16 %v1518_v11, %v1517_v56  ;;  %v1632_v56 = vld [vmem:[%s5041_s30 + $0x28] sm:$0xff] }
 0xa76   :  { %3942 = vmatprep.subr.bf16.mxu1 %v3941_v12 }
 0xa77   :  { %3944 = vmatpush3.bf16.msra.mxu1 %v3941_v12  ;;  %v1633_v12 = vld [vmem:[%s5041_s30 + $0x30] sm:$0xff] }
 0xa78   :  { %3946 = vmatprep.subr.bf16.mxu1 %v3945_v15  ;;  %v3961_v14 = vpack.c.bf16 %v1634_v13, %v1633_v12 }
 0xa79   :  { %v3440_v31 = vld [vmem:[%s5043_s12] ss:$0 sm:$0xff] }
 0xa7b   :  { %3948 = vmatpush3.bf16.msra.mxu1 %v3945_v15  ;;  %v1635_v15 = vld [vmem:[%s5041_s30 + $0x40] sm:$0xff] }
 0xa7c   :  { %3982 = vmatprep.subr.bf16.mxu1 %v3981_v20  ;;  %v3965_v19 = vpack.c.bf16 %v1636_v16, %v1635_v15  ;;  %v1637_v20 = vld [vmem:[%s5041_s30 + $0x50] sm:$0xff] }
 0xa7d   :  { %v3969_v25 = vpack.c.bf16 %v1638_v23, %v1637_v20 }
 0xaeb   :  { %v1471_v3 = vpop.xlane.xlu0 %1470 }
 0xaec   :  { %v1475_v58 = vmul.f32 0.03125, %v1471_v3  ;;  %v3983_v3 = vpack.c.bf16 %v1747_v17, %v1745_v61 }
 0xaee   :  { %v1477_v4 = vsub.f32 %v4683_v63, %v1475_v58 }
 0xaef   :  { %v1474_v5 = vpop.xlane.xlu1 %1473 }
 0xaf0   :  { %v1476_v6 = vmul.f32 0.03125, %v1474_v5  ;;  %v1479_v7 = vmul.f32 %v1477_v4, %v1477_v4  ;;  %v1749_v5 = vld [vmem:[%s5040_s19 + $0x20] sm:$0xff] }
 0xaf2   :  { %v1478_v59 = vsub.f32 %v4688_v1, %v1476_v6  ;;  %v1481_v8 = vsel %vm286_vm1, %v1479_v7, 0.0  ;;  %v1751_v6 = vld [vmem:[%s5040_s19 + $0x30] sm:$0xff] }
 0xaf3   :  { %1482 = vadd.xlane.f32.xlu0 %v1481_v8  ;;  %v1512_v2 = vpop.permute.xlu1 %1511  ;;  %v3987_v7 = vpack.c.bf16 %v1751_v6, %v1749_v5  ;;  %v1630_v8 = vld [vmem:[%s5041_s30 + $0x18] sm:$0xff] }
 0xaf4   :  { %v1480_v9 = vmul.f32 %v1478_v59, %v1478_v59 }
 0xaf6   :  { %v1484_v10 = vsel %vm286_vm1, %v1480_v9, 0.0 }
 0xaf7   :  { %1485 = vadd.xlane.f32.xlu0 %v1484_v10  ;;  %v1631_v10 = vld [vmem:[%s5041_s30 + $0x20] sm:$0xff] }
 0xaf8   :  { %v3957_v11 = vpack.c.bf16 %v1632_v56, %v1631_v10 }
 0xb0d   :  { %1509 = vrot.lane.b32.xlu0 %v4534_v55, %s4245_s9 }
 0xb80   :  { %v1483_v55 = vpop.xlane.xlu0 %1482 }
 0xb81   :  { %v1487_v27 = vmul.f32 0.03125, %v1483_v55  ;;  %v1640_v55 = vld [vmem:[%s5041_s30 + $0x68] sm:$0xff] }
 0xb83   :  { %v1489_v28 = vadd.f32 1e-05, %v1487_v27  ;;  %v3973_v27 = vpack.c.bf16 %v1640_v55, %v1639_v24 }
 0xb84   :  { %v1486_v29 = vpop.xlane.xlu0 %1485 }
 0xb85   :  { %4141 = vrsqrt.f32 %v1489_v28  ;;  %v1488_v30 = vmul.f32 0.03125, %v1486_v29  ;;  %v1641_v28 = vld [vmem:[%s5041_s30 + $0x70] sm:$0xff]  ;;  %v1642_v29 = vld [vmem:[%s5041_s30 + $0x78] sm:$0xff] }
 0xb87   :  { %v1490_v32 = vadd.f32 1e-05, %v1488_v30  ;;  %v3977_v30 = vpack.c.bf16 %v1642_v29, %v1641_v28 }
 0xb88   :  { %v1510_v54 = vpop.permute.xlu0 %1509 }
 0xb89   :  { %4143 = vrsqrt.f32 %v1490_v32 }
 0xb8f   :  { %v4142_v36 = vpop.eup %4141 }
 0xb90   :  { %v1493_v40 = vmul.f32 %v4142_v36, %v1477_v4  ;;  %v3985_v4 = vpack.c.bf16 %v1752_v18, %v1750_v62 }
 0xb92   :  { %v1501_v43 = vmul.f32 %v3439_v39, %v1493_v40 }
 0xb93   :  { %v4144_v44 = vpop.eup %4143 }
 0xb94   :  { %v1494_v45 = vmul.f32 %v4144_v44, %v1478_v59  ;;  %v1505_v49 = vmul.f32 %v1503_v48, %v1501_v43  ;;  %v1629_v59 = vld [vmem:[%s5041_s30 + $0x10] sm:$0xff]  ;;  %v1753_v43 = vld [vmem:[%s5044_s22] sm:$0x3] }
 0xb95   :  { %v3953_v9 = vpack.c.bf16 %v1630_v8, %v1629_v59  ;;  %v3443_v8 = vld [vmem:[%s5045_s23] ss:$0 sm:$0xff] }
 0xb96   :  { %v1502_v52 = vmul.f32 %v3439_v39, %v1494_v45  ;;  %v1515_v60 = vadd.f32 %v1510_v54, %v1505_v49  ;;  %v1762_v49 = vrot.slane %v1753_v43, %v4529_v51 }
 0xb97   :  { %3954 = vmatprep.subr.bf16.mxu0 %v3953_v9 }
 0xb98   :  { %v1506_v0 = vmul.f32 %v1504_v50, %v1502_v52  ;;  %3711 = vmatprep.mubr.msk.f32.mxu1 %vm286_vm1, %v1515_v60  ;;  %3956 = vmatpush3.bf16.msra.mxu0 %v3953_v9 }
 0xb99   :  { %3958 = vmatprep.subr.bf16.mxu0 %v3957_v11 }
 0xb9a   :  { %v1516_v58 = vadd.f32 %v1512_v2, %v1506_v0 }
 0xb9c   :  { %3712 = vmatmul.mubr.msk.f32.vlgmr.msra.gmra.mrb[18].mxu1 %vm286_vm1, %v1516_v58  ;;  %3960 = vmatpush3.bf16.msra.mxu0 %v3957_v11 }
 0xb9d   :  { %3984 = vmatpush1.bf16.msra.mxu1 %v3983_v3  ;;  %1829 = vmatprep.mubr.f32.mxu1 %v4242_v57 }
 0xb9e   :  { %3986 = vmatprep.subr.bf16.mxu1 %v3985_v4  ;;  %3962 = vmatprep.subr.bf16.mxu0 %v3961_v14 }
 0xba0   :  { %3964 = vmatpush3.bf16.msra.mxu0 %v3961_v14 }
 0xba1   :  { %3988 = vmatpush1.bf16.msra.mxu1 %v3987_v7  ;;  %3966 = vmatprep.subr.bf16.mxu0 %v3965_v19 }
 0xba4   :  { %3444 = vmatmul.mubr.msk.f32.vlgmr.msra.gmra.mrb[20].mxu1 %vm286_vm1, %v4512_v38  ;;  %3968 = vmatpush3.bf16.msra.mxu0 %v3965_v19 }
 0xba5   :  { %3970 = vmatprep.subr.bf16.mxu0 %v3969_v25 }
 0xba8   :  { %3972 = vmatpush3.bf16.msra.mxu0 %v3969_v25 }
 0xba9   :  { %3974 = vmatprep.subr.bf16.mxu0 %v3973_v27 }
 0xbac   :  { %3976 = vmatpush3.bf16.msra.mxu0 %v3973_v27 }
 0xbad   :  { %3978 = vmatprep.subr.bf16.mxu0 %v3977_v30 }
 0xbb0   :  { %3980 = vmatpush3.bf16.msra.mxu0 %v3977_v30 }
 0xbb1   :  { %3780 = vmatprep.subr.mxu0 %v4242_v57 }
 0xc6f   :  { %v3713_v32 = vpop.f32.mrb[18].mxu1 }
 0xc70   :  { %v1606_v33 = vadd.f32 %v3713_v32, %v3440_v31  ;;  %v1600_v36 = vpop.f32.mrb[19].mxu1 }
 0xc71   :  { %v1601_v39 = vadd.f32 %v3440_v31, %v1600_v36 }
 0xc72   :  { %v1612_v40 = vmul.f32 0.044715, %v1606_v33  ;;  %v1610_v6 = vmul.f32 0.5, %v1606_v33 }
 0xc73   :  { %v1611_v48 = vmul.f32 0.044715, %v1601_v39  ;;  %v1609_v4 = vmul.f32 0.5, %v1601_v39 }
 0xc74   :  { %v1614_v44 = vmul.f32 %v1612_v40, %v1606_v33 }
 0xc75   :  { %v1613_v45 = vmul.f32 %v1611_v48, %v1601_v39  ;;  %v1901_v48 = vld [vmem:[%s5046_s26] sm:$0xff] }
 0xc76   :  { %v1616_v54 = vmul.f32 %v1614_v44, %v1606_v33  ;;  %v1902_v44 = vld [vmem:[%s5046_s26 + $0x8] sm:$0xff] }
 0xc77   :  { %v1831_v50 = vpop.f32.mrb[20].mxu1  ;;  %v1615_v52 = vmul.f32 %v1613_v45, %v1601_v39  ;;  %v3989_v45 = vpack.c.bf16 %v1902_v44, %v1901_v48 }
 0xc78   :  { %v1618_v60 = vadd.f32 %v1616_v54, %v1606_v33  ;;  %v1833_v61 = vpop.f32.mrb[21].mxu1  ;;  %v1904_v54 = vld [vmem:[%s5046_s26 + $0x18] sm:$0xff] }
 0xc79   :  { %v4749_v17 = vadd.f32 %v1833_v61, %v1762_v49  ;;  %v1617_v62 = vadd.f32 %v1615_v52, %v1601_v39  ;;  %3990 = vmatprep.subr.bf16.mxu1 %v3989_v45  ;;  %v1903_v49 = vld [vmem:[%s5046_s26 + $0x10] sm:$0xff] }
 0xc7a   :  { %v1620_v18 = vmul.f32 0.7978846, %v1618_v60  ;;  %3992 = vmatpush3.bf16.msra.mxu1 %v3989_v45 }
 0xc7b   :  { %v1619_v0 = vmul.f32 0.7978846, %v1617_v62 }
 0xc7c   :  { %4145 = vtanh.f32 %v1620_v18 }
 0xc7d   :  { %4147 = vtanh.f32 %v1619_v0 }
 0xc86   :  { %v4146_v2 = vpop.eup %4145 }
 0xc87   :  { %v4148_v3 = vpop.eup %4147  ;;  %v1624_v58 = vadd.f32 1.0, %v4146_v2 }
 0xc88   :  { %v1623_v5 = vadd.f32 1.0, %v4148_v3  ;;  %v3445_v3 = vld [vmem:[%s5047_s28] ss:$0 sm:$0xff] }
 0xc89   :  { %v1626_v59 = vmul.f32 %v1624_v58, %v1610_v6 }
 0xc8a   :  { %v1625_v7 = vmul.f32 %v1623_v5, %v1609_v4 }
 0xc8c   :  { %3746 = vmatprep.mubr.f32.mxu0 %v1625_v7 }
 0xc8d   :  { %3747 = vmatmul.mubr.f32.vlgmr.msra.gmra.mrb[8].mxu0 %v1626_v59 }
 0xc8e   :  { %3782 = vmatprep.mubr.msk.f32.mxu0 %vm4241_vm0, %v4242_v57 }
 0xd60   :  { %v3748_v9 = vpop.f32.mrb[8].mxu0 }
 0xd61   :  { %v1716_v10 = vpop.f32.mrb[9].mxu0  ;;  %v1722_v11 = vadd.f32 %v3748_v9, %v3443_v8 }
 0xd62   :  { %v1717_v56 = vadd.f32 %v3443_v8, %v1716_v10 }
 0xd64   :  { %1727 = vrot.lane.b32.xlu1 %v1717_v56, %s4245_s9 }
 0xd68   :  { %1729 = vrot.lane.b32.xlu1 %v1722_v11, %s4245_s9 }
 0xdd6   :  { %v1728_v12 = vpop.permute.xlu1 %1727 }
 0xdd7   :  { %v1733_v13 = vmul.f32 %v1728_v12, %v4712_v34 }
 0xdd9   :  { %1737 = vrot.lane.b32.xlu0 %v1733_v13, %s4243_s0 }
 0xdda   :  { %v1730_v14 = vpop.permute.xlu1 %1729 }
 0xddb   :  { %v1734_v15 = vmul.f32 %v1730_v14, %v4716_v41  ;;  %v1758_v41 = vrot.slane %v1753_v43, %v4521_v46 }
 0xddd   :  { %1739 = vrot.lane.b32.xlu1 %v1734_v15, %s4243_s0  ;;  %v1832_v25 = vadd.f32 %v1831_v50, %v1758_v41  ;;  %v3993_v50 = vpack.c.bf16 %v1904_v54, %v1903_v49 }
 0xddf   :  { %v4772_v55 = vrot.slane %v1832_v25, %v4529_v51  ;;  %v4781_v40 = vrot.slane %v1832_v25, %v4521_v46  ;;  %3994 = vmatprep.subr.bf16.mxu1 %v3993_v50 }
 0xde0   :  { %3996 = vmatpush3.bf16.msra.mxu1 %v3993_v50 }
 0xde1   :  { %v1887_v43 = vadd.f32 1.0, %v4781_v40  ;;  %3760 = vmatprep.subr.mxu1 %v4242_v57 }
 0xe4b   :  { %v1738_v16 = vpop.permute.xlu0 %1737 }
 0xe4c   :  { %v4761_v19 = vadd.f32 %v1738_v16, %v4683_v63  ;;  %v1888_v63 = vadd.f32 1.0, %v4772_v55 }
 0xe4e   :  { %v1853_v20 = vsel %vm286_vm1, %v4761_v19, 0.0 }
 0xe4f   :  { %1854 = vadd.xlane.f32.xlu0 %v1853_v20  ;;  %v1740_v23 = vpop.permute.xlu1 %1739 }
 0xe50   :  { %v4766_v24 = vadd.f32 %v1740_v23, %v4688_v1 }
 0xe52   :  { %v1856_v34 = vsel %vm286_vm1, %v4766_v24, 0.0 }
 0xe53   :  { %1857 = vadd.xlane.f32.xlu1 %v1856_v34 }
 0xe64   :  { %1893 = vrot.lane.b32.xlu1 %v1888_v63, %s4243_s0 }
 0xedc   :  { %v1855_v27 = vpop.xlane.xlu0 %1854 }
 0xedd   :  { %v1859_v28 = vmul.f32 0.03125, %v1855_v27 }
 0xedf   :  { %v1861_v1 = vsub.f32 %v4761_v19, %v1859_v28 }
 0xee0   :  { %v1858_v29 = vpop.xlane.xlu1 %1857 }
 0xee1   :  { %v1860_v30 = vmul.f32 0.03125, %v1858_v29  ;;  %v1863_v31 = vmul.f32 %v1861_v1, %v1861_v1 }
 0xee3   :  { %v1862_v32 = vsub.f32 %v4766_v24, %v1860_v30  ;;  %v1865_v33 = vsel %vm286_vm1, %v1863_v31, 0.0 }
 0xee4   :  { %1866 = vadd.xlane.f32.xlu0 %v1865_v33  ;;  %v1894_v10 = vpop.permute.xlu1 %1893 }
 0xee5   :  { %v1864_v36 = vmul.f32 %v1862_v32, %v1862_v32 }
 0xee7   :  { %v1868_v39 = vsel %vm286_vm1, %v1864_v36, 0.0 }
 0xee8   :  { %1869 = vadd.xlane.f32.xlu0 %v1868_v39 }
 0xefe   :  { %1891 = vrot.lane.b32.xlu0 %v1887_v43, %s4243_s0 }
 0xf71   :  { %v1867_v52 = vpop.xlane.xlu0 %1866 }
 0xf72   :  { %v1871_v60 = vmul.f32 0.03125, %v1867_v52 }
 0xf74   :  { %v1873_v61 = vadd.f32 1e-05, %v1871_v60 }
 0xf75   :  { %v1870_v62 = vpop.xlane.xlu0 %1869 }
 0xf76   :  { %4149 = vrsqrt.f32 %v1873_v61  ;;  %v1872_v18 = vmul.f32 0.03125, %v1870_v62 }
 0xf78   :  { %v1874_v0 = vadd.f32 1e-05, %v1872_v18 }
 0xf79   :  { %v1892_v6 = vpop.permute.xlu0 %1891 }
 0xf7a   :  { %4151 = vrsqrt.f32 %v1874_v0 }
 0xf80   :  { %v4150_v2 = vpop.eup %4149 }
 0xf81   :  { %v1877_v58 = vmul.f32 %v4150_v2, %v1861_v1 }
 0xf83   :  { %v1885_v4 = vmul.f32 %v3445_v3, %v1877_v58 }
 0xf84   :  { %v4152_v5 = vpop.eup %4151 }
 0xf85   :  { %v1878_v7 = vmul.f32 %v4152_v5, %v1862_v32  ;;  %v1897_v59 = vmul.f32 %v1892_v6, %v1885_v4 }
 0xf87   :  { %v1886_v8 = vmul.f32 %v3445_v3, %v1878_v7  ;;  %v1899_v9 = vadd.f32 %v1897_v59, %v4781_v40 }
 0xf89   :  { %v1898_v56 = vmul.f32 %v1894_v10, %v1886_v8  ;;  %3757 = vmatprep.mubr.msk.f32.mxu1 %vm286_vm1, %v1899_v9 }
 0xf8b   :  { %v1900_v11 = vadd.f32 %v1898_v56, %v4772_v55 }
 0xf8d   :  { %3758 = vmatmul.mubr.msk.f32.vlgmr.msra.gmra.mrb[22].mxu1 %vm286_vm1, %v1900_v11 }
 0xf8e   :  { %3762 = vmatprep.mubr.msk.f32.mxu1 %vm4241_vm0, %v4242_v57 }
0x1060   :  { %v4797_v12 = vpop.f32.mrb[22].mxu1 }
0x1061   :  { %v4799_v13 = vpop.f32.mrb[23].mxu1  ;;  %v1989_v25 = vsub.f32 0.0, %v4797_v12  ;;  %v2019_v62 = vmul.f32 %v4797_v12, %v4600_v47  ;;  %v1987_v3 = vmul.f32 %v4797_v12, %v4570_v22 }
0x1062   :  { %v1988_v14 = vsub.f32 0.0, %v4799_v13  ;;  %v2018_v63 = vmul.f32 %v4799_v13, %v4594_v37  ;;  %v1986_v33 = vmul.f32 %v4799_v13, %v4559_v21 }
0x1064   :  { %2020 = vrot.lane.b32.xlu1 %v1988_v14, %s4244_s5 }
0x1068   :  { %2026 = vrot.lane.b32.xlu1 %v4799_v13, %s4246_s21 }
0x106c   :  { %1992 = vrot.lane.b32.xlu1 %v1988_v14, %s4248_s29 }
0x10d6   :  { %v2021_v15 = vpop.permute.xlu1 %2020 }
0x10da   :  { %v2027_v16 = vpop.permute.xlu1 %2026 }
0x10db   :  { %v2032_v20 = vsel %vm638_vm2, %v2021_v15, %v2027_v16 }
0x10dc   :  { %v2034_v23 = vsel %vm641_vm3, %v2032_v20, %v2021_v15 }
0x10dd   :  { %v2036_v34 = vsel %vm644_vm4, %v2034_v23, %v2027_v16 }
0x10de   :  { %v2038_v41 = vmul.f32 %v2036_v34, %v4579_v26  ;;  %v1993_v29 = vpop.permute.xlu1 %1992 }
0x10e0   :  { %2042 = vrot.lane.b32.xlu0 %v2038_v41, %s4245_s9 }
0x10e4   :  { %2000 = vrot.lane.b32.xlu0 %v4799_v13, %s4247_s25 }
0x10e8   :  { %2022 = vrot.lane.b32.xlu0 %v1989_v25, %s4244_s5  ;;  %s5057_s5 = sld [smem:[#allocation21_spill]] }
0x10ec   :  { %1994 = vrot.lane.b32.xlu0 %v1989_v25, %s4248_s29 }
0x1152   :  { %v2043_v27 = vpop.permute.xlu0 %2042 }
0x1153   :  { %v2048_v28 = vadd.f32 %v2043_v27, %v2018_v63 }
0x1155   :  { %2051 = vrot.lane.b32.xlu1 %v2048_v28, %s4243_s0 }
0x1156   :  { %v2001_v1 = vpop.permute.xlu0 %2000 }
0x1157   :  { %v2006_v30 = vsel %vm638_vm2, %v1993_v29, %v2001_v1 }
0x1158   :  { %v2008_v31 = vsel %vm641_vm3, %v2006_v30, %v1993_v29 }
0x1159   :  { %2028 = vrot.lane.b32.xlu1 %v4797_v12, %s4246_s21  ;;  %v2010_v32 = vsel %vm644_vm4, %v2008_v31, %v2001_v1 }
0x115a   :  { %v2012_v37 = vmul.f32 %v2010_v32, %v4579_v26  ;;  %v2023_v48 = vpop.permute.xlu0 %2022 }
0x115c   :  { %v2014_v36 = vadd.f32 %v2012_v37, %v1986_v33 }
0x115d   :  { %2002 = vrot.lane.b32.xlu1 %v4797_v12, %s4247_s25 }
0x115e   :  { %v2016_v43 = vmul.f32 0.25, %v2014_v36  ;;  %v1995_v50 = vpop.permute.xlu0 %1994 }
0x11c7   :  { %v2052_v39 = vpop.permute.xlu1 %2051 }
0x11c8   :  { %3761 = vmatpush3.xpose.msk.msra.mxu1 %vm641_vm3, %v2052_v39 }
0x11c9   :  { %3765 = vmatprep.subr.mxu1 %v4242_v57 }
0x11cb   :  { %v2029_v44 = vpop.permute.xlu1 %2028  ;;  %3763 = vmatmul.mubr.msk.f32.vlgmr.msra.gmra.mrb[24].mxu1 %vm641_vm3, %v2016_v43 }
0x11cc   :  { %v2033_v45 = vsel %vm638_vm2, %v2023_v48, %v2029_v44  ;;  %3767 = vmatprep.mubr.msk.f32.mxu1 %vm4241_vm0, %v4242_v57 }
0x11cd   :  { %v2035_v26 = vsel %vm641_vm3, %v2033_v45, %v2023_v48 }
0x11ce   :  { %v2037_v21 = vsel %vm644_vm4, %v2035_v26, %v2029_v44 }
0x11cf   :  { %v2039_v49 = vmul.f32 %v2037_v21, %v4589_v35  ;;  %v2003_v54 = vpop.permute.xlu1 %2002 }
0x11d0   :  { %v2007_v52 = vsel %vm638_vm2, %v1995_v50, %v2003_v54 }
0x11d1   :  { %2044 = vrot.lane.b32.xlu0 %v2039_v49, %s4245_s9  ;;  %v2009_v60 = vsel %vm641_vm3, %v2007_v52, %v1995_v50 }
0x11d2   :  { %v2011_v61 = vsel %vm644_vm4, %v2009_v60, %v2003_v54  ;;  %v2720_v60 = vld [vmem:[%s5048_s1] sm:$0xff] }
0x11d3   :  { %v2013_v0 = vmul.f32 %v2011_v61, %v4589_v35  ;;  %v2721_v61 = vld [vmem:[%s5048_s1 + $0x8] sm:$0xff] }
0x11d5   :  { %2138 = vrot.lane.b32.xlu0 %v4799_v13, %s4252_s8  ;;  %v2015_v4 = vadd.f32 %v2013_v0, %v1987_v3  ;;  %v2723_v0 = vld [vmem:[%s5048_s1 + $0x18] sm:$0xff] }
0x11d7   :  { %v2017_v5 = vmul.f32 0.25, %v2015_v4 }
0x11d9   :  { %2217 = vrot.lane.b32.xlu0 %v2048_v28, %s4249_s13 }
0x11dd   :  { %2215 = vrot.lane.b32.xlu0 %v2016_v43, %s4250_s17 }
0x1243   :  { %v2045_v18 = vpop.permute.xlu0 %2044 }
0x1244   :  { %v2049_v2 = vadd.f32 %v2045_v18, %v2019_v62  ;;  %v3997_v62 = vpack.c.bf16 %v2721_v61, %v2720_v60  ;;  %v2722_v18 = vld [vmem:[%s5048_s1 + $0x10] sm:$0xff]  ;;  %v2985_v60 = vld [vmem:[%s5050_s7 + $0x8] sm:$0xff] }
0x1246   :  { %2386 = vrot.lane.b32.xlu0 %v2049_v2, %s4243_s0 }
0x1247   :  { %v2139_v58 = vpop.permute.xlu0 %2138 }
0x1248   :  { %3766 = vmatpush3.msra.mxu1 %v2139_v58 }
0x1249   :  { %3770 = vmatprep.subr.mxu1 %v4242_v57 }
0x124a   :  { %2552 = vrot.lane.b32.xlu0 %v2049_v2, %s4249_s13  ;;  %v4001_v2 = vpack.c.bf16 %v2723_v0, %v2722_v18 }
0x124b   :  { %v2218_v7 = vpop.permute.xlu0 %2217 }
0x124e   :  { %2550 = vrot.lane.b32.xlu0 %v2017_v5, %s4250_s17 }
0x124f   :  { %v2216_v59 = vpop.permute.xlu0 %2215 }
0x129e   :  { %v2124_v47 = vpop.f32.mrb[24].mxu1 }
0x129f   :  { %v3764_v6 = vpop.f32.mrb[25].mxu1  ;;  %v2128_v35 = vsel %vm638_vm2, %v2124_v47, -inf }
0x12a0   :  { %2129 = vmax.xlane.f32.xlu1 %v2128_v35 }
0x12b8   :  { %v2387_v8 = vpop.permute.xlu0 %2386 }
0x12b9   :  { %3781 = vmatpush3.xpose.msk.msra.mxu0 %vm641_vm3, %v2387_v8 }
0x12ba   :  { %3790 = vmatprep.subr.mxu0 %v4242_v57 }
0x12bc   :  { %3783 = vmatmul.mubr.msk.f32.vlgmr.msra.gmra.mrb[10].mxu0 %vm641_vm3, %v2017_v5  ;;  %v2553_v22 = vpop.permute.xlu0 %2552 }
0x12bd   :  { %3791 = vmatpush3.xpose.msk.msra.mxu0 %vm641_vm3, %v2553_v22  ;;  %3792 = vmatprep.mubr.msk.f32.mxu0 %vm4241_vm0, %v4242_v57 }
0x12be   :  { %3998 = vmatprep.subr.bf16.mxu0 %v3997_v62 }
0x12c0   :  { %v2551_v9 = vpop.permute.xlu0 %2550 }
0x12c1   :  { %3793 = vmatmul.mubr.msk.f32.vlgmr.msra.gmra.mrb[12].mxu0 %vm641_vm3, %v2551_v9 }
0x12c2   :  { %4000 = vmatpush3.bf16.msra.mxu0 %v3997_v62 }
0x12c3   :  { %4002 = vmatprep.subr.bf16.mxu0 %v4001_v2 }
0x12c6   :  { %4004 = vmatpush3.bf16.msra.mxu0 %v4001_v2 }
0x132d   :  { %v2130_v10 = vpop.xlane.xlu1 %2129 }
0x132e   :  { %v2131_v56 = vsub.f32 %v2124_v47, %v2130_v10 }
0x1330   :  { %v2132_v11 = vmul.f32 1.442695, %v2131_v56 }
0x1332   :  { %4153 = vpow2.f32 %v2132_v11 }
0x133c   :  { %v4154_v14 = vpop.eup %4153 }
0x133d   :  { %3768 = vmatmul.mubr.msk.f32.vlgmr.msra.gmra.mrb[26].mxu1 %vm638_vm2, %v4154_v14  ;;  %v2134_v54 = vsel %vm638_vm2, %v4154_v14, 0.0 }
0x133e   :  { %3771 = vmatpush3.xpose.msk.msra.mxu1 %vm641_vm3, %v2218_v7  ;;  %3772 = vmatprep.mubr.msk.f32.mxu1 %vm4241_vm0, %v4242_v57 }
0x133f   :  { %3775 = vmatprep.subr.mxu1 %v4242_v57 }
0x1341   :  { %3773 = vmatmul.mubr.msk.f32.vlgmr.msra.gmra.mrb[28].mxu1 %vm641_vm3, %v2216_v59 }
0x1342   :  { %3777 = vmatprep.mubr.msk.f32.mxu1 %vm4241_vm0, %v4242_v57 }
0x138f   :  { %v2459_v15 = vpop.f32.mrb[10].mxu0 }
0x1390   :  { %v3784_v16 = vpop.f32.mrb[11].mxu0  ;;  %v2463_v20 = vsel %vm638_vm2, %v2459_v15, -inf }
0x1391   :  { %2464 = vmax.xlane.f32.xlu1 %v2463_v20 }
0x1394   :  { %v2624_v23 = vpop.f32.mrb[12].mxu0 }
0x1395   :  { %v3794_v34 = vpop.f32.mrb[13].mxu0  ;;  %v2628_v41 = vsel %vm638_vm2, %v2624_v23, -inf }
0x1396   :  { %2629 = vmax.xlane.f32.xlu1 %v2628_v41 }
0x13a7   :  { %2303 = vrot.lane.b32.xlu1 %v4799_v13, %s4251_s3 }
0x13ab   :  { %2638 = vrot.lane.b32.xlu1 %v4797_v12, %s4251_s3 }
0x1410   :  { %v4877_v25 = vpop.f32.mrb[26].mxu1 }
0x1411   :  { %v3769_v63 = vpop.f32.mrb[27].mxu1 }
0x1414   :  { %v2289_v27 = vpop.f32.mrb[28].mxu1 }
0x1415   :  { %v3774_v28 = vpop.f32.mrb[29].mxu1  ;;  %v2293_v1 = vsel %vm638_vm2, %v2289_v27, -inf }
0x1416   :  { %2294 = vmax.xlane.f32.xlu0 %v2293_v1 }
0x141e   :  { %v2465_v29 = vpop.xlane.xlu1 %2464 }
0x141f   :  { %v2466_v30 = vsub.f32 %v2459_v15, %v2465_v29 }
0x1421   :  { %v2467_v44 = vmul.f32 1.442695, %v2466_v30 }
0x1423   :  { %v2630_v31 = vpop.xlane.xlu1 %2629 }
0x1424   :  { %v2631_v13 = vsub.f32 %v2624_v23, %v2630_v31 }
0x1426   :  { %v2632_v37 = vmul.f32 1.442695, %v2631_v13 }
0x1427   :  { %v2304_v32 = vpop.permute.xlu1 %2303 }
0x1428   :  { %3776 = vmatpush3.msra.mxu1 %v2304_v32  ;;  %4155 = vpow2.f32 %v2632_v37 }
0x1429   :  { %3785 = vmatprep.subr.mxu1 %v4242_v57 }
0x142b   :  { %v2639_v49 = vpop.permute.xlu1 %2638 }
0x142c   :  { %2473 = vrot.lane.b32.xlu0 %v4797_v12, %s4252_s8 }
0x1432   :  { %v4156_v33 = vpop.eup %4155 }
0x1433   :  { %v2634_v36 = vsel %vm638_vm2, %v4156_v33, 0.0 }
0x144b   :  { %2635 = vadd.xlane.f32.xlu0 %v2634_v36 }
0x14a3   :  { %v2295_v39 = vpop.xlane.xlu0 %2294 }
0x14a4   :  { %v2296_v43 = vsub.f32 %v2289_v27, %v2295_v39 }
0x14a6   :  { %v2297_v48 = vmul.f32 1.442695, %v2296_v43 }
0x14a7   :  { %v2474_v26 = vpop.permute.xlu0 %2473 }
0x14a8   :  { %4157 = vpow2.f32 %v2297_v48 }
0x14a9   :  { %4159 = vpow2.f32 %v2467_v44 }
0x14b2   :  { %v4158_v45 = vpop.eup %4157 }
0x14b3   :  { %3778 = vmatmul.mubr.msk.f32.vlgmr.msra.gmra.mrb[30].mxu1 %vm638_vm2, %v4158_v45  ;;  %v2299_v21 = vsel %vm638_vm2, %v4158_v45, 0.0  ;;  %v4160_v12 = vpop.eup %4159 }
0x14b4   :  { %3786 = vmatpush3.msra.mxu1 %v2474_v26  ;;  %2300 = vadd.xlane.f32.xlu1 %v2299_v21  ;;  %v2469_v50 = vsel %vm638_vm2, %v4160_v12, 0.0  ;;  %v2875_v21 = vld [vmem:[%s5049_s2 + $0x8] sm:$0xff] }
0x14b5   :  { %3787 = vmatprep.mubr.msk.f32.mxu1 %vm4241_vm0, %v4242_v57  ;;  %3795 = vmatprep.subr.mxu1 %v4242_v57 }
0x14b7   :  { %3788 = vmatmul.mubr.msk.f32.vlgmr.msra.gmra.mrb[32].mxu1 %vm638_vm2, %v4160_v12 }
0x14b8   :  { %3796 = vmatpush3.msra.mxu1 %v2639_v49  ;;  %2135 = vadd.xlane.f32.xlu1 %v2134_v54  ;;  %v2876_v49 = vld [vmem:[%s5049_s2 + $0x10] sm:$0xff]  ;;  %v2877_v54 = vld [vmem:[%s5049_s2 + $0x18] sm:$0xff] }
0x14b9   :  { %3797 = vmatprep.mubr.msk.f32.mxu1 %vm4241_vm0, %v4242_v57 }
0x14bb   :  { %3798 = vmatmul.mubr.msk.f32.vlgmr.msra.gmra.mrb[34].mxu1 %vm638_vm2, %v4156_v33 }
0x14bc   :  { %2470 = vadd.xlane.f32.xlu1 %v2469_v50  ;;  %v4009_v50 = vpack.c.bf16 %v2877_v54, %v2876_v49 }
0x14d8   :  { %v2636_v3 = vpop.xlane.xlu0 %2635 }
0x1541   :  { %v2301_v52 = vpop.xlane.xlu1 %2300 }
0x1542   :  { %4161 = vrcp.f32 %v2301_v52  ;;  %v2984_v52 = vld [vmem:[%s5050_s7] sm:$0xff] }
0x1543   :  { %4163 = vrcp.f32 %v2636_v3  ;;  %v4013_v61 = vpack.c.bf16 %v2985_v60, %v2984_v52 }
0x1545   :  { %v2136_v9 = vpop.xlane.xlu1 %2135  ;;  %4014 = vmatprep.subr.bf16.mxu0 %v4013_v61 }
0x1546   :  { %4165 = vrcp.f32 %v2136_v9 }
0x1549   :  { %v2471_v10 = vpop.xlane.xlu1 %2470 }
0x154a   :  { %4167 = vrcp.f32 %v2471_v10 }
0x154c   :  { %v4162_v58 = vpop.eup %4161 }
0x154d   :  { %v4164_v7 = vpop.eup %4163 }
0x1550   :  { %v4166_v56 = vpop.eup %4165 }
0x1551   :  { %v2214_v11 = vmul.f32 %v4166_v56, %v4877_v25 }
0x1554   :  { %v4168_v16 = vpop.eup %4167 }
0x1586   :  { %v2375_v4 = vpop.f32.mrb[30].mxu1 }
0x1587   :  { %v2379_v5 = vmul.f32 %v4162_v58, %v2375_v4  ;;  %v3779_v47 = vpop.f32.mrb[31].mxu1  ;;  %v4939_v58 = vrot.slane %v4749_v17, %v4521_v46 }
0x1589   :  { %2381 = vrot.lane.b32.xlu0 %v2379_v5, %s4253_s14  ;;  %v3462_v5 = vld [vmem:[%s5051_s10] ss:$0 sm:$0xff] }
0x158a   :  { %v2545_v6 = vpop.f32.mrb[32].mxu1 }
0x158b   :  { %v3789_v35 = vpop.f32.mrb[33].mxu1  ;;  %v2549_v20 = vmul.f32 %v4168_v16, %v2545_v6  ;;  %v4944_v6 = vrot.slane %v4749_v17, %v4529_v51 }
0x158d   :  { %v2861_v10 = vadd.f32 1.0, %v4944_v6 }
0x158e   :  { %v2710_v59 = vpop.f32.mrb[34].mxu1 }
0x158f   :  { %v2714_v8 = vmul.f32 %v4164_v7, %v2710_v59  ;;  %v3799_v22 = vpop.f32.mrb[35].mxu1  ;;  %v2860_v7 = vadd.f32 1.0, %v4939_v58 }
0x1591   :  { %2716 = vrot.lane.b32.xlu1 %v2714_v8, %s4253_s14 }
0x15fb   :  { %v2382_v14 = vpop.permute.xlu0 %2381 }
0x15fc   :  { %v2384_v15 = vsel %vm641_vm3, %v2214_v11, %v2382_v14  ;;  %v3102_v14 = vld [vmem:[%s5052_s11] sm:$0xff] }
0x15fd   :  { %3808 = vmatprep.mubr.msk.f32.mxu0 %vm286_vm1, %v2384_v15  ;;  %v3103_v15 = vld [vmem:[%s5052_s11 + $0x8] sm:$0xff] }
0x1603   :  { %v2717_v23 = vpop.permute.xlu1 %2716 }
0x1604   :  { %v2719_v34 = vsel %vm641_vm3, %v2549_v20, %v2717_v23  ;;  %v4046_v20 = vpack.c.bf16 %v3103_v15, %v3102_v14 }
0x1605   :  { %3809 = vmatmul.mubr.msk.f32.vlgmr.msra.gmra.mrb[14].mxu0 %vm286_vm1, %v2719_v34  ;;  %v3104_v34 = vld [vmem:[%s5052_s11 + $0x10] sm:$0xff] }
0x1606   :  { %4016 = vmatpush3.bf16.msra.mxu0 %v4013_v61 }
0x16d8   :  { %v3810_v41 = vpop.f32.mrb[14].mxu0 }
0x16d9   :  { %v2796_v63 = vpop.f32.mrb[15].mxu0 }
0x16da   :  { %2807 = vrot.lane.b32.xlu1 %v2796_v63, %s4252_s8 }
0x16de   :  { %2809 = vrot.lane.b32.xlu1 %v3810_v41, %s4252_s8  ;;  %v3105_v41 = vld [vmem:[%s5052_s11 + $0x18] sm:$0xff] }
0x16df   :  { %v4049_v63 = vpack.c.bf16 %v3105_v41, %v3104_v34 }
0x174c   :  { %v2808_v27 = vpop.permute.xlu1 %2807 }
0x174d   :  { %v2813_v25 = vmul.f32 %v2808_v27, %v4781_v40  ;;  %v2986_v27 = vld [vmem:[%s5050_s7 + $0x10] sm:$0xff] }
0x174f   :  { %2817 = vrot.lane.b32.xlu0 %v2813_v25, %s4252_s8  ;;  %v2987_v25 = vld [vmem:[%s5050_s7 + $0x18] sm:$0xff] }
0x1750   :  { %v2810_v28 = vpop.permute.xlu1 %2809 }
0x1751   :  { %v2814_v1 = vmul.f32 %v2810_v28, %v4772_v55  ;;  %v4017_v28 = vpack.c.bf16 %v2987_v25, %v2986_v27 }
0x1753   :  { %2819 = vrot.lane.b32.xlu1 %v2814_v1, %s4252_s8  ;;  %4018 = vmatprep.subr.bf16.mxu0 %v4017_v28  ;;  %v2988_v1 = vld [vmem:[%s5050_s7 + $0x20] sm:$0xff] }
0x1754   :  { %4020 = vmatpush3.bf16.msra.mxu0 %v4017_v28 }
0x17c1   :  { %v2818_v29 = vpop.permute.xlu0 %2817 }
0x17c2   :  { %v4913_v30 = vadd.f32 %v2818_v29, %v4761_v19  ;;  %v2989_v29 = vld [vmem:[%s5050_s7 + $0x28] sm:$0xff] }
0x17c4   :  { %v2826_v31 = vsel %vm286_vm1, %v4913_v30, 0.0 }
0x17c5   :  { %2827 = vadd.xlane.f32.xlu0 %v2826_v31  ;;  %v2820_v32 = vpop.permute.xlu1 %2819  ;;  %v2991_v31 = vld [vmem:[%s5050_s7 + $0x38] sm:$0xff] }
0x17c6   :  { %v4918_v13 = vadd.f32 %v2820_v32, %v4766_v24  ;;  %v2992_v32 = vld [vmem:[%s5050_s7 + $0x40] sm:$0xff] }
0x17c8   :  { %v2829_v37 = vsel %vm286_vm1, %v4918_v13, 0.0 }
0x17c9   :  { %2830 = vadd.xlane.f32.xlu1 %v2829_v37  ;;  %v2993_v37 = vld [vmem:[%s5050_s7 + $0x48] sm:$0xff] }
0x17da   :  { %2868 = vrot.lane.b32.xlu1 %v4772_v55, %s4245_s9  ;;  %v2874_v55 = vld [vmem:[%s5049_s2] sm:$0xff] }
0x17db   :  { %v4005_v12 = vpack.c.bf16 %v2875_v21, %v2874_v55  ;;  %v3463_v55 = vld [vmem:[%s5053_s15] ss:$0 sm:$0xff] }
0x17dd   :  { %4006 = vmatprep.subr.bf16.mxu1 %v4005_v12 }
0x17de   :  { %4008 = vmatpush3.bf16.msra.mxu1 %v4005_v12 }
0x17df   :  { %4010 = vmatprep.subr.bf16.mxu1 %v4009_v50 }
0x17e2   :  { %4012 = vmatpush3.bf16.msra.mxu1 %v4009_v50 }
0x17e3   :  { %4045 = vmatprep.subr.bf16.mxu1 %v4240_v53 }
0x1852   :  { %v2828_v33 = vpop.xlane.xlu0 %2827 }
0x1853   :  { %v2832_v19 = vmul.f32 0.03125, %v2828_v33  ;;  %v4029_v33 = vpack.c.bf16 %v2993_v37, %v2992_v32 }
0x1855   :  { %v2834_v36 = vsub.f32 %v4913_v30, %v2832_v19  ;;  %v2994_v19 = vld [vmem:[%s5050_s7 + $0x50] sm:$0xff] }
0x1856   :  { %v2831_v39 = vpop.xlane.xlu1 %2830 }
0x1857   :  { %v2833_v43 = vmul.f32 0.03125, %v2831_v39  ;;  %v2836_v48 = vmul.f32 %v2834_v36, %v2834_v36 }
0x1859   :  { %v2835_v24 = vsub.f32 %v4918_v13, %v2833_v43  ;;  %v2838_v44 = vsel %vm286_vm1, %v2836_v48, 0.0  ;;  %v2996_v43 = vld [vmem:[%s5050_s7 + $0x60] sm:$0xff]  ;;  %v2997_v48 = vld [vmem:[%s5050_s7 + $0x68] sm:$0xff] }
0x185a   :  { %2839 = vadd.xlane.f32.xlu0 %v2838_v44  ;;  %v2869_v17 = vpop.permute.xlu1 %2868  ;;  %v2998_v44 = vld [vmem:[%s5050_s7 + $0x70] sm:$0xff] }
0x185b   :  { %v2837_v45 = vmul.f32 %v2835_v24, %v2835_v24 }
0x185d   :  { %v2841_v26 = vsel %vm286_vm1, %v2837_v45, 0.0  ;;  %v2999_v45 = vld [vmem:[%s5050_s7 + $0x78] sm:$0xff] }
0x185e   :  { %2842 = vadd.xlane.f32.xlu0 %v2841_v26  ;;  %v4041_v26 = vpack.c.bf16 %v2999_v45, %v2998_v44  ;;  %v3242_v44 = vld [vmem:[%s4430_s4 + $0x10] sm:$0xff]  ;;  %v3243_v45 = vld [vmem:[%s4430_s4 + $0x18] sm:$0xff] }
0x1874   :  { %2866 = vrot.lane.b32.xlu0 %v4781_v40, %s4245_s9 }
0x18e7   :  { %v2840_v62 = vpop.xlane.xlu0 %2839 }
0x18e8   :  { %v2844_v40 = vmul.f32 0.03125, %v2840_v62 }
0x18ea   :  { %v2846_v18 = vadd.f32 1e-05, %v2844_v40 }
0x18eb   :  { %v2843_v0 = vpop.xlane.xlu0 %2842 }
0x18ec   :  { %4169 = vrsqrt.f32 %v2846_v18  ;;  %v2845_v2 = vmul.f32 0.03125, %v2843_v0 }
0x18ee   :  { %v2847_v3 = vadd.f32 1e-05, %v2845_v2 }
0x18ef   :  { %v2867_v9 = vpop.permute.xlu0 %2866 }
0x18f0   :  { %4171 = vrsqrt.f32 %v2847_v3 }
0x18f6   :  { %v4170_v4 = vpop.eup %4169 }
0x18f7   :  { %v2850_v47 = vmul.f32 %v4170_v4, %v2834_v36  ;;  %v2995_v36 = vld [vmem:[%s5050_s7 + $0x58] sm:$0xff] }
0x18f8   :  { %v4033_v39 = vpack.c.bf16 %v2995_v36, %v2994_v19 }
0x18f9   :  { %v2858_v35 = vmul.f32 %v3462_v5, %v2850_v47 }
0x18fa   :  { %v4172_v59 = vpop.eup %4171 }
0x18fb   :  { %v2851_v8 = vmul.f32 %v4172_v59, %v2835_v24  ;;  %v2862_v22 = vmul.f32 %v2860_v7, %v2858_v35  ;;  %v4037_v24 = vpack.c.bf16 %v2997_v48, %v2996_v43  ;;  %v3240_v43 = vld [vmem:[%s4430_s4] sm:$0xff]  ;;  %v3241_v48 = vld [vmem:[%s4430_s4 + $0x8] sm:$0xff]  ;;  %s4255_s4 = smov [#allocation2]  }
0x18fd   :  { %v2859_v56 = vmul.f32 %v3462_v5, %v2851_v8  ;;  %v2872_v11 = vadd.f32 %v2867_v9, %v2862_v22 }
0x18ff   :  { %v2863_v16 = vmul.f32 %v2861_v10, %v2859_v56  ;;  %3819 = vmatprep.mubr.msk.f32.mxu1 %vm286_vm1, %v2872_v11  ;;  %v3466_v56 = vld [vmem:[%s5054_s16] ss:$0 sm:$0xff] }
0x1901   :  { %v2873_v23 = vadd.f32 %v2869_v17, %v2863_v16 }
0x1903   :  { %3820 = vmatmul.mubr.msk.f32.vlgmr.msra.gmra.mrb[36].mxu1 %vm286_vm1, %v2873_v23 }
0x1904   :  { %4047 = vmatpush3.bf16.msra.mxu1 %v4046_v20  ;;  %3865 = vmatprep.mubr.msk.f32.mxu1 %vm4241_vm0, %v4242_v57  ;;  %v4021_v57 = vpack.c.bf16 %v2989_v29, %v2988_v1 }
0x1905   :  { %4048 = vmatprep.subr.bf16.mxu1 %v4240_v53  ;;  %v2990_v53 = vld [vmem:[%s5050_s7 + $0x30] sm:$0xff] }
0x1906   :  { %4022 = vmatprep.subr.bf16.mxu0 %v4021_v57 }
0x1907   :  { %4024 = vmatpush3.bf16.msra.mxu0 %v4021_v57 }
0x1908   :  { %4050 = vmatpush3.bf16.msra.mxu1 %v4049_v63 }
0x190b   :  { %3866 = vmatmul.mubr.msk.f32.vlgmr.msra.gmra.mrb[38].mxu1 %vm286_vm1, %v4512_v38  ;;  %v4025_v38 = vpack.c.bf16 %v2991_v31, %v2990_v53 }
0x190d   :  { %4026 = vmatprep.subr.bf16.mxu0 %v4025_v38 }
0x190e   :  { %4028 = vmatpush3.bf16.msra.mxu0 %v4025_v38 }
0x190f   :  { %4030 = vmatprep.subr.bf16.mxu0 %v4029_v33 }
0x1912   :  { %4032 = vmatpush3.bf16.msra.mxu0 %v4029_v33 }
0x1913   :  { %4034 = vmatprep.subr.bf16.mxu0 %v4033_v39 }
0x1916   :  { %4036 = vmatpush3.bf16.msra.mxu0 %v4033_v39 }
0x1917   :  { %4038 = vmatprep.subr.bf16.mxu0 %v4037_v24 }
0x191a   :  { %4040 = vmatpush3.bf16.msra.mxu0 %v4037_v24  ;;  %v4051_v24 = vpack.c.bf16 %v3241_v48, %v3240_v43 }
0x191b   :  { %4042 = vmatprep.subr.bf16.mxu0 %v4041_v26 }
0x191c   :  { %4052 = vmatprep.subr.bf16.mxu1 %v4051_v24 }
0x191d   :  { %4054 = vmatpush3.bf16.msra.mxu1 %v4051_v24 }
0x191e   :  { %4044 = vmatpush3.bf16.msra.mxu0 %v4041_v26  ;;  %v4055_v26 = vpack.c.bf16 %v3243_v45, %v3242_v44 }
0x1920   :  { %4056 = vmatprep.subr.bf16.mxu1 %v4055_v26 }
0x1921   :  { %4058 = vmatpush3.bf16.msra.mxu1 %v4055_v26 }
0x19d6   :  { %v3821_v21 = vpop.f32.mrb[36].mxu1 }
0x19d7   :  { %v2963_v12 = vadd.f32 %v3821_v21, %v3463_v55  ;;  %v2957_v49 = vpop.f32.mrb[37].mxu1  ;;  %v4254_v21 = vmov 0  }
0x19d8   :  { %v2958_v54 = vadd.f32 %v3463_v55, %v2957_v49  ;;  %4111 = vset.pattern.permute.xlu1 %v4254_v21  ;;  %4112 = vset.pattern.permute.xlu0 %v4254_v21  ;;  %v3351_v49 = vld [vmem:[%s5056_s18 + $0x8] sm:$0xff] }
0x19d9   :  { %v2969_v50 = vmul.f32 0.044715, %v2963_v12  ;;  %v2967_v22 = vmul.f32 0.5, %v2963_v12 }
0x19da   :  { %v2968_v52 = vmul.f32 0.044715, %v2958_v54  ;;  %v2966_v59 = vmul.f32 0.5, %v2958_v54 }
0x19db   :  { %v2971_v60 = vmul.f32 %v2969_v50, %v2963_v12 }
0x19dc   :  { %v2970_v61 = vmul.f32 %v2968_v52, %v2958_v54 }
0x19dd   :  { %v2973_v62 = vmul.f32 %v2971_v60, %v2963_v12 }
0x19de   :  { %v3179_v40 = vpop.f32.mrb[38].mxu1  ;;  %v2972_v18 = vmul.f32 %v2970_v61, %v2958_v54 }
0x19df   :  { %v2975_v0 = vadd.f32 %v2973_v62, %v2963_v12  ;;  %v3867_v2 = vpop.f32.mrb[39].mxu1 }
0x19e0   :  { %v2974_v3 = vadd.f32 %v2972_v18, %v2958_v54  ;;  %v3469_v18 = vld [vmem:[%s5057_s5] ss:$0 sm:$0xff] }
0x19e1   :  { %v2977_v4 = vmul.f32 0.7978846, %v2975_v0 }
0x19e2   :  { %v2976_v5 = vmul.f32 0.7978846, %v2974_v3 }
0x19e3   :  { %4173 = vtanh.f32 %v2977_v4 }
0x19e4   :  { %4175 = vtanh.f32 %v2976_v5 }
0x19ed   :  { %v4174_v47 = vpop.eup %4173 }
0x19ee   :  { %v4176_v35 = vpop.eup %4175  ;;  %v2981_v7 = vadd.f32 1.0, %v4174_v47 }
0x19ef   :  { %v2980_v8 = vadd.f32 1.0, %v4176_v35 }
0x19f0   :  { %v2983_v10 = vmul.f32 %v2981_v7, %v2967_v22 }
0x19f1   :  { %v2982_v9 = vmul.f32 %v2980_v8, %v2966_v59 }
0x19f3   :  { %3854 = vmatprep.mubr.f32.mxu0 %v2982_v9 }
0x19f4   :  { %3855 = vmatmul.mubr.f32.vlgmr.msra.gmra.mrb[16].mxu0 %v2983_v10 }
0x1ac7   :  { %v3856_v11 = vpop.f32.mrb[16].mxu0 }
0x1ac8   :  { %v3073_v14 = vpop.f32.mrb[17].mxu0  ;;  %v3079_v16 = vadd.f32 %v3856_v11, %v3466_v56 }
0x1ac9   :  { %v3074_v15 = vadd.f32 %v3466_v56, %v3073_v14  ;;  %v3470_v56 = vld [vmem:[%s4435_s24] ss:$0 sm:$0xff] }
0x1acb   :  { %3084 = vrot.lane.b32.xlu1 %v3074_v15, %s4245_s9 }
0x1acf   :  { %3086 = vrot.lane.b32.xlu1 %v3079_v16, %s4245_s9 }
0x1b3d   :  { %v3085_v17 = vpop.permute.xlu1 %3084 }
0x1b3e   :  { %v3090_v20 = vmul.f32 %v3085_v17, %v4939_v58  ;;  %v3467_v58 = vld [vmem:[%s4425_s20] ss:$0 sm:$0xff]  ;;  %s5055_s20 = sld [smem:[#allocation6_spill]]  ;;  %v3349_v17 = vand.u32 127, %v383_v42 }
0x1b3f   :  { %v3180_v29 = vadd.f32 %v3467_v58, %v3179_v40 }
0x1b40   :  { %3094 = vrot.lane.b32.xlu0 %v3090_v20, %s4243_s0 }
0x1b41   :  { %v3087_v23 = vpop.permute.xlu1 %3086  ;;  %v3190_v57 = vrot.slane %v3180_v29, %v4529_v51  ;;  %v3186_v36 = vrot.slane %v3180_v29, %v4521_v46  ;;  %v3350_v46 = vld [vmem:[%s5056_s18] sm:$0xff] }
0x1b42   :  { %v3091_v34 = vmul.f32 %v3087_v23, %v4944_v6 }
0x1b43   :  { %v3227_v53 = vadd.f32 1.0, %v3190_v57  ;;  %v3226_v39 = vadd.f32 1.0, %v3186_v36 }
0x1b44   :  { %3096 = vrot.lane.b32.xlu1 %v3091_v34, %s4243_s0  ;;  %v3332_v55 = vld [vmem:[%s5055_s20] sm:$0xff]  ;;  %v3333_v12 = vld [vmem:[%s5055_s20 + $0x8] sm:$0xff] }
0x1bb2   :  { %v3095_v41 = vpop.permute.xlu0 %3094 }
0x1bb3   :  { %v3100_v63 = vadd.f32 %v3095_v41, %v4913_v30 }
0x1bb5   :  { %v3192_v27 = vsel %vm286_vm1, %v3100_v63, 0.0 }
0x1bb6   :  { %3193 = vadd.xlane.f32.xlu0 %v3192_v27  ;;  %v3097_v25 = vpop.permute.xlu1 %3096 }
0x1bb7   :  { %v3101_v28 = vadd.f32 %v3097_v25, %v4918_v13 }
0x1bb9   :  { %v3195_v1 = vsel %vm286_vm1, %v3101_v28, 0.0 }
0x1bba   :  { %3196 = vadd.xlane.f32.xlu1 %v3195_v1 }
0x1bcb   :  { %3232 = vrot.lane.b32.xlu1 %v3227_v53, %s4243_s0 }
0x1bcf   :  { %3336 = vperm.xlu1 %4111, %v3332_v55  }
0x1bd3   :  { %3341 = vperm.xlu1 %4111, %v3333_v12  }
0x1bd7   :  { %3356 = vperm.xlu1 %4111, %v3351_v49  }
0x1c43   :  { %v3194_v6 = vpop.xlane.xlu0 %3193 }
0x1c44   :  { %v3198_v30 = vmul.f32 0.03125, %v3194_v6 }
0x1c46   :  { %v3200_v31 = vsub.f32 %v3100_v63, %v3198_v30 }
0x1c47   :  { %v3197_v38 = vpop.xlane.xlu1 %3196 }
0x1c48   :  { %v3199_v32 = vmul.f32 0.03125, %v3197_v38  ;;  %v3202_v37 = vmul.f32 %v3200_v31, %v3200_v31 }
0x1c4a   :  { %v3201_v13 = vsub.f32 %v3101_v28, %v3199_v32  ;;  %v3204_v33 = vsel %vm286_vm1, %v3202_v37, 0.0 }
0x1c4b   :  { %3205 = vadd.xlane.f32.xlu0 %v3204_v33  ;;  %v3233_v59 = vpop.permute.xlu1 %3232 }
0x1c4c   :  { %v3203_v19 = vmul.f32 %v3201_v13, %v3201_v13 }
0x1c4e   :  { %v3207_v51 = vsel %vm286_vm1, %v3203_v19, 0.0 }
0x1c4f   :  { %3208 = vadd.xlane.f32.xlu0 %v3207_v51  ;;  %v3337_v9 = vpop.permute.xlu1 %3336 }
0x1c53   :  { %v3342_v10 = vpop.permute.xlu1 %3341 }
0x1c57   :  { %v3357_v34 = vpop.permute.xlu1 %3356 }
0x1c58   :  { %vm3359_vm6 = vcmp.eq.s32.totalorder %v3349_v17, %v3357_v34 }
0x1c65   :  { %3230 = vrot.lane.b32.xlu0 %v3226_v39, %s4243_s0  ;;  %s3369_s0 = sshll.u32 %s4255_s4, 4  ;;  %s3370_s0 = int_to_ptr.vmem [resolvable:$true] %s3369_s0 }
0x1c66   :  { %s4181_s24 = scalar_lea.vmem %s3370_s0, 256  ;;  %p4186_p1 = scmp.lt.s32.totalorder %s3370_s0, %s3370_s0 }
0x1c67   :  { %p4182_p0 = scmp.ne.s32.totalorder %s3370_s0, %s4181_s24  ;;  %p4187_p2 = scmp.lt.s32.totalorder %s4181_s24, %s4181_s24 }
0x1c69   :  { %3353 = vperm.xlu0 %4112, %v3350_v46   ;;  %p4188_p3 = por %p4187_p2, %p4186_p1 }
0x1c6b   :  { %p4189_p4 = pnand %p4188_p3, %p4182_p0 }
0x1cd8   :  { %v3206_v54 = vpop.xlane.xlu0 %3205 }
0x1cd9   :  { %v3210_v50 = vmul.f32 0.03125, %v3206_v54 }
0x1cdb   :  { %v3212_v52 = vadd.f32 1e-05, %v3210_v50 }
0x1cdc   :  { %v3209_v60 = vpop.xlane.xlu0 %3208 }
0x1cdd   :  { %4177 = vrsqrt.f32 %v3212_v52  ;;  %v3211_v61 = vmul.f32 0.03125, %v3209_v60 }
0x1cdf   :  { %v3213_v62 = vadd.f32 1e-05, %v3211_v61 }
0x1ce0   :  { %v3231_v4 = vpop.permute.xlu0 %3230 }
0x1ce1   :  { %4179 = vrsqrt.f32 %v3213_v62 }
0x1ce7   :  { %v4178_v40 = vpop.eup %4177 }
0x1ce8   :  { %v3216_v0 = vmul.f32 %v4178_v40, %v3200_v31  ;;  %v3354_v20 = vpop.permute.xlu0 %3353 }
0x1ce9   :  { %vm3358_vm5 = vcmp.eq.s32.totalorder %v3349_v17, %v3354_v20 }
0x1cea   :  { %v3224_v2 = vmul.f32 %v3469_v18, %v3216_v0 }
0x1ceb   :  { %v4180_v3 = vpop.eup %4179 }
0x1cec   :  { %v3217_v5 = vmul.f32 %v4180_v3, %v3201_v13  ;;  %v3236_v47 = vmul.f32 %v3231_v4, %v3224_v2 }
0x1cee   :  { %v3225_v35 = vmul.f32 %v3469_v18, %v3217_v5  ;;  %v3238_v7 = vadd.f32 %v3236_v47, %v3186_v36 }
0x1cf0   :  { %v3237_v8 = vmul.f32 %v3233_v59, %v3225_v35  ;;  %3876 = vmatprep.mubr.msk.f32.mxu1 %vm286_vm1, %v3238_v7 }
0x1cf2   :  { %v3239_v22 = vadd.f32 %v3237_v8, %v3190_v57 }
0x1cf4   :  { %3877 = vmatmul.mubr.msk.f32.vlgmr.msra.gmra.mrb[40].mxu1 %vm286_vm1, %v3239_v22 }
0x1dc7   :  { %v3878_v11 = vpop.f32.mrb[40].mxu1 }
0x1dc8   :  { %v3329_v14 = vadd.f32 %v3878_v11, %v3470_v56  ;;  %v3323_v15 = vpop.f32.mrb[41].mxu1 }
0x1dc9   :  { %v3324_v16 = vadd.f32 %v3470_v56, %v3323_v15 }
0x1dca   :  { %v3345_v23 = vsub.f32 %v3329_v14, %v3342_v10 }
0x1dcb   :  { %v3344_v41 = vsub.f32 %v3324_v16, %v3337_v9 }
0x1dcc   :  { %v3474_v63 = vadd.f32 -2.7080503, %v3345_v23 }
0x1dcd   :  { %v3473_v27 = vadd.f32 -2.7080503, %v3344_v41 }
0x1dce   :  { %v3361_v25 = vsel %vm3359_vm6, 0.0, %v3474_v63 }
0x1dcf   :  { %3363 = vst.msk [vmem:[#allocation2 + $0x8] sm:$0xff] %vm641_vm3, %v3361_v25  ;;  %v3360_v28 = vsel %vm3358_vm5, 0.0, %v3473_v27 }
0x1dd0   :  { %3362 = vst.msk [vmem:[#allocation2] sm:$0xff] %vm641_vm3, %v3360_v28 }
0x1dd1   :  { %4192 = shalt.err (!%p4189_p4)
}
0x1dd2   :  { %s4193_s9 = scalar_lea.hbm %s4440_s27, 256 }
0x1dd3   :  { %p4194_p5 = scmp.ne.s32.totalorder %s4440_s27, %s4193_s9  ;;  %p4197_p6 = scmp.lt.u32.totalorder %s4193_s9, %s4440_s27 }
0x1dd5   :  { %p4199_p7 = pnand %p4197_p6, %p4194_p5 }
0x1dd7   :  { %4202 = shalt.err (!%p4199_p7)
}
0x1dd8   :  { %s4256_s21 = smov 128  }
0x1dd9   :  { %3375 = dma.vmem_to_hbm [thread:$0]  %s3370_s0, 256, %s4440_s27, [#allocation3], %s4256_s21, %s4256_s21, %s4247_s25  }
0x1dda   :  { %4203 = dma.done.wait [#allocation3], 256  }
0x1ddb   :  { %4204 = vsyncadd [#allocation3], 4294967040 }
0x1ddc   :  { %3379 = vsyncpa [#allocation3], 1 }

</bundles_post_ra>
